<compile_context>
chip_gen: v5e
topology: v5e:2x2
jax: 0.10.0
libtpu: 0.0.40
codegen_flags: <defaults>
</compile_context>

<pallas_src>
import functools

import jax
import jax.numpy as jnp
import numpy as np
from jax.experimental import pallas as pl
from jax.experimental.pallas import tpu as pltpu

EPS = 1e-5      # nn.BatchNorm2d default eps
PAD = 8         # vertical zero-padding rows around the conv1 scratch (8-aligned)

# phases of the leading grid axis
PH_CONV1, PH_CONV2, PH_CONV3, PH_OUT = 0, 1, 2, 3


# ------------------------------- in-kernel helpers ----------------------------


def _fold_channels(row, W, C):
    """Sum the W pixel replicas of each channel along the lane axis.

    `row` is (1, W*C) with the channel fastest; returns (1, W*C) where every lane
    holds the total over the W pixel positions of its channel (broadcast back to
    all lanes).  Uses an XLU roll tree instead of a (W*C, W*C) fold matmul.
    """
    total = row
    if W & (W - 1) == 0:                      # power of two: log2(W) rolls
        shift = C
        while shift < W * C:
            total = total + pltpu.roll(total, shift=shift, axis=1)
            shift *= 2
    else:                                     # generic fallback: W-1 rolls
        rolled = row
        for _ in range(W - 1):
            rolled = pltpu.roll(rolled, shift=C, axis=1)
            total = total + rolled
    return total


def _finalize_bn(stat_ref, aff_ref, bn_ref, idx, W, C, inv_m):
    """Streamed per-lane sum / sum^2 -> per-lane BN scale & shift (rows 2*idx..)."""
    s = _fold_channels(stat_ref[2 * idx:2 * idx + 1, :], W, C)
    s2 = _fold_channels(stat_ref[2 * idx + 1:2 * idx + 2, :], W, C)
    mean = s * inv_m
    # one-pass variance; clamp tiny negatives from cancellation.  If accuracy
    # ever regresses, switch back to the two-pass centered form.
    var = jnp.maximum(s2 * inv_m - mean * mean, 0.0)
    gamma = aff_ref[2 * idx:2 * idx + 1, :]
    beta = aff_ref[2 * idx + 1:2 * idx + 2, :]
    scale = gamma * jax.lax.rsqrt(var + EPS)
    bn_ref[2 * idx:2 * idx + 1, :] = scale
    bn_ref[2 * idx + 1:2 * idx + 2, :] = beta - mean * scale


# ------------------------------------ kernel ---------------------------------


def resblock_kernel(x_ref, w1r_ref, w2_ref, w3_ref, aff_ref, out_ref,
                    hpad_ref, res_ref, h23_ref, stat_ref, bn_ref, *,
                    H, W, out_c, NH, t_rows, n_pixels):
    WC = W * out_c
    ph = pl.program_id(0)                     # phase
    i = pl.program_id(1)                      # row tile
    if t_rows % 16 == 0:
        row0 = pl.multiple_of(i * t_rows, 16)
    else:
        # _pick_row_tile guarantees a single tile in this case -> offset is 0.
        row0 = 0
    inv_m = 1.0 / float(n_pixels)

    # ---- phase 0: conv1 + residual projection (one fused matmul), BN1 stats --
    @pl.when(ph == PH_CONV1)
    def _phase_conv1():
        @pl.when(i == 0)
        def _init():
            stat_ref[...] = jnp.zeros_like(stat_ref)
            hpad_ref[0:PAD, :] = jnp.zeros((PAD, WC), jnp.float32)
            hpad_ref[PAD + NH:PAD + NH + PAD, :] = jnp.zeros((PAD, WC),
                                                             jnp.float32)

        xt = x_ref[...]                                       # bf16 (t_rows, W*in_c)
        both = jnp.dot(xt, w1r_ref[...], preferred_element_type=jnp.float32)
        h1 = both[:, :WC]                                     # conv1 (bias cancels in BN)
        res = both[:, WC:] + aff_ref[6:7, :]                  # residual 1x1 (+ its bias)
        hpad_ref[pl.ds(row0 + PAD, t_rows), :] = h1
        res_ref[pl.ds(row0, t_rows), :] = res.astype(jnp.bfloat16)
        stat_ref[0:1, :] += jnp.sum(h1, axis=0, keepdims=True)
        stat_ref[1:2, :] += jnp.sum(h1 * h1, axis=0, keepdims=True)

    # ---- phase 1: BN1+ReLU (on the fly) -> banded 3x3 grouped conv, BN2 stats -
    @pl.when(ph == PH_CONV2)
    def _phase_conv2():
        @pl.when(i == 0)
        def _fin1():
            _finalize_bn(stat_ref, aff_ref, bn_ref, 0, W, out_c, inv_m)

        scale1, shift1 = bn_ref[0:1, :], bn_ref[1:2, :]
        # aligned superset load (halo of PAD rows each side), then static
        # in-register slices: avoids unaligned dynamic sublane slicing.
        big = hpad_ref[pl.ds(row0, t_rows + 2 * PAD), :]
        h_img = (row0 + jax.lax.broadcasted_iota(jnp.int32, (t_rows, 1), 0)) % H
        acc = jnp.zeros((t_rows, WC), jnp.float32)
        for ky in range(3):
            band = big[PAD - 1 + ky:PAD - 1 + ky + t_rows, :]
            z = jnp.maximum(band * scale1 + shift1, 0.0)
            if ky == 0:                       # row above the image's top edge
                z = jnp.where(h_img > 0, z, 0.0)
            elif ky == 2:                     # row below the image's bottom edge
                z = jnp.where(h_img < H - 1, z, 0.0)
            acc = acc + jnp.dot(z.astype(jnp.bfloat16), w2_ref[ky],
                                preferred_element_type=jnp.float32)
        h23_ref[pl.ds(row0, t_rows), :] = acc.astype(jnp.bfloat16)
        stat_ref[2:3, :] += jnp.sum(acc, axis=0, keepdims=True)
        stat_ref[3:4, :] += jnp.sum(acc * acc, axis=0, keepdims=True)

    # ---- phase 2: BN2+ReLU -> grouped 1x1 conv3, BN3 stats --------------------
    @pl.when(ph == PH_CONV3)
    def _phase_conv3():
        @pl.when(i == 0)
        def _fin2():
            _finalize_bn(stat_ref, aff_ref, bn_ref, 1, W, out_c, inv_m)

        scale2, shift2 = bn_ref[2:3, :], bn_ref[3:4, :]
        h2 = h23_ref[pl.ds(row0, t_rows), :].astype(jnp.float32)
        z = jnp.maximum(h2 * scale2 + shift2, 0.0)
        h3 = jnp.dot(z.astype(jnp.bfloat16), w3_ref[...],
                     preferred_element_type=jnp.float32)
        h23_ref[pl.ds(row0, t_rows), :] = h3.astype(jnp.bfloat16)   # reuse buffer
        stat_ref[4:5, :] += jnp.sum(h3, axis=0, keepdims=True)
        stat_ref[5:6, :] += jnp.sum(h3 * h3, axis=0, keepdims=True)

    # ---- phase 3: BN3+ReLU + residual add, stream the output tile out ---------
    @pl.when(ph == PH_OUT)
    def _phase_out():
        @pl.when(i == 0)
        def _fin3():
            _finalize_bn(stat_ref, aff_ref, bn_ref, 2, W, out_c, inv_m)

        scale3, shift3 = bn_ref[4:5, :], bn_ref[5:6, :]
        h3 = h23_ref[pl.ds(row0, t_rows), :].astype(jnp.float32)
        y = jnp.maximum(h3 * scale3 + shift3, 0.0)
        out_ref[...] = y + res_ref[pl.ds(row0, t_rows), :].astype(jnp.float32)


# --------------------------- weight preparation -------------------------------


def expand_grouped_1x1(w, in_c, out_c, groups):
    # PyTorch grouped weight (out_c, in_c//g, 1, 1) -> block-diag dense (in_c, out_c)
    icg, ocg = in_c // groups, out_c // groups
    dense = jnp.zeros((in_c, out_c), jnp.float32)
    for g in range(groups):
        blk = w[g * ocg:(g + 1) * ocg, :, 0, 0]            # (ocg, icg)
        dense = dense.at[g * icg:(g + 1) * icg, g * ocg:(g + 1) * ocg].set(blk.T)
    return dense


def expand_grouped_3x3(w, in_c, out_c, groups):
    # PyTorch grouped weight (out_c, in_c//g, 3, 3) -> dense (3, 3, in_c, out_c)
    icg, ocg = in_c // groups, out_c // groups
    dense = jnp.zeros((3, 3, in_c, out_c), jnp.float32)
    for g in range(groups):
        blk = w[g * ocg:(g + 1) * ocg, :, :, :]            # (ocg, icg, 3, 3)
        dense = dense.at[:, :, g * icg:(g + 1) * icg, g * ocg:(g + 1) * ocg].set(
            jnp.transpose(blk, (2, 3, 1, 0)))
    return dense


def _interleave_1x1(w_dense, W):
    # (cin, cout) -> (W*cin, W*cout) acting per pixel on the (rows, W*C) layout.
    return jnp.kron(jnp.eye(W, dtype=jnp.float32), w_dense.astype(jnp.float32))


def _banded_3x3(w_dense, W):
    # (3, 3, c, c) -> (3, W*c, W*c): one banded matrix per vertical tap ky with
    # the horizontal taps (im2col + horizontal zero-pad) folded into the weights.
    c_in, c_out = w_dense.shape[2], w_dense.shape[3]
    mats = []
    for ky in range(3):
        m = jnp.zeros((W * c_in, W * c_out), jnp.float32)
        for kx in range(3):
            m = m + jnp.kron(jnp.eye(W, k=-(kx - 1), dtype=jnp.float32),
                             w_dense[ky, kx].astype(jnp.float32))
        mats.append(m)
    return jnp.stack(mats)


# ---------------------------- tiling / VMEM budget ----------------------------


def _pick_row_tile(nh, target=256):
    """Row-tile size for the streaming grid.

    Small inputs run as one tile (no per-step overhead); larger inputs use the
    largest 16-aligned divisor of nh up to `target` (keeps the MXU M dimension
    busy: >=128 rows on v5e, >=256 on v6e/v7x)."""
    if nh % 16 != 0 or nh <= 2 * target:
        return nh
    best = 16
    for t in range(16, min(target, nh) + 1, 16):
        if nh % t == 0:
            best = t
    return best


def _vmem_capacity_bytes():
    try:
        info_fn = getattr(pltpu, "get_tpu_info", None)
        if info_fn is not None:
            info = info_fn()
            for name in ("vmem_capacity_bytes", "vmem_bytes", "vmem_size_bytes"):
                cap = getattr(info, name, None)
                if cap:
                    return int(cap)
    except Exception:
        pass
    return 64 * 1024 * 1024        # assume v7x per-TensorCore (most restrictive)


def _vmem_bytes_estimate(NH, WC_in, WC_out, t_rows):
    scratch = ((NH + 2 * PAD) * WC_out * 4        # conv1 raw, f32 (halo-sliced)
               + NH * WC_out * 2                  # residual, bf16
               + NH * WC_out * 2                  # conv2/conv3 raw, bf16 (reused)
               + 2 * 8 * WC_out * 4)              # stats + BN scale/shift
    blocks = 2 * (t_rows * WC_in * 2              # x tile (bf16, double-buffered)
                  + t_rows * WC_out * 4           # out tile (f32, double-buffered)
                  + WC_in * 2 * WC_out * 2        # [w1 | wr]
                  + 3 * WC_out * WC_out * 2       # banded 3x3 weights
                  + WC_out * WC_out * 2           # w3
                  + 8 * WC_out * 4)               # affine rows
    return scratch + blocks


# --------------------------- glue / wrapper ----------------------------------


def res_block_forward(x_nchw, p, *, n_frame=4):
    N, in_c, H, W = x_nchw.shape
    out_c = p["w3"].shape[0]
    NH, M = N * H, N * H * W
    WC_in, WC_out = W * in_c, W * out_c
    # NOTE(v5e): best MXU utilization when W*C is a multiple of 128 (true here).

    # NCHW -> lane-dense rows (N*H, W*in_c); channels fastest within a pixel.
    # bf16 here halves the HBM read traffic of the streaming phase.
    x_rows = jnp.transpose(x_nchw, (0, 2, 3, 1)).reshape(NH, WC_in)
    x_rows = x_rows.astype(jnp.bfloat16)

    # conv1 and the 1x1 residual projection share the same operand -> fuse the
    # two matmuls into a single [w1 | wr] weight.
    w1_i = _interleave_1x1(expand_grouped_1x1(p["w1"], in_c, out_c, n_frame), W)
    if "wr" in p:                       # learned 1x1 residual (in_c != out_c)
        wr_dense, br = p["wr"][:, :, 0, 0].T, p["br"]
    else:                               # nn.Identity residual
        wr_dense = jnp.eye(in_c, out_c, dtype=jnp.float32)
        br = jnp.zeros((out_c,), jnp.float32)
    wr_i = _interleave_1x1(wr_dense, W)
    w1r = jnp.concatenate([w1_i, wr_i], axis=1).astype(jnp.bfloat16)

    w2 = _banded_3x3(expand_grouped_3x3(p["w2"], out_c, out_c, n_frame),
                     W).astype(jnp.bfloat16)
    w3 = _interleave_1x1(expand_grouped_1x1(p["w3"], out_c, out_c, n_frame),
                         W).astype(jnp.bfloat16)

    # BN affine params + residual bias, tiled per lane.
    # Rows: 0..5 = g1, be1, g2, be2, g3, be3 ; 6 = residual bias ; 7 = unused.
    tile_row = lambda v: jnp.tile(v.reshape(1, out_c).astype(jnp.float32), (1, W))
    aff = jnp.concatenate(
        [tile_row(p["g1"]), tile_row(p["be1"]),
         tile_row(p["g2"]), tile_row(p["be2"]),
         tile_row(p["g3"]), tile_row(p["be3"]),
         tile_row(br), jnp.zeros((1, WC_out), jnp.float32)], axis=0)
    # NOTE: conv biases b1/b2/b3 are dropped on purpose - training-mode BatchNorm
    # subtracts the batch mean, so they cancel exactly (not valid for eval-mode
    # BN with running statistics).

    t_rows = _pick_row_tile(NH)
    n_tiles = NH // t_rows
    assert n_tiles * t_rows == NH
    assert t_rows % 16 == 0 or n_tiles == 1

    need = _vmem_bytes_estimate(NH, WC_in, WC_out, t_rows)
    cap = _vmem_capacity_bytes()
    if need > int(0.9 * cap):
        raise ValueError(
            f"ResBlock Pallas kernel needs ~{need >> 20} MiB VMEM but only "
            f"{cap >> 20} MiB per TensorCore are available; re-tile or use the "
            f"dense per-channel layout (see TODO) for this shape.")
    vmem_limit = int(min(max(need + (4 << 20), 32 << 20), int(0.9 * cap)))

    kernel = functools.partial(resblock_kernel, H=H, W=W, out_c=out_c, NH=NH,
                               t_rows=t_rows, n_pixels=M)

    # x is only read in phase 0 -> park on its last block afterwards (no re-DMA).
    x_map = lambda ph, i: (jnp.where(ph == PH_CONV1, i, n_tiles - 1), 0)
    # output tiles are only produced in the last phase; park on block 0 before
    # that so every tile is written back exactly once (streamed write-back).
    out_map = lambda ph, i: (jnp.where(ph == PH_OUT, i, 0), 0)

    out_rows = pl.pallas_call(
        kernel,
        out_shape=jax.ShapeDtypeStruct((NH, WC_out), jnp.float32),
        grid_spec=pltpu.PrefetchScalarGridSpec(
            num_scalar_prefetch=0,
            grid=(4, n_tiles),                       # (phase, row tile)
            in_specs=[
                pl.BlockSpec((t_rows, WC_in), x_map),              # x tiles
                pl.BlockSpec((WC_in, 2 * WC_out), lambda ph, i: (0, 0)),   # [w1|wr]
                pl.BlockSpec((3, WC_out, WC_out), lambda ph, i: (0, 0, 0)),  # banded 3x3
                pl.BlockSpec((WC_out, WC_out), lambda ph, i: (0, 0)),        # w3
                pl.BlockSpec((8, WC_out), lambda ph, i: (0, 0)),             # affine/bias
            ],
            out_specs=pl.BlockSpec((t_rows, WC_out), out_map),
            scratch_shapes=[
                pltpu.VMEM((NH + 2 * PAD, WC_out), jnp.float32),  # conv1 raw (+v-pad)
                pltpu.VMEM((NH, WC_out), jnp.bfloat16),           # residual branch
                pltpu.VMEM((NH, WC_out), jnp.bfloat16),           # conv2 raw -> conv3 raw
                pltpu.VMEM((8, WC_out), jnp.float32),             # BN sum / sum^2 (x3)
                pltpu.VMEM((8, WC_out), jnp.float32),             # BN scale / shift (x3)
            ],
        ),
        compiler_params=pltpu.CompilerParams(
            dimension_semantics=("arbitrary", "arbitrary"),
            vmem_limit_bytes=vmem_limit),
    )(x_rows, w1r, w2, w3, aff)

    return jnp.transpose(out_rows.reshape(N, H, W, out_c), (0, 3, 1, 2))


# ----------------------- pure-JAX reference (for checking) -------------------


def torch_like_ref(x, p, n_frame=4):
    dn = ("NCHW", "OIHW", "NCHW")
    prec = jax.lax.Precision.HIGHEST

    def conv(x, w, b, pad, groups):
        y = jax.lax.conv_general_dilated(
            x, w, window_strides=(1, 1), padding=pad,
            dimension_numbers=dn, feature_group_count=groups, precision=prec)
        return y + b[None, :, None, None]

    def bn_relu(h, gamma, beta):
        mean = jnp.mean(h, axis=(0, 2, 3), keepdims=True)
        var = jnp.mean((h - mean) ** 2, axis=(0, 2, 3), keepdims=True)
        y = (h - mean) / jnp.sqrt(var + EPS)
        y = y * gamma[None, :, None, None] + beta[None, :, None, None]
        return jnp.maximum(y, 0.0)

    h = bn_relu(conv(x, p["w1"], p["b1"], ((0, 0), (0, 0)), n_frame), p["g1"], p["be1"])
    h = bn_relu(conv(h, p["w2"], p["b2"], ((1, 1), (1, 1)), n_frame), p["g2"], p["be2"])
    h = bn_relu(conv(h, p["w3"], p["b3"], ((0, 0), (0, 0)), n_frame), p["g3"], p["be3"])
    res = conv(x, p["wr"], p["br"], ((0, 0), (0, 0)), 1)
    return h + res


# --------------------------------- params ------------------------------------


def init_params(key, in_c, out_c, n_frame):
    ks = jax.random.split(key, 8)
    icg, ocg = in_c // n_frame, out_c // n_frame
    p = {
        "w1": 0.1 * jax.random.normal(ks[0], (out_c, icg, 1, 1), jnp.float32),
        "b1": 0.1 * jax.random.normal(ks[1], (out_c,), jnp.float32),
        "w2": 0.1 * jax.random.normal(ks[2], (out_c, ocg, 3, 3), jnp.float32),
        "b2": 0.1 * jax.random.normal(ks[3], (out_c,), jnp.float32),
        "w3": 0.1 * jax.random.normal(ks[4], (out_c, ocg, 1, 1), jnp.float32),
        "b3": 0.1 * jax.random.normal(ks[5], (out_c,), jnp.float32),
        "wr": 0.1 * jax.random.normal(ks[6], (out_c, in_c, 1, 1), jnp.float32),
        "br": 0.1 * jax.random.normal(ks[7], (out_c,), jnp.float32),
    }
    # BatchNorm2d default init: weight = 1, bias = 0
    for i in (1, 2, 3):
        p[f"g{i}"] = jnp.ones((out_c,), jnp.float32)
        p[f"be{i}"] = jnp.zeros((out_c,), jnp.float32)
    return p


if __name__ == "__main__":
    # in_c != out_c exercises the 1x1 residual-projection path.
    N, in_c, out_c, H, W, n_frame = 2, 8, 16, 16, 16, 4
    key = jax.random.PRNGKey(0)
    kx, kp = jax.random.split(key)
    x = jax.random.normal(kx, (N, in_c, H, W), jnp.float32)
    params = init_params(kp, in_c, out_c, n_frame)

    fwd = jax.jit(functools.partial(res_block_forward, n_frame=n_frame))
    out = jax.block_until_ready(fwd(x, params))

    assert out.shape == (N, out_c, H, W)
    ref = torch_like_ref(x, params, n_frame)
    # bf16 MXU operands + bf16 storage of the residual / conv2 / conv3
    # intermediates (f32 accumulation & BN statistics) vs. an all-f32 reference.
    np.testing.assert_allclose(np.asarray(out), np.asarray(ref),
                               rtol=3e-2, atol=3e-2)
    print("KERNEL_OK")
</pallas_src>

<mosaic_0001>
module attributes {stable_mosaic.version = 11 : i64} {
  func.func @resblock_kernel(%arg0: i32, %arg1: i32, %arg2: memref<32x128xbf16, #tpu.memory_space<vmem>>, %arg3: memref<128x512xbf16, #tpu.memory_space<vmem>>, %arg4: memref<3x256x256xbf16, #tpu.memory_space<vmem>>, %arg5: memref<256x256xbf16, #tpu.memory_space<vmem>>, %arg6: memref<8x256xf32, #tpu.memory_space<vmem>>, %arg7: memref<32x256xf32, #tpu.memory_space<vmem>>, %arg8: memref<48x256xf32, #tpu.memory_space<vmem>>, %arg9: memref<32x256xbf16, #tpu.memory_space<vmem>>, %arg10: memref<32x256xbf16, #tpu.memory_space<vmem>>, %arg11: memref<8x256xf32, #tpu.memory_space<vmem>>, %arg12: memref<8x256xf32, #tpu.memory_space<vmem>>) attributes {dimension_semantics = [#tpu.dimension_semantics<arbitrary>, #tpu.dimension_semantics<arbitrary>], iteration_bounds = array<i64: 4, 1>, scalar_prefetch = 0 : i64, scratch_operands = 5 : i64, tpu.core_type = #tpu.core_type<tc>, window_params = [{transform_indices = @transform_0, window_bounds = array<i64: 32, 128>}, {pipeline_mode = #tpu.pipeline_mode<synchronous>, transform_indices = @transform_1, window_bounds = array<i64: 128, 512>}, {pipeline_mode = #tpu.pipeline_mode<synchronous>, transform_indices = @transform_2, window_bounds = array<i64: 3, 256, 256>}, {pipeline_mode = #tpu.pipeline_mode<synchronous>, transform_indices = @transform_3, window_bounds = array<i64: 256, 256>}, {pipeline_mode = #tpu.pipeline_mode<synchronous>, transform_indices = @transform_4, window_bounds = array<i64: 8, 256>}, {transform_indices = @transform_5, window_bounds = array<i64: 32, 256>}]} {
    %c32_i32 = arith.constant 32 : i32
    %0 = arith.muli %arg1, %c32_i32 : i32
    %1 = tpu.assume_multiple %0, 16 : i32
    %c0_i32 = arith.constant 0 : i32
    %2 = arith.cmpi eq, %arg0, %c0_i32 : i32
    %3 = arith.extui %2 : i1 to i32
    %c0_i32_0 = arith.constant 0 : i32
    %4 = arith.cmpi ne, %3, %c0_i32_0 : i32
    scf.if %4 {
      %c0_i32_4 = arith.constant 0 : i32
      %14 = arith.cmpi eq, %arg1, %c0_i32_4 : i32
      %15 = arith.extui %14 : i1 to i32
      %c0_i32_5 = arith.constant 0 : i32
      %16 = arith.cmpi ne, %15, %c0_i32_5 : i32
      scf.if %16 {
        %cst_21 = arith.constant 0.000000e+00 : f32
        %42 = vector.broadcast %cst_21 : f32 to vector<8x256xf32>
        %c0_22 = arith.constant 0 : index
        %c0_23 = arith.constant 0 : index
        %43 = vector.load %arg11[%c0_22, %c0_23] : memref<8x256xf32, #tpu.memory_space<vmem>>, vector<8x256xf32>
        tpu.vector_store %arg11[%c0_22, %c0_23], %42 {strides = array<i32>} : memref<8x256xf32, #tpu.memory_space<vmem>>, vector<8x256xf32>,
        %cst_24 = arith.constant 0.000000e+00 : f32
        %44 = vector.broadcast %cst_24 : f32 to vector<8x256xf32>
        %c0_25 = arith.constant 0 : index
        %c0_26 = arith.constant 0 : index
        %45 = vector.load %arg8[%c0_25, %c0_26] : memref<48x256xf32, #tpu.memory_space<vmem>>, vector<8x256xf32>
        tpu.vector_store %arg8[%c0_25, %c0_26], %44 {strides = array<i32>} : memref<48x256xf32, #tpu.memory_space<vmem>>, vector<8x256xf32>,
        %cst_27 = arith.constant 0.000000e+00 : f32
        %46 = vector.broadcast %cst_27 : f32 to vector<8x256xf32>
        %c40 = arith.constant 40 : index
        %c0_28 = arith.constant 0 : index
        %47 = vector.load %arg8[%c40, %c0_28] : memref<48x256xf32, #tpu.memory_space<vmem>>, vector<8x256xf32>
        tpu.vector_store %arg8[%c40, %c0_28], %46 {strides = array<i32>} : memref<48x256xf32, #tpu.memory_space<vmem>>, vector<8x256xf32>,
      } else {
      }
      %c0 = arith.constant 0 : index
      %c0_6 = arith.constant 0 : index
      %17 = vector.load %arg2[%c0, %c0_6] : memref<32x128xbf16, #tpu.memory_space<vmem>>, vector<32x128xbf16>
      %c0_7 = arith.constant 0 : index
      %c0_8 = arith.constant 0 : index
      %18 = vector.load %arg3[%c0_7, %c0_8] : memref<128x512xbf16, #tpu.memory_space<vmem>>, vector<128x512xbf16>
      %cst = arith.constant dense<0.000000e+00> : vector<32x512xf32>
      %19 = tpu.matmul %17, %18, %cst {dimension_numbers = #tpu.dot_dimension_numbers<[1], [0], [0], [1], [0, 0, 1, 1], [], []>} : vector<32x128xbf16>, vector<128x512xbf16>, vector<32x512xf32> -> vector<32x512xf32>
      %20 = vector.extract_strided_slice %19 {offsets = [0, 0], sizes = [32, 256], strides = [1, 1]} : vector<32x512xf32> to vector<32x256xf32>
      %21 = vector.extract_strided_slice %19 {offsets = [0, 256], sizes = [32, 256], strides = [1, 1]} : vector<32x512xf32> to vector<32x256xf32>
      %c6 = arith.constant 6 : index
      %c0_9 = arith.constant 0 : index
      %22 = vector.load %arg6[%c6, %c0_9] : memref<8x256xf32, #tpu.memory_space<vmem>>, vector<1x256xf32>
      %23 = vector.broadcast %22 : vector<1x256xf32> to vector<32x256xf32>
      %24 = arith.addf %21, %23 : vector<32x256xf32>
      %c8_i32 = arith.constant 8 : i32
      %25 = arith.addi %1, %c8_i32 : i32
      %26 = arith.index_cast %25 : i32 to index
      %c0_10 = arith.constant 0 : index
      %27 = vector.load %arg8[%26, %c0_10] : memref<48x256xf32, #tpu.memory_space<vmem>>, vector<32x256xf32>
      tpu.vector_store %arg8[%26, %c0_10], %20 {strides = array<i32>} : memref<48x256xf32, #tpu.memory_space<vmem>>, vector<32x256xf32>,
      %28 = arith.truncf %24 : vector<32x256xf32> to vector<32x256xbf16>
      %29 = arith.index_cast %1 : i32 to index
      %c0_11 = arith.constant 0 : index
      %30 = vector.load %arg9[%29, %c0_11] : memref<32x256xbf16, #tpu.memory_space<vmem>>, vector<32x256xbf16>
      tpu.vector_store %arg9[%29, %c0_11], %28 {strides = array<i32>} : memref<32x256xbf16, #tpu.memory_space<vmem>>, vector<32x256xbf16>,
      %c0_12 = arith.constant 0 : index
      %c0_13 = arith.constant 0 : index
      %31 = vector.load %arg11[%c0_12, %c0_13] : memref<8x256xf32, #tpu.memory_space<vmem>>, vector<1x256xf32>
      %cst_14 = arith.constant dense<0.000000e+00> : vector<256xf32>
      %32 = vector.multi_reduction <add>, %20, %cst_14 [0] : vector<32x256xf32> to vector<256xf32>
      %33 = vector.shape_cast %32 : vector<256xf32> to vector<1x256xf32>
      %34 = arith.addf %31, %33 : vector<1x256xf32>
      %c0_15 = arith.constant 0 : index
      %c0_16 = arith.constant 0 : index
      %35 = vector.load %arg11[%c0_15, %c0_16] : memref<8x256xf32, #tpu.memory_space<vmem>>, vector<1x256xf32>
      tpu.vector_store %arg11[%c0_15, %c0_16], %34 {strides = array<i32>} : memref<8x256xf32, #tpu.memory_space<vmem>>, vector<1x256xf32>,
      %c1 = arith.constant 1 : index
      %c0_17 = arith.constant 0 : index
      %36 = vector.load %arg11[%c1, %c0_17] : memref<8x256xf32, #tpu.memory_space<vmem>>, vector<1x256xf32>
      %37 = arith.mulf %20, %20 : vector<32x256xf32>
      %cst_18 = arith.constant dense<0.000000e+00> : vector<256xf32>
      %38 = vector.multi_reduction <add>, %37, %cst_18 [0] : vector<32x256xf32> to vector<256xf32>
      %39 = vector.shape_cast %38 : vector<256xf32> to vector<1x256xf32>
      %40 = arith.addf %36, %39 : vector<1x256xf32>
      %c1_19 = arith.constant 1 : index
      %c0_20 = arith.constant 0 : index
      %41 = vector.load %arg11[%c1_19, %c0_20] : memref<8x256xf32, #tpu.memory_space<vmem>>, vector<1x256xf32>
      tpu.vector_store %arg11[%c1_19, %c0_20], %40 {strides = array<i32>} : memref<8x256xf32, #tpu.memory_space<vmem>>, vector<1x256xf32>,
    } else {
    }
    %c1_i32 = arith.constant 1 : i32
    %5 = arith.cmpi eq, %arg0, %c1_i32 : i32
    %6 = arith.extui %5 : i1 to i32
    %c0_i32_1 = arith.constant 0 : i32
    %7 = arith.cmpi ne, %6, %c0_i32_1 : i32
    scf.if %7 {
      %c0_i32_4 = arith.constant 0 : i32
      %14 = arith.cmpi eq, %arg1, %c0_i32_4 : i32
      %15 = arith.extui %14 : i1 to i32
      %c0_i32_5 = arith.constant 0 : i32
      %16 = arith.cmpi ne, %15, %c0_i32_5 : i32
      scf.if %16 {
        %c0_41 = arith.constant 0 : index
        %c0_42 = arith.constant 0 : index
        %103 = vector.load %arg11[%c0_41, %c0_42] : memref<8x256xf32, #tpu.memory_space<vmem>>, vector<1x256xf32>
        %c16_i32_43 = arith.constant 16 : i32
        %104 = tpu.dynamic_rotate %103 by %c16_i32_43 dim 1 : vector<1x256xf32>, i32 -> vector<1x256xf32>
        %105 = arith.addf %103, %104 : vector<1x256xf32>
        %c32_i32_44 = arith.constant 32 : i32
        %106 = tpu.dynamic_rotate %105 by %c32_i32_44 dim 1 : vector<1x256xf32>, i32 -> vector<1x256xf32>
        %107 = arith.addf %105, %106 : vector<1x256xf32>
        %c64_i32 = arith.constant 64 : i32
        %108 = tpu.dynamic_rotate %107 by %c64_i32 dim 1 : vector<1x256xf32>, i32 -> vector<1x256xf32>
        %109 = arith.addf %107, %108 : vector<1x256xf32>
        %c128_i32 = arith.constant 128 : i32
        %110 = tpu.dynamic_rotate %109 by %c128_i32 dim 1 : vector<1x256xf32>, i32 -> vector<1x256xf32>
        %111 = arith.addf %109, %110 : vector<1x256xf32>
        %c1_45 = arith.constant 1 : index
        %c0_46 = arith.constant 0 : index
        %112 = vector.load %arg11[%c1_45, %c0_46] : memref<8x256xf32, #tpu.memory_space<vmem>>, vector<1x256xf32>
        %c16_i32_47 = arith.constant 16 : i32
        %113 = tpu.dynamic_rotate %112 by %c16_i32_47 dim 1 : vector<1x256xf32>, i32 -> vector<1x256xf32>
        %114 = arith.addf %112, %113 : vector<1x256xf32>
        %c32_i32_48 = arith.constant 32 : i32
        %115 = tpu.dynamic_rotate %114 by %c32_i32_48 dim 1 : vector<1x256xf32>, i32 -> vector<1x256xf32>
        %116 = arith.addf %114, %115 : vector<1x256xf32>
        %c64_i32_49 = arith.constant 64 : i32
        %117 = tpu.dynamic_rotate %116 by %c64_i32_49 dim 1 : vector<1x256xf32>, i32 -> vector<1x256xf32>
        %118 = arith.addf %116, %117 : vector<1x256xf32>
        %c128_i32_50 = arith.constant 128 : i32
        %119 = tpu.dynamic_rotate %118 by %c128_i32_50 dim 1 : vector<1x256xf32>, i32 -> vector<1x256xf32>
        %120 = arith.addf %118, %119 : vector<1x256xf32>
        %cst_51 = arith.constant 0.001953125 : f32
        %121 = vector.broadcast %cst_51 : f32 to vector<1x256xf32>
        %122 = arith.mulf %111, %121 : vector<1x256xf32>
        %cst_52 = arith.constant 0.001953125 : f32
        %123 = vector.broadcast %cst_52 : f32 to vector<1x256xf32>
        %124 = arith.mulf %120, %123 : vector<1x256xf32>
        %125 = arith.mulf %122, %122 : vector<1x256xf32>
        %126 = arith.subf %124, %125 : vector<1x256xf32>
        %cst_53 = arith.constant 0.000000e+00 : f32
        %127 = vector.broadcast %cst_53 : f32 to vector<1x256xf32>
        %128 = arith.maximumf %126, %127 : vector<1x256xf32>
        %c0_54 = arith.constant 0 : index
        %c0_55 = arith.constant 0 : index
        %129 = vector.load %arg6[%c0_54, %c0_55] : memref<8x256xf32, #tpu.memory_space<vmem>>, vector<1x256xf32>
        %c1_56 = arith.constant 1 : index
        %c0_57 = arith.constant 0 : index
        %130 = vector.load %arg6[%c1_56, %c0_57] : memref<8x256xf32, #tpu.memory_space<vmem>>, vector<1x256xf32>
        %cst_58 = arith.constant 9.99999974E-6 : f32
        %131 = vector.broadcast %cst_58 : f32 to vector<1x256xf32>
        %132 = arith.addf %128, %131 : vector<1x256xf32>
        %133 = math.rsqrt %132 : vector<1x256xf32>
        %134 = arith.mulf %129, %133 : vector<1x256xf32>
        %c0_59 = arith.constant 0 : index
        %c0_60 = arith.constant 0 : index
        %135 = vector.load %arg12[%c0_59, %c0_60] : memref<8x256xf32, #tpu.memory_space<vmem>>, vector<1x256xf32>
        tpu.vector_store %arg12[%c0_59, %c0_60], %134 {strides = array<i32>} : memref<8x256xf32, #tpu.memory_space<vmem>>, vector<1x256xf32>,
        %136 = arith.mulf %122, %134 : vector<1x256xf32>
        %137 = arith.subf %130, %136 : vector<1x256xf32>
        %c1_61 = arith.constant 1 : index
        %c0_62 = arith.constant 0 : index
        %138 = vector.load %arg12[%c1_61, %c0_62] : memref<8x256xf32, #tpu.memory_space<vmem>>, vector<1x256xf32>
        tpu.vector_store %arg12[%c1_61, %c0_62], %137 {strides = array<i32>} : memref<8x256xf32, #tpu.memory_space<vmem>>, vector<1x256xf32>,
      } else {
      }
      %c0 = arith.constant 0 : index
      %c0_6 = arith.constant 0 : index
      %17 = vector.load %arg12[%c0, %c0_6] : memref<8x256xf32, #tpu.memory_space<vmem>>, vector<1x256xf32>
      %c1 = arith.constant 1 : index
      %c0_7 = arith.constant 0 : index
      %18 = vector.load %arg12[%c1, %c0_7] : memref<8x256xf32, #tpu.memory_space<vmem>>, vector<1x256xf32>
      %19 = arith.index_cast %1 : i32 to index
      %c0_8 = arith.constant 0 : index
      %20 = vector.load %arg8[%19, %c0_8] : memref<48x256xf32, #tpu.memory_space<vmem>>, vector<48x256xf32>
      %21 = tpu.iota {dimensions = array<i32: 0>} : vector<32x1xi32>
      %22 = vector.broadcast %1 : i32 to vector<32x1xi32>
      %23 = arith.addi %22, %21 : vector<32x1xi32>
      %c16_i32 = arith.constant 16 : i32
      %c0_i32_9 = arith.constant 0 : i32
      %24 = arith.cmpi eq, %c16_i32, %c0_i32_9 : i32
      %c1_i32_10 = arith.constant 1 : i32
      %25 = arith.select %24, %c1_i32_10, %c16_i32 : i32
      %26 = vector.broadcast %25 : i32 to vector<32x1xi32>
      %27 = arith.remsi %23, %26 : vector<32x1xi32>
      %c0_i32_11 = arith.constant 0 : i32
      %28 = vector.broadcast %c0_i32_11 : i32 to vector<32x1xi32>
      %29 = arith.cmpi ne, %27, %28 : vector<32x1xi32>
      %c0_i32_12 = arith.constant 0 : i32
      %30 = vector.broadcast %c0_i32_12 : i32 to vector<32x1xi32>
      %31 = arith.cmpi slt, %27, %30 : vector<32x1xi32>
      %c0_i32_13 = arith.constant 0 : i32
      %32 = arith.cmpi slt, %25, %c0_i32_13 : i32
      %33 = vector.broadcast %32 : i1 to vector<32x1xi1>
      %34 = vector.broadcast %33 : vector<32x1xi1> to vector<32x1xi1>
      %35 = arith.xori %31, %34 : vector<32x1xi1>
      %36 = arith.andi %35, %29 : vector<32x1xi1>
      %37 = vector.broadcast %25 : i32 to vector<32x1xi32>
      %38 = arith.addi %27, %37 : vector<32x1xi32>
      %39 = arith.select %36, %38, %27 : vector<32x1xi1>, vector<32x1xi32>
      %cst = arith.constant 0.000000e+00 : f32
      %40 = vector.broadcast %cst : f32 to vector<32x256xf32>
      %41 = vector.extract_strided_slice %20 {offsets = [7, 0], sizes = [32, 256], strides = [1, 1]} : vector<48x256xf32> to vector<32x256xf32>
      %42 = vector.broadcast %17 : vector<1x256xf32> to vector<32x256xf32>
      %43 = arith.mulf %41, %42 : vector<32x256xf32>
      %44 = vector.broadcast %18 : vector<1x256xf32> to vector<32x256xf32>
      %45 = arith.addf %43, %44 : vector<32x256xf32>
      %cst_14 = arith.constant 0.000000e+00 : f32
      %46 = vector.broadcast %cst_14 : f32 to vector<32x256xf32>
      %47 = arith.maximumf %45, %46 : vector<32x256xf32>
      %c0_i32_15 = arith.constant 0 : i32
      %48 = vector.broadcast %c0_i32_15 : i32 to vector<32x1xi32>
      %49 = arith.cmpi sgt, %39, %48 : vector<32x1xi32>
      %cst_16 = arith.constant 0.000000e+00 : f32
      %50 = vector.shape_cast %49 : vector<32x1xi1> to vector<32x1xi1>
      %51 = vector.broadcast %50 : vector<32x1xi1> to vector<32x256xi1>
      %52 = vector.broadcast %cst_16 : f32 to vector<32x256xf32>
      %53 = arith.select %51, %47, %52 : vector<32x256xi1>, vector<32x256xf32>
      %54 = arith.truncf %53 : vector<32x256xf32> to vector<32x256xbf16>
      %c0_17 = arith.constant 0 : index
      %c0_18 = arith.constant 0 : index
      %c0_19 = arith.constant 0 : index
      %55 = vector.load %arg4[%c0_17, %c0_18, %c0_19] : memref<3x256x256xbf16, #tpu.memory_space<vmem>>, vector<1x256x256xbf16>
      %56 = vector.shape_cast %55 : vector<1x256x256xbf16> to vector<256x256xbf16>
      %cst_20 = arith.constant dense<0.000000e+00> : vector<32x256xf32>
      %57 = tpu.matmul %54, %56, %cst_20 {dimension_numbers = #tpu.dot_dimension_numbers<[1], [0], [0], [1], [0, 0, 1, 1], [], []>} : vector<32x256xbf16>, vector<256x256xbf16>, vector<32x256xf32> -> vector<32x256xf32>
      %58 = arith.addf %40, %57 : vector<32x256xf32>
      %59 = vector.extract_strided_slice %20 {offsets = [8, 0], sizes = [32, 256], strides = [1, 1]} : vector<48x256xf32> to vector<32x256xf32>
      %60 = vector.broadcast %17 : vector<1x256xf32> to vector<32x256xf32>
      %61 = arith.mulf %59, %60 : vector<32x256xf32>
      %62 = vector.broadcast %18 : vector<1x256xf32> to vector<32x256xf32>
      %63 = arith.addf %61, %62 : vector<32x256xf32>
      %cst_21 = arith.constant 0.000000e+00 : f32
      %64 = vector.broadcast %cst_21 : f32 to vector<32x256xf32>
      %65 = arith.maximumf %63, %64 : vector<32x256xf32>
      %66 = arith.truncf %65 : vector<32x256xf32> to vector<32x256xbf16>
      %c1_22 = arith.constant 1 : index
      %c0_23 = arith.constant 0 : index
      %c0_24 = arith.constant 0 : index
      %67 = vector.load %arg4[%c1_22, %c0_23, %c0_24] : memref<3x256x256xbf16, #tpu.memory_space<vmem>>, vector<1x256x256xbf16>
      %68 = vector.shape_cast %67 : vector<1x256x256xbf16> to vector<256x256xbf16>
      %cst_25 = arith.constant dense<0.000000e+00> : vector<32x256xf32>
      %69 = tpu.matmul %66, %68, %cst_25 {dimension_numbers = #tpu.dot_dimension_numbers<[1], [0], [0], [1], [0, 0, 1, 1], [], []>} : vector<32x256xbf16>, vector<256x256xbf16>, vector<32x256xf32> -> vector<32x256xf32>
      %70 = arith.addf %58, %69 : vector<32x256xf32>
      %71 = vector.extract_strided_slice %20 {offsets = [9, 0], sizes = [32, 256], strides = [1, 1]} : vector<48x256xf32> to vector<32x256xf32>
      %72 = vector.broadcast %17 : vector<1x256xf32> to vector<32x256xf32>
      %73 = arith.mulf %71, %72 : vector<32x256xf32>
      %74 = vector.broadcast %18 : vector<1x256xf32> to vector<32x256xf32>
      %75 = arith.addf %73, %74 : vector<32x256xf32>
      %cst_26 = arith.constant 0.000000e+00 : f32
      %76 = vector.broadcast %cst_26 : f32 to vector<32x256xf32>
      %77 = arith.maximumf %75, %76 : vector<32x256xf32>
      %c15_i32 = arith.constant 15 : i32
      %78 = vector.broadcast %c15_i32 : i32 to vector<32x1xi32>
      %79 = arith.cmpi slt, %39, %78 : vector<32x1xi32>
      %cst_27 = arith.constant 0.000000e+00 : f32
      %80 = vector.shape_cast %79 : vector<32x1xi1> to vector<32x1xi1>
      %81 = vector.broadcast %80 : vector<32x1xi1> to vector<32x256xi1>
      %82 = vector.broadcast %cst_27 : f32 to vector<32x256xf32>
      %83 = arith.select %81, %77, %82 : vector<32x256xi1>, vector<32x256xf32>
      %84 = arith.truncf %83 : vector<32x256xf32> to vector<32x256xbf16>
      %c2 = arith.constant 2 : index
      %c0_28 = arith.constant 0 : index
      %c0_29 = arith.constant 0 : index
      %85 = vector.load %arg4[%c2, %c0_28, %c0_29] : memref<3x256x256xbf16, #tpu.memory_space<vmem>>, vector<1x256x256xbf16>
      %86 = vector.shape_cast %85 : vector<1x256x256xbf16> to vector<256x256xbf16>
      %cst_30 = arith.constant dense<0.000000e+00> : vector<32x256xf32>
      %87 = tpu.matmul %84, %86, %cst_30 {dimension_numbers = #tpu.dot_dimension_numbers<[1], [0], [0], [1], [0, 0, 1, 1], [], []>} : vector<32x256xbf16>, vector<256x256xbf16>, vector<32x256xf32> -> vector<32x256xf32>
      %88 = arith.addf %70, %87 : vector<32x256xf32>
      %89 = arith.truncf %88 : vector<32x256xf32> to vector<32x256xbf16>
      %90 = arith.index_cast %1 : i32 to index
      %c0_31 = arith.constant 0 : index
      %91 = vector.load %arg10[%90, %c0_31] : memref<32x256xbf16, #tpu.memory_space<vmem>>, vector<32x256xbf16>
      tpu.vector_store %arg10[%90, %c0_31], %89 {strides = array<i32>} : memref<32x256xbf16, #tpu.memory_space<vmem>>, vector<32x256xbf16>,
      %c2_32 = arith.constant 2 : index
      %c0_33 = arith.constant 0 : index
      %92 = vector.load %arg11[%c2_32, %c0_33] : memref<8x256xf32, #tpu.memory_space<vmem>>, vector<1x256xf32>
      %cst_34 = arith.constant dense<0.000000e+00> : vector<256xf32>
      %93 = vector.multi_reduction <add>, %88, %cst_34 [0] : vector<32x256xf32> to vector<256xf32>
      %94 = vector.shape_cast %93 : vector<256xf32> to vector<1x256xf32>
      %95 = arith.addf %92, %94 : vector<1x256xf32>
      %c2_35 = arith.constant 2 : index
      %c0_36 = arith.constant 0 : index
      %96 = vector.load %arg11[%c2_35, %c0_36] : memref<8x256xf32, #tpu.memory_space<vmem>>, vector<1x256xf32>
      tpu.vector_store %arg11[%c2_35, %c0_36], %95 {strides = array<i32>} : memref<8x256xf32, #tpu.memory_space<vmem>>, vector<1x256xf32>,
      %c3 = arith.constant 3 : index
      %c0_37 = arith.constant 0 : index
      %97 = vector.load %arg11[%c3, %c0_37] : memref<8x256xf32, #tpu.memory_space<vmem>>, vector<1x256xf32>
      %98 = arith.mulf %88, %88 : vector<32x256xf32>
      %cst_38 = arith.constant dense<0.000000e+00> : vector<256xf32>
      %99 = vector.multi_reduction <add>, %98, %cst_38 [0] : vector<32x256xf32> to vector<256xf32>
      %100 = vector.shape_cast %99 : vector<256xf32> to vector<1x256xf32>
      %101 = arith.addf %97, %100 : vector<1x256xf32>
      %c3_39 = arith.constant 3 : index
      %c0_40 = arith.constant 0 : index
      %102 = vector.load %arg11[%c3_39, %c0_40] : memref<8x256xf32, #tpu.memory_space<vmem>>, vector<1x256xf32>
      tpu.vector_store %arg11[%c3_39, %c0_40], %101 {strides = array<i32>} : memref<8x256xf32, #tpu.memory_space<vmem>>, vector<1x256xf32>,
    } else {
    }
    %c2_i32 = arith.constant 2 : i32
    %8 = arith.cmpi eq, %arg0, %c2_i32 : i32
    %9 = arith.extui %8 : i1 to i32
    %c0_i32_2 = arith.constant 0 : i32
    %10 = arith.cmpi ne, %9, %c0_i32_2 : i32
    scf.if %10 {
      %c0_i32_4 = arith.constant 0 : i32
      %14 = arith.cmpi eq, %arg1, %c0_i32_4 : i32
      %15 = arith.extui %14 : i1 to i32
      %c0_i32_5 = arith.constant 0 : i32
      %16 = arith.cmpi ne, %15, %c0_i32_5 : i32
      scf.if %16 {
        %c2_20 = arith.constant 2 : index
        %c0_21 = arith.constant 0 : index
        %45 = vector.load %arg11[%c2_20, %c0_21] : memref<8x256xf32, #tpu.memory_space<vmem>>, vector<1x256xf32>
        %c16_i32 = arith.constant 16 : i32
        %46 = tpu.dynamic_rotate %45 by %c16_i32 dim 1 : vector<1x256xf32>, i32 -> vector<1x256xf32>
        %47 = arith.addf %45, %46 : vector<1x256xf32>
        %c32_i32_22 = arith.constant 32 : i32
        %48 = tpu.dynamic_rotate %47 by %c32_i32_22 dim 1 : vector<1x256xf32>, i32 -> vector<1x256xf32>
        %49 = arith.addf %47, %48 : vector<1x256xf32>
        %c64_i32 = arith.constant 64 : i32
        %50 = tpu.dynamic_rotate %49 by %c64_i32 dim 1 : vector<1x256xf32>, i32 -> vector<1x256xf32>
        %51 = arith.addf %49, %50 : vector<1x256xf32>
        %c128_i32 = arith.constant 128 : i32
        %52 = tpu.dynamic_rotate %51 by %c128_i32 dim 1 : vector<1x256xf32>, i32 -> vector<1x256xf32>
        %53 = arith.addf %51, %52 : vector<1x256xf32>
        %c3_23 = arith.constant 3 : index
        %c0_24 = arith.constant 0 : index
        %54 = vector.load %arg11[%c3_23, %c0_24] : memref<8x256xf32, #tpu.memory_space<vmem>>, vector<1x256xf32>
        %c16_i32_25 = arith.constant 16 : i32
        %55 = tpu.dynamic_rotate %54 by %c16_i32_25 dim 1 : vector<1x256xf32>, i32 -> vector<1x256xf32>
        %56 = arith.addf %54, %55 : vector<1x256xf32>
        %c32_i32_26 = arith.constant 32 : i32
        %57 = tpu.dynamic_rotate %56 by %c32_i32_26 dim 1 : vector<1x256xf32>, i32 -> vector<1x256xf32>
        %58 = arith.addf %56, %57 : vector<1x256xf32>
        %c64_i32_27 = arith.constant 64 : i32
        %59 = tpu.dynamic_rotate %58 by %c64_i32_27 dim 1 : vector<1x256xf32>, i32 -> vector<1x256xf32>
        %60 = arith.addf %58, %59 : vector<1x256xf32>
        %c128_i32_28 = arith.constant 128 : i32
        %61 = tpu.dynamic_rotate %60 by %c128_i32_28 dim 1 : vector<1x256xf32>, i32 -> vector<1x256xf32>
        %62 = arith.addf %60, %61 : vector<1x256xf32>
        %cst_29 = arith.constant 0.001953125 : f32
        %63 = vector.broadcast %cst_29 : f32 to vector<1x256xf32>
        %64 = arith.mulf %53, %63 : vector<1x256xf32>
        %cst_30 = arith.constant 0.001953125 : f32
        %65 = vector.broadcast %cst_30 : f32 to vector<1x256xf32>
        %66 = arith.mulf %62, %65 : vector<1x256xf32>
        %67 = arith.mulf %64, %64 : vector<1x256xf32>
        %68 = arith.subf %66, %67 : vector<1x256xf32>
        %cst_31 = arith.constant 0.000000e+00 : f32
        %69 = vector.broadcast %cst_31 : f32 to vector<1x256xf32>
        %70 = arith.maximumf %68, %69 : vector<1x256xf32>
        %c2_32 = arith.constant 2 : index
        %c0_33 = arith.constant 0 : index
        %71 = vector.load %arg6[%c2_32, %c0_33] : memref<8x256xf32, #tpu.memory_space<vmem>>, vector<1x256xf32>
        %c3_34 = arith.constant 3 : index
        %c0_35 = arith.constant 0 : index
        %72 = vector.load %arg6[%c3_34, %c0_35] : memref<8x256xf32, #tpu.memory_space<vmem>>, vector<1x256xf32>
        %cst_36 = arith.constant 9.99999974E-6 : f32
        %73 = vector.broadcast %cst_36 : f32 to vector<1x256xf32>
        %74 = arith.addf %70, %73 : vector<1x256xf32>
        %75 = math.rsqrt %74 : vector<1x256xf32>
        %76 = arith.mulf %71, %75 : vector<1x256xf32>
        %c2_37 = arith.constant 2 : index
        %c0_38 = arith.constant 0 : index
        %77 = vector.load %arg12[%c2_37, %c0_38] : memref<8x256xf32, #tpu.memory_space<vmem>>, vector<1x256xf32>
        tpu.vector_store %arg12[%c2_37, %c0_38], %76 {strides = array<i32>} : memref<8x256xf32, #tpu.memory_space<vmem>>, vector<1x256xf32>,
        %78 = arith.mulf %64, %76 : vector<1x256xf32>
        %79 = arith.subf %72, %78 : vector<1x256xf32>
        %c3_39 = arith.constant 3 : index
        %c0_40 = arith.constant 0 : index
        %80 = vector.load %arg12[%c3_39, %c0_40] : memref<8x256xf32, #tpu.memory_space<vmem>>, vector<1x256xf32>
        tpu.vector_store %arg12[%c3_39, %c0_40], %79 {strides = array<i32>} : memref<8x256xf32, #tpu.memory_space<vmem>>, vector<1x256xf32>,
      } else {
      }
      %c2 = arith.constant 2 : index
      %c0 = arith.constant 0 : index
      %17 = vector.load %arg12[%c2, %c0] : memref<8x256xf32, #tpu.memory_space<vmem>>, vector<1x256xf32>
      %c3 = arith.constant 3 : index
      %c0_6 = arith.constant 0 : index
      %18 = vector.load %arg12[%c3, %c0_6] : memref<8x256xf32, #tpu.memory_space<vmem>>, vector<1x256xf32>
      %19 = arith.index_cast %1 : i32 to index
      %c0_7 = arith.constant 0 : index
      %20 = vector.load %arg10[%19, %c0_7] : memref<32x256xbf16, #tpu.memory_space<vmem>>, vector<32x256xbf16>
      %21 = arith.extf %20 : vector<32x256xbf16> to vector<32x256xf32>
      %22 = vector.broadcast %17 : vector<1x256xf32> to vector<32x256xf32>
      %23 = arith.mulf %21, %22 : vector<32x256xf32>
      %24 = vector.broadcast %18 : vector<1x256xf32> to vector<32x256xf32>
      %25 = arith.addf %23, %24 : vector<32x256xf32>
      %cst = arith.constant 0.000000e+00 : f32
      %26 = vector.broadcast %cst : f32 to vector<32x256xf32>
      %27 = arith.maximumf %25, %26 : vector<32x256xf32>
      %28 = arith.truncf %27 : vector<32x256xf32> to vector<32x256xbf16>
      %c0_8 = arith.constant 0 : index
      %c0_9 = arith.constant 0 : index
      %29 = vector.load %arg5[%c0_8, %c0_9] : memref<256x256xbf16, #tpu.memory_space<vmem>>, vector<256x256xbf16>
      %cst_10 = arith.constant dense<0.000000e+00> : vector<32x256xf32>
      %30 = tpu.matmul %28, %29, %cst_10 {dimension_numbers = #tpu.dot_dimension_numbers<[1], [0], [0], [1], [0, 0, 1, 1], [], []>} : vector<32x256xbf16>, vector<256x256xbf16>, vector<32x256xf32> -> vector<32x256xf32>
      %31 = arith.truncf %30 : vector<32x256xf32> to vector<32x256xbf16>
      %32 = arith.index_cast %1 : i32 to index
      %c0_11 = arith.constant 0 : index
      %33 = vector.load %arg10[%32, %c0_11] : memref<32x256xbf16, #tpu.memory_space<vmem>>, vector<32x256xbf16>
      tpu.vector_store %arg10[%32, %c0_11], %31 {strides = array<i32>} : memref<32x256xbf16, #tpu.memory_space<vmem>>, vector<32x256xbf16>,
      %c4 = arith.constant 4 : index
      %c0_12 = arith.constant 0 : index
      %34 = vector.load %arg11[%c4, %c0_12] : memref<8x256xf32, #tpu.memory_space<vmem>>, vector<1x256xf32>
      %cst_13 = arith.constant dense<0.000000e+00> : vector<256xf32>
      %35 = vector.multi_reduction <add>, %30, %cst_13 [0] : vector<32x256xf32> to vector<256xf32>
      %36 = vector.shape_cast %35 : vector<256xf32> to vector<1x256xf32>
      %37 = arith.addf %34, %36 : vector<1x256xf32>
      %c4_14 = arith.constant 4 : index
      %c0_15 = arith.constant 0 : index
      %38 = vector.load %arg11[%c4_14, %c0_15] : memref<8x256xf32, #tpu.memory_space<vmem>>, vector<1x256xf32>
      tpu.vector_store %arg11[%c4_14, %c0_15], %37 {strides = array<i32>} : memref<8x256xf32, #tpu.memory_space<vmem>>, vector<1x256xf32>,
      %c5 = arith.constant 5 : index
      %c0_16 = arith.constant 0 : index
      %39 = vector.load %arg11[%c5, %c0_16] : memref<8x256xf32, #tpu.memory_space<vmem>>, vector<1x256xf32>
      %40 = arith.mulf %30, %30 : vector<32x256xf32>
      %cst_17 = arith.constant dense<0.000000e+00> : vector<256xf32>
      %41 = vector.multi_reduction <add>, %40, %cst_17 [0] : vector<32x256xf32> to vector<256xf32>
      %42 = vector.shape_cast %41 : vector<256xf32> to vector<1x256xf32>
      %43 = arith.addf %39, %42 : vector<1x256xf32>
      %c5_18 = arith.constant 5 : index
      %c0_19 = arith.constant 0 : index
      %44 = vector.load %arg11[%c5_18, %c0_19] : memref<8x256xf32, #tpu.memory_space<vmem>>, vector<1x256xf32>
      tpu.vector_store %arg11[%c5_18, %c0_19], %43 {strides = array<i32>} : memref<8x256xf32, #tpu.memory_space<vmem>>, vector<1x256xf32>,
    } else {
    }
    %c3_i32 = arith.constant 3 : i32
    %11 = arith.cmpi eq, %arg0, %c3_i32 : i32
    %12 = arith.extui %11 : i1 to i32
    %c0_i32_3 = arith.constant 0 : i32
    %13 = arith.cmpi ne, %12, %c0_i32_3 : i32
    scf.if %13 {
      %c0_i32_4 = arith.constant 0 : i32
      %14 = arith.cmpi eq, %arg1, %c0_i32_4 : i32
      %15 = arith.extui %14 : i1 to i32
      %c0_i32_5 = arith.constant 0 : i32
      %16 = arith.cmpi ne, %15, %c0_i32_5 : i32
      scf.if %16 {
        %c4_11 = arith.constant 4 : index
        %c0_12 = arith.constant 0 : index
        %33 = vector.load %arg11[%c4_11, %c0_12] : memref<8x256xf32, #tpu.memory_space<vmem>>, vector<1x256xf32>
        %c16_i32 = arith.constant 16 : i32
        %34 = tpu.dynamic_rotate %33 by %c16_i32 dim 1 : vector<1x256xf32>, i32 -> vector<1x256xf32>
        %35 = arith.addf %33, %34 : vector<1x256xf32>
        %c32_i32_13 = arith.constant 32 : i32
        %36 = tpu.dynamic_rotate %35 by %c32_i32_13 dim 1 : vector<1x256xf32>, i32 -> vector<1x256xf32>
        %37 = arith.addf %35, %36 : vector<1x256xf32>
        %c64_i32 = arith.constant 64 : i32
        %38 = tpu.dynamic_rotate %37 by %c64_i32 dim 1 : vector<1x256xf32>, i32 -> vector<1x256xf32>
        %39 = arith.addf %37, %38 : vector<1x256xf32>
        %c128_i32 = arith.constant 128 : i32
        %40 = tpu.dynamic_rotate %39 by %c128_i32 dim 1 : vector<1x256xf32>, i32 -> vector<1x256xf32>
        %41 = arith.addf %39, %40 : vector<1x256xf32>
        %c5_14 = arith.constant 5 : index
        %c0_15 = arith.constant 0 : index
        %42 = vector.load %arg11[%c5_14, %c0_15] : memref<8x256xf32, #tpu.memory_space<vmem>>, vector<1x256xf32>
        %c16_i32_16 = arith.constant 16 : i32
        %43 = tpu.dynamic_rotate %42 by %c16_i32_16 dim 1 : vector<1x256xf32>, i32 -> vector<1x256xf32>
        %44 = arith.addf %42, %43 : vector<1x256xf32>
        %c32_i32_17 = arith.constant 32 : i32
        %45 = tpu.dynamic_rotate %44 by %c32_i32_17 dim 1 : vector<1x256xf32>, i32 -> vector<1x256xf32>
        %46 = arith.addf %44, %45 : vector<1x256xf32>
        %c64_i32_18 = arith.constant 64 : i32
        %47 = tpu.dynamic_rotate %46 by %c64_i32_18 dim 1 : vector<1x256xf32>, i32 -> vector<1x256xf32>
        %48 = arith.addf %46, %47 : vector<1x256xf32>
        %c128_i32_19 = arith.constant 128 : i32
        %49 = tpu.dynamic_rotate %48 by %c128_i32_19 dim 1 : vector<1x256xf32>, i32 -> vector<1x256xf32>
        %50 = arith.addf %48, %49 : vector<1x256xf32>
        %cst_20 = arith.constant 0.001953125 : f32
        %51 = vector.broadcast %cst_20 : f32 to vector<1x256xf32>
        %52 = arith.mulf %41, %51 : vector<1x256xf32>
        %cst_21 = arith.constant 0.001953125 : f32
        %53 = vector.broadcast %cst_21 : f32 to vector<1x256xf32>
        %54 = arith.mulf %50, %53 : vector<1x256xf32>
        %55 = arith.mulf %52, %52 : vector<1x256xf32>
        %56 = arith.subf %54, %55 : vector<1x256xf32>
        %cst_22 = arith.constant 0.000000e+00 : f32
        %57 = vector.broadcast %cst_22 : f32 to vector<1x256xf32>
        %58 = arith.maximumf %56, %57 : vector<1x256xf32>
        %c4_23 = arith.constant 4 : index
        %c0_24 = arith.constant 0 : index
        %59 = vector.load %arg6[%c4_23, %c0_24] : memref<8x256xf32, #tpu.memory_space<vmem>>, vector<1x256xf32>
        %c5_25 = arith.constant 5 : index
        %c0_26 = arith.constant 0 : index
        %60 = vector.load %arg6[%c5_25, %c0_26] : memref<8x256xf32, #tpu.memory_space<vmem>>, vector<1x256xf32>
        %cst_27 = arith.constant 9.99999974E-6 : f32
        %61 = vector.broadcast %cst_27 : f32 to vector<1x256xf32>
        %62 = arith.addf %58, %61 : vector<1x256xf32>
        %63 = math.rsqrt %62 : vector<1x256xf32>
        %64 = arith.mulf %59, %63 : vector<1x256xf32>
        %c4_28 = arith.constant 4 : index
        %c0_29 = arith.constant 0 : index
        %65 = vector.load %arg12[%c4_28, %c0_29] : memref<8x256xf32, #tpu.memory_space<vmem>>, vector<1x256xf32>
        tpu.vector_store %arg12[%c4_28, %c0_29], %64 {strides = array<i32>} : memref<8x256xf32, #tpu.memory_space<vmem>>, vector<1x256xf32>,
        %66 = arith.mulf %52, %64 : vector<1x256xf32>
        %67 = arith.subf %60, %66 : vector<1x256xf32>
        %c5_30 = arith.constant 5 : index
        %c0_31 = arith.constant 0 : index
        %68 = vector.load %arg12[%c5_30, %c0_31] : memref<8x256xf32, #tpu.memory_space<vmem>>, vector<1x256xf32>
        tpu.vector_store %arg12[%c5_30, %c0_31], %67 {strides = array<i32>} : memref<8x256xf32, #tpu.memory_space<vmem>>, vector<1x256xf32>,
      } else {
      }
      %c4 = arith.constant 4 : index
      %c0 = arith.constant 0 : index
      %17 = vector.load %arg12[%c4, %c0] : memref<8x256xf32, #tpu.memory_space<vmem>>, vector<1x256xf32>
      %c5 = arith.constant 5 : index
      %c0_6 = arith.constant 0 : index
      %18 = vector.load %arg12[%c5, %c0_6] : memref<8x256xf32, #tpu.memory_space<vmem>>, vector<1x256xf32>
      %19 = arith.index_cast %1 : i32 to index
      %c0_7 = arith.constant 0 : index
      %20 = vector.load %arg10[%19, %c0_7] : memref<32x256xbf16, #tpu.memory_space<vmem>>, vector<32x256xbf16>
      %21 = arith.extf %20 : vector<32x256xbf16> to vector<32x256xf32>
      %22 = vector.broadcast %17 : vector<1x256xf32> to vector<32x256xf32>
      %23 = arith.mulf %21, %22 : vector<32x256xf32>
      %24 = vector.broadcast %18 : vector<1x256xf32> to vector<32x256xf32>
      %25 = arith.addf %23, %24 : vector<32x256xf32>
      %cst = arith.constant 0.000000e+00 : f32
      %26 = vector.broadcast %cst : f32 to vector<32x256xf32>
      %27 = arith.maximumf %25, %26 : vector<32x256xf32>
      %28 = arith.index_cast %1 : i32 to index
      %c0_8 = arith.constant 0 : index
      %29 = vector.load %arg9[%28, %c0_8] : memref<32x256xbf16, #tpu.memory_space<vmem>>, vector<32x256xbf16>
      %30 = arith.extf %29 : vector<32x256xbf16> to vector<32x256xf32>
      %31 = arith.addf %27, %30 : vector<32x256xf32>
      %c0_9 = arith.constant 0 : index
      %c0_10 = arith.constant 0 : index
      %32 = vector.load %arg7[%c0_9, %c0_10] : memref<32x256xf32, #tpu.memory_space<vmem>>, vector<32x256xf32>
      tpu.vector_store %arg7[%c0_9, %c0_10], %31 {strides = array<i32>} : memref<32x256xf32, #tpu.memory_space<vmem>>, vector<32x256xf32>,
    } else {
    }
    return
  }
  func.func @transform_0(%arg0: i32, %arg1: i32) -> (i32, i32) {
    %c0_i32 = arith.constant 0 : i32
    %0 = arith.cmpi eq, %arg0, %c0_i32 : i32
    %c0_i32_0 = arith.constant 0 : i32
    %1 = arith.select %0, %arg1, %c0_i32_0 : i32
    %c0_i32_1 = arith.constant 0 : i32
    %c0_i32_2 = arith.constant 0 : i32
    return %1, %c0_i32_1 : i32, i32
  }
  func.func @transform_1(%arg0: i32, %arg1: i32) -> (i32, i32) {
    %c0_i32 = arith.constant 0 : i32
    %c0_i32_0 = arith.constant 0 : i32
    %c0_i32_1 = arith.constant 0 : i32
    return %c0_i32, %c0_i32_0 : i32, i32
  }
  func.func @transform_2(%arg0: i32, %arg1: i32) -> (i32, i32, i32) {
    %c0_i32 = arith.constant 0 : i32
    %c0_i32_0 = arith.constant 0 : i32
    %c0_i32_1 = arith.constant 0 : i32
    %c0_i32_2 = arith.constant 0 : i32
    return %c0_i32, %c0_i32_0, %c0_i32_1 : i32, i32, i32
  }
  func.func @transform_3(%arg0: i32, %arg1: i32) -> (i32, i32) {
    %c0_i32 = arith.constant 0 : i32
    %c0_i32_0 = arith.constant 0 : i32
    %c0_i32_1 = arith.constant 0 : i32
    return %c0_i32, %c0_i32_0 : i32, i32
  }
  func.func @transform_4(%arg0: i32, %arg1: i32) -> (i32, i32) {
    %c0_i32 = arith.constant 0 : i32
    %c0_i32_0 = arith.constant 0 : i32
    %c0_i32_1 = arith.constant 0 : i32
    return %c0_i32, %c0_i32_0 : i32, i32
  }
  func.func @transform_5(%arg0: i32, %arg1: i32) -> (i32, i32) {
    %c3_i32 = arith.constant 3 : i32
    %0 = arith.cmpi eq, %arg0, %c3_i32 : i32
    %c0_i32 = arith.constant 0 : i32
    %1 = arith.select %0, %arg1, %c0_i32 : i32
    %c0_i32_0 = arith.constant 0 : i32
    %c0_i32_1 = arith.constant 0 : i32
    return %1, %c0_i32_0 : i32, i32
  }
}

</mosaic_0001>

<bundles_post_ra>
// kernel: res_block_forward.1
= control target key start
LH: loop header
LB: loop body
LE: loop exit
PB: predicated region body
PF: predicated region fallthrough
CT: control target
= control target key end

     0   :  { %s3939_s18 = smov 0   ;;  %s3941_s19 = smov 0   ;;  %s5286_s0 = inlined_call_operand.vmem [shape: bf16[32,128], index: 0, kind: input, shape index: {}]   ;;  %s5287_s1 = inlined_call_operand.vmem [shape: bf16[128,512], index: 1, kind: input, shape index: {}]   ;;  %s5288_s2 = inlined_call_operand.vmem [shape: bf16[3,256,256], index: 2, kind: input, shape index: {}]   ;;  %s5289_s3 = inlined_call_operand.vmem [shape: bf16[256,256], index: 3, kind: input, shape index: {}]   ;;  %s5290_s4 = inlined_call_operand.vmem [shape: f32[8,256], index: 4, kind: input, shape index: {}]   ;;  %s5291_s5 = inlined_call_operand.vmem [shape: f32[32,256], index: 5, kind: output, shape index: {}]  }
   0x1   :  { %s3943_s20 = smov 0  }
   0x2 LB: > { %s27_s21 = sadd.s32 1, %s3892_s19  ;;  %p2888_p0 = scmp.ge.s32.totalorder %s3896_s20, 1  ;;  %s3896_s20 = sphi %s3943_s20, %s15_s20   ;;  %s3892_s19 = sphi %s3941_s19, %s5303_s19   ;;  %s3888_s18 = sphi %s3939_s18, %s5302_s18  }
   0x3   : > { %p29_p1 = scmp.ge.s32.totalorder %s27_s21, 4  ;;  %p212_p2 = scmp.lt.s32.totalorder %s3896_s20, 5 }
   0x5   : > { %s5305_s21 = smov (%p29_p1, %s27_s21), 0  ;;  %p213_p3 = pnand %p2888_p0, %p212_p2 }
   0x6   : > { %p2889_p4 = scmp.ne.s32.totalorder (!%p213_p3), %s3888_s18, 0 }
   0x7   : > { %216 = sbr.rel (%p213_p3) target bundleno = 1980 (0x7bc), region = 40 }
   0xc   : > { %270 = sbr.rel (%p2889_p4) target bundleno = 224 (0xe0), region = 44 }
  0x11   : > { %v3012_v0 = vld [vmem:[%s5287_s1 + $0xe0] sm:$0xf]  ;;  %v3703_v1 = vld [vmem:[%s5287_s1 + $0xec] sm:$0xf0]  ;;  %v3701_v2 = vld [vmem:[%s5287_s1 + $0xe4] sm:$0xf] }
  0x12   : > { %v3013_v3 = vor.u32 %v3703_v1, %v3012_v0  ;;  %v3014_v4 = vld [vmem:[%s5287_s1 + $0xf0] sm:$0xf0]  ;;  %v3020_v5 = vld [vmem:[%s5287_s1 + $0xe8] sm:$0xf]  ;;  %v3704_v6 = vld [vmem:[%s5287_s1 + $0xf4] sm:$0xf0] }
  0x13   : > { %v3017_v7 = vor.u32 %v3701_v2, %v3014_v4  ;;  %v3021_v8 = vor.u32 %v3704_v6, %v3020_v5  ;;  %v3702_v9 = vld [vmem:[%s5287_s1 + $0xec] sm:$0xf]  ;;  %v3022_v10 = vld [vmem:[%s5287_s1 + $0xf8] sm:$0xf0]  ;;  %v2996_v11 = vld [vmem:[%s5287_s1 + $0xc0] sm:$0xf] }
  0x14   : > { %489 = vmatpush.bf16.msra.mxu0 %v3013_v3  ;;  %v3025_v12 = vor.u32 %v3702_v9, %v3022_v10  ;;  %v3699_v13 = vld [vmem:[%s5287_s1 + $0xcc] sm:$0xf0]  ;;  %v3697_v14 = vld [vmem:[%s5287_s1 + $0xc4] sm:$0xf]  ;;  %v2998_v15 = vld [vmem:[%s5287_s1 + $0xd0] sm:$0xf0] }
  0x15   : > { %508 = vmatpush.bf16.msra.mxu1 %v3017_v7  ;;  %527 = vmatpush.bf16.msra.mxu2 %v3021_v8  ;;  %v2997_v16 = vor.u32 %v3699_v13, %v2996_v11  ;;  %v3001_v17 = vor.u32 %v3697_v14, %v2998_v15  ;;  %v3004_v18 = vld [vmem:[%s5287_s1 + $0xc8] sm:$0xf]  ;;  %v3700_v19 = vld [vmem:[%s5287_s1 + $0xd4] sm:$0xf0]  ;;  %v3698_v20 = vld [vmem:[%s5287_s1 + $0xcc] sm:$0xf] }
  0x16   : > { %546 = vmatpush.bf16.msra.mxu3 %v3025_v12  ;;  %v3005_v21 = vor.u32 %v3700_v19, %v3004_v18  ;;  %v3006_v22 = vld [vmem:[%s5287_s1 + $0xd8] sm:$0xf0]  ;;  %v2980_v23 = vld [vmem:[%s5287_s1 + $0xa0] sm:$0xf]  ;;  %v3695_v24 = vld [vmem:[%s5287_s1 + $0xac] sm:$0xf0] }
  0x17   : > { %v3009_v25 = vor.u32 %v3698_v20, %v3006_v22  ;;  %v3693_v26 = vld [vmem:[%s5287_s1 + $0xa4] sm:$0xf]  ;;  %v2982_v27 = vld [vmem:[%s5287_s1 + $0xb0] sm:$0xf0]  ;;  %v2988_v28 = vld [vmem:[%s5287_s1 + $0xa8] sm:$0xf]  ;;  %v2981_v29 = vor.u32 %v3695_v24, %v2980_v23 }
  0x18   : > { %490 = vmatpush.bf16.msra.mxu0 %v2997_v16  ;;  %v3696_v30 = vld [vmem:[%s5287_s1 + $0xb4] sm:$0xf0]  ;;  %v3694_v31 = vld [vmem:[%s5287_s1 + $0xac] sm:$0xf]  ;;  %v2990_v32 = vld [vmem:[%s5287_s1 + $0xb8] sm:$0xf0]  ;;  %v2985_v33 = vor.u32 %v3693_v26, %v2982_v27 }
  0x19   : > { %509 = vmatpush.bf16.msra.mxu1 %v3001_v17  ;;  %528 = vmatpush.bf16.msra.mxu2 %v3005_v21  ;;  %v2989_v34 = vor.u32 %v3696_v30, %v2988_v28  ;;  %v2964_v35 = vld [vmem:[%s5287_s1 + $0x80] sm:$0xf]  ;;  %v3691_v36 = vld [vmem:[%s5287_s1 + $0x8c] sm:$0xf0]  ;;  %v3689_v37 = vld [vmem:[%s5287_s1 + $0x84] sm:$0xf]  ;;  %v2993_v38 = vor.u32 %v3694_v31, %v2990_v32 }
  0x1a   : > { %547 = vmatpush.bf16.msra.mxu3 %v3009_v25  ;;  %v2966_v39 = vld [vmem:[%s5287_s1 + $0x90] sm:$0xf0]  ;;  %v2972_v40 = vld [vmem:[%s5287_s1 + $0x88] sm:$0xf]  ;;  %v3692_v41 = vld [vmem:[%s5287_s1 + $0x94] sm:$0xf0]  ;;  %v2965_v44 = vor.u32 %v3691_v36, %v2964_v35 }
  0x1b   : > { %v3690_v42 = vld [vmem:[%s5287_s1 + $0x8c] sm:$0xf]  ;;  %v2974_v43 = vld [vmem:[%s5287_s1 + $0x98] sm:$0xf0]  ;;  %v2969_v45 = vor.u32 %v3689_v37, %v2966_v39  ;;  %v2973_v46 = vor.u32 %v3692_v41, %v2972_v40  ;;  %v2948_v47 = vld [vmem:[%s5287_s1 + $0x60] sm:$0xf] }
  0x1c   : > { %491 = vmatpush.bf16.msra.mxu0 %v2981_v29  ;;  %v3687_v48 = vld [vmem:[%s5287_s1 + $0x6c] sm:$0xf0]  ;;  %v3685_v49 = vld [vmem:[%s5287_s1 + $0x64] sm:$0xf]  ;;  %v2977_v50 = vor.u32 %v3690_v42, %v2974_v43  ;;  %v2950_v51 = vld [vmem:[%s5287_s1 + $0x70] sm:$0xf0] }
  0x1d   : > { %510 = vmatpush.bf16.msra.mxu1 %v2985_v33  ;;  %529 = vmatpush.bf16.msra.mxu2 %v2989_v34  ;;  %v2956_v52 = vld [vmem:[%s5287_s1 + $0x68] sm:$0xf]  ;;  %v3688_v53 = vld [vmem:[%s5287_s1 + $0x74] sm:$0xf0]  ;;  %v3686_v54 = vld [vmem:[%s5287_s1 + $0x6c] sm:$0xf]  ;;  %v2949_v56 = vor.u32 %v3687_v48, %v2948_v47  ;;  %v2953_v57 = vor.u32 %v3685_v49, %v2950_v51 }
  0x1e   : > { %548 = vmatpush.bf16.msra.mxu3 %v2993_v38  ;;  %v2958_v55 = vld [vmem:[%s5287_s1 + $0x78] sm:$0xf0]  ;;  %v2957_v58 = vor.u32 %v3688_v53, %v2956_v52  ;;  %v2932_v59 = vld [vmem:[%s5287_s1 + $0x40] sm:$0xf]  ;;  %v3683_v60 = vld [vmem:[%s5287_s1 + $0x4c] sm:$0xf0] }
  0x1f   : > { %v3681_v61 = vld [vmem:[%s5287_s1 + $0x44] sm:$0xf]  ;;  %v2961_v62 = vor.u32 %v3686_v54, %v2958_v55  ;;  %v2934_v63 = vld [vmem:[%s5287_s1 + $0x50] sm:$0xf0]  ;;  %v2940_v0 = vld [vmem:[%s5287_s1 + $0x48] sm:$0xf]  ;;  %v2933_v4 = vor.u32 %v3683_v60, %v2932_v59 }
  0x20   : > { %492 = vmatpush.bf16.msra.mxu0 %v2965_v44  ;;  %v3684_v1 = vld [vmem:[%s5287_s1 + $0x54] sm:$0xf0]  ;;  %v3682_v2 = vld [vmem:[%s5287_s1 + $0x4c] sm:$0xf]  ;;  %v2942_v3 = vld [vmem:[%s5287_s1 + $0x58] sm:$0xf0]  ;;  %v2937_v5 = vor.u32 %v3681_v61, %v2934_v63 }
  0x21   : > { %511 = vmatpush.bf16.msra.mxu1 %v2969_v45  ;;  %530 = vmatpush.bf16.msra.mxu2 %v2973_v46  ;;  %v2941_v6 = vor.u32 %v3684_v1, %v2940_v0  ;;  %v2916_v7 = vld [vmem:[%s5287_s1 + $0x20] sm:$0xf]  ;;  %v3679_v8 = vld [vmem:[%s5287_s1 + $0x2c] sm:$0xf0]  ;;  %v3677_v9 = vld [vmem:[%s5287_s1 + $0x24] sm:$0xf]  ;;  %v2945_v10 = vor.u32 %v3682_v2, %v2942_v3 }
  0x22   : > { %549 = vmatpush.bf16.msra.mxu3 %v2977_v50  ;;  %v2918_v11 = vld [vmem:[%s5287_s1 + $0x30] sm:$0xf0]  ;;  %v2924_v12 = vld [vmem:[%s5287_s1 + $0x28] sm:$0xf]  ;;  %v3680_v13 = vld [vmem:[%s5287_s1 + $0x34] sm:$0xf0]  ;;  %v2917_v16 = vor.u32 %v3679_v8, %v2916_v7 }
  0x23   : > { %v3678_v14 = vld [vmem:[%s5287_s1 + $0x2c] sm:$0xf]  ;;  %v2926_v15 = vld [vmem:[%s5287_s1 + $0x38] sm:$0xf0]  ;;  %v2921_v17 = vor.u32 %v3677_v9, %v2918_v11  ;;  %v2925_v18 = vor.u32 %v3680_v13, %v2924_v12  ;;  %v2900_v19 = vld [vmem:[%s5287_s1] sm:$0xf] }
  0x24   : > { %493 = vmatpush.bf16.msra.mxu0 %v2949_v56  ;;  %v3675_v20 = vld [vmem:[%s5287_s1 + $0xc] sm:$0xf0]  ;;  %v3673_v21 = vld [vmem:[%s5287_s1 + $0x4] sm:$0xf]  ;;  %v2929_v22 = vor.u32 %v3678_v14, %v2926_v15  ;;  %v2902_v23 = vld [vmem:[%s5287_s1 + $0x10] sm:$0xf0] }
  0x25   : > { %512 = vmatpush.bf16.msra.mxu1 %v2953_v57  ;;  %531 = vmatpush.bf16.msra.mxu2 %v2957_v58  ;;  %v2908_v24 = vld [vmem:[%s5287_s1 + $0x8] sm:$0xf]  ;;  %v3676_v25 = vld [vmem:[%s5287_s1 + $0x14] sm:$0xf0]  ;;  %v3674_v26 = vld [vmem:[%s5287_s1 + $0xc] sm:$0xf]  ;;  %v2901_v28 = vor.u32 %v3675_v20, %v2900_v19  ;;  %v2905_v29 = vor.u32 %v3673_v21, %v2902_v23 }
  0x26   : > { %550 = vmatpush.bf16.msra.mxu3 %v2961_v62  ;;  %v2910_v27 = vld [vmem:[%s5287_s1 + $0x18] sm:$0xf0]  ;;  %v2909_v30 = vor.u32 %v3676_v25, %v2908_v24  ;;  %v3671_v32 = vld [vmem:[%s5286_s0] sm:$0xff]  ;;  %v3672_v33 = vld [vmem:[%s5286_s0 + $0x8] sm:$0xff]  ;;  %v3898_v37 = vmov 0.0   ;;  %vm629_vm0 = vcmask 1040384  }
  0x27   : > { %v2913_v31 = vor.u32 %v3674_v26, %v2910_v27  ;;  %v3026_v36 = vld [vmem:[%s5290_s4 + $0x6] ss:$8 sm:$0x3]  ;;  %275 = vst [vmem:[#allocation5] sm:$0xff] %v3898_v37 }
  0x28   : > { %494 = vmatpush.bf16.msra.mxu0 %v2933_v4  ;;  %v4161_v38 = vperm.slane %v3026_v36, 0  ;;  %276 = vst [vmem:[#allocation5 + $0x8] sm:$0xff] %v3898_v37  ;;  %v4163_v39 = vperm.slane %v3026_v36, 1 }
  0x29   : > { %513 = vmatpush.bf16.msra.mxu1 %v2937_v5  ;;  %532 = vmatpush.bf16.msra.mxu2 %v2941_v6  ;;  %277 = vst [vmem:[#allocation2 + $0x20] sm:$0xff] %v3898_v37 }
  0x2a   : > { %551 = vmatpush.bf16.msra.mxu3 %v2945_v10  ;;  %278 = vst [vmem:[#allocation2] sm:$0xff] %v3898_v37 }
  0x2b   : > { %279 = vst [vmem:[#allocation2 + $0x48] sm:$0xff] %v3898_v37 }
  0x2c   : > { %495 = vmatpush.bf16.msra.mxu0 %v2917_v16  ;;  %280 = vst [vmem:[#allocation2 + $0x58] sm:$0xff] %v3898_v37 }
  0x2d   : > { %514 = vmatpush.bf16.msra.mxu1 %v2921_v17  ;;  %533 = vmatpush.bf16.msra.mxu2 %v2925_v18 }
  0x2e   : > { %552 = vmatpush.bf16.msra.mxu3 %v2929_v22 }
  0x30   : > { %496 = vmatpush.bf16.msra.mxu0 %v2901_v28 }
  0x31   : > { %515 = vmatpush.bf16.msra.mxu1 %v2905_v29  ;;  %534 = vmatpush.bf16.msra.mxu2 %v2909_v30 }
  0x32   : > { %553 = vmatpush.bf16.msra.mxu3 %v2913_v31 }
  0x33   : > { %497 = vmatmul.bf16.vlgmr.msra.gmra.mxu0 %v3671_v32 }
  0x34   : > { %516 = vmatmul.bf16.vlgmr.msra.gmra.mxu1 %v3671_v32  ;;  %535 = vmatmul.bf16.vlgmr.msra.gmra.mxu2 %v3671_v32 }
  0x35   : > { %554 = vmatmul.bf16.vlgmr.msra.gmra.mxu3 %v3671_v32 }
  0x43   : > { %502 = vmatmul.bf16.gmra.mxu0 %v3672_v33 }
  0x44   : > { %521 = vmatmul.bf16.gmra.mxu1 %v3672_v33  ;;  %540 = vmatmul.bf16.gmra.mxu2 %v3672_v33 }
  0x45   : > { %559 = vmatmul.bf16.gmra.mxu3 %v3672_v33 }
  0xb0   : > { %v498_v34 = vpop.f32.mrf.mxu0 }
  0xb1   : > { %3027 = vst [vmem:[#allocation2 + $0x40] sm:$0xff] %v498_v34  ;;  %v517_v35 = vpop.f32.mrf.mxu1  ;;  %v641_v56 = vmul.f32 %v498_v34, %v498_v34 }
  0xb2   : > { %3028 = vst [vmem:[#allocation2 + $0x10] sm:$0xff] %v517_v35  ;;  %v642_v59 = vmul.f32 %v517_v35, %v517_v35 }
  0xb7   : > { %v536_v40 = vpop.f32.mrf.mxu2 }
  0xb8   : > { %v500_v41 = vpop.f32.mrf.mxu0  ;;  %v572_v42 = vadd.f32 %v4161_v38, %v536_v40  ;;  %v555_v43 = vpop.f32.mrf.mxu3 }
  0xb9   : > { %3029 = vst [vmem:[#allocation2 + $0x8] sm:$0xff] %v500_v41  ;;  %v519_v44 = vpop.f32.mrf.mxu1  ;;  %v573_v45 = vadd.f32 %v4163_v39, %v555_v43  ;;  %v643_v53 = vmul.f32 %v500_v41, %v500_v41  ;;  %v608_v57 = vadd.f32 %v500_v41, %v498_v34 }
  0xba   : > { %3030 = vst [vmem:[#allocation2 + $0x28] sm:$0xff] %v519_v44  ;;  %v644_v55 = vmul.f32 %v519_v44, %v519_v44  ;;  %v617_v60 = vadd.f32 %v519_v44, %v517_v35  ;;  %v633_v44 = vlaneseq }
  0xbb   : > { %v594_v46 = vpack.c.bf16 %v573_v45, %v572_v42  ;;  %v649_v62 = vadd.f32 %v643_v53, %v641_v56 }
  0xbc   : > { %v658_v1 = vadd.f32 %v644_v55, %v642_v59  ;;  %vm635_vm1 = vcmp.lt.s32.totalorder %v633_v44, 256 }
  0xbd   : > { %603 = vst [vmem:[#allocation3 + $0x8] sm:$0xff] %v594_v46 }
  0xbf   : > { %v538_v47 = vpop.f32.mrf.mxu2 }
  0xc0   : > { %v503_v48 = vpop.f32.mrf.mxu0  ;;  %v574_v49 = vadd.f32 %v4161_v38, %v538_v47  ;;  %v557_v50 = vpop.f32.mrf.mxu3 }
  0xc1   : > { %3031 = vst [vmem:[#allocation2 + $0x18] sm:$0xff] %v503_v48  ;;  %v522_v51 = vpop.f32.mrf.mxu1  ;;  %v575_v52 = vadd.f32 %v4163_v39, %v557_v50  ;;  %v645_v58 = vmul.f32 %v503_v48, %v503_v48  ;;  %v609_v63 = vadd.f32 %v608_v57, %v503_v48 }
  0xc2   : > { %3032 = vst [vmem:[#allocation2 + $0x38] sm:$0xff] %v522_v51  ;;  %v646_v61 = vmul.f32 %v522_v51, %v522_v51  ;;  %v618_v2 = vadd.f32 %v617_v60, %v522_v51 }
  0xc3   : > { %v595_v54 = vpack.c.bf16 %v575_v52, %v574_v49  ;;  %v650_v6 = vadd.f32 %v649_v62, %v645_v58 }
  0xc4   : > { %v659_v11 = vadd.f32 %v658_v1, %v646_v61 }
  0xc5   : > { %604 = vst [vmem:[#allocation3] sm:$0xff] %v595_v54 }
  0xc7   : > { %v541_v0 = vpop.f32.mrf.mxu2 }
  0xc8   : > { %v505_v3 = vpop.f32.mrf.mxu0  ;;  %v576_v4 = vadd.f32 %v4161_v38, %v541_v0  ;;  %v560_v5 = vpop.f32.mrf.mxu3 }
  0xc9   : > { %3033 = vst [vmem:[#allocation2 + $0x50] sm:$0xff] %v505_v3  ;;  %v610_v7 = vadd.f32 %v609_v63, %v505_v3  ;;  %v647_v8 = vmul.f32 %v505_v3, %v505_v3  ;;  %v524_v9 = vpop.f32.mrf.mxu1  ;;  %v577_v10 = vadd.f32 %v4163_v39, %v560_v5 }
  0xca   : > { %3034 = vst [vmem:[#allocation2 + $0x30] sm:$0xff] %v524_v9  ;;  %v619_v12 = vadd.f32 %v618_v2, %v524_v9  ;;  %v648_v13 = vmul.f32 %v524_v9, %v524_v9 }
  0xcb   : > { %v611_v14 = vrot.slane %v610_v7, 4  ;;  %v651_v15 = vadd.f32 %v650_v6, %v647_v8  ;;  %v596_v16 = vpack.c.bf16 %v577_v10, %v576_v4 }
  0xcc   : > { %v620_v17 = vrot.slane %v619_v12, 4  ;;  %v660_v18 = vadd.f32 %v659_v11, %v648_v13 }
  0xcd   : > { %v612_v19 = vadd.f32 %v611_v14, %v610_v7  ;;  %v652_v20 = vrot.slane %v651_v15, 4  ;;  %605 = vst [vmem:[#allocation3 + $0x10] sm:$0xff] %v596_v16 }
  0xce   : > { %v621_v21 = vadd.f32 %v620_v17, %v619_v12  ;;  %v661_v22 = vrot.slane %v660_v18, 4 }
  0xcf   : > { %v613_v23 = vrot.slane %v612_v19, 2  ;;  %v653_v24 = vadd.f32 %v652_v20, %v651_v15  ;;  %v543_v25 = vpop.f32.mrf.mxu2 }
  0xd0   : > { %v622_v26 = vrot.slane %v621_v21, 2  ;;  %v662_v27 = vadd.f32 %v661_v22, %v660_v18  ;;  %v578_v28 = vadd.f32 %v4161_v38, %v543_v25  ;;  %v562_v29 = vpop.f32.mrf.mxu3  ;;  %v607_v38 = vld [vmem:[#allocation5] ss:$8 sm:$0x3] }
  0xd1   : > { %v614_v30 = vadd.f32 %v613_v23, %v612_v19  ;;  %v654_v31 = vrot.slane %v653_v24, 2  ;;  %v579_v32 = vadd.f32 %v4163_v39, %v562_v29  ;;  %v640_v39 = vld [vmem:[#allocation5 + $0x1] ss:$8 sm:$0x3] }
  0xd2   : > { %v623_v33 = vadd.f32 %v622_v26, %v621_v21  ;;  %v663_v34 = vrot.slane %v662_v27, 2 }
  0xd3   : > { %v655_v35 = vadd.f32 %v654_v31, %v653_v24  ;;  %v597_v36 = vpack.c.bf16 %v579_v32, %v578_v28  ;;  %v615_v37 = vrot.slane %v614_v30, 1 }
  0xd4   : > { %v624_v40 = vrot.slane %v623_v33, 1  ;;  %v664_v41 = vadd.f32 %v663_v34, %v662_v27 }
  0xd5   : > { %606 = vst [vmem:[#allocation3 + $0x18] sm:$0xff] %v597_v36  ;;  %v656_v42 = vrot.slane %v655_v35, 1  ;;  %v616_v46 = vadd.f32 %v615_v37, %v614_v30 }
  0xd6   : > { %v625_v43 = vadd.f32 %v624_v40, %v623_v33  ;;  %v665_v45 = vrot.slane %v664_v41, 1 }
  0xd7   : > { %v657_v49 = vadd.f32 %v656_v42, %v655_v35 }
  0xd8   : > { %v628_v47 = vrot.slane %v625_v43, 7  ;;  %v666_v48 = vadd.f32 %v665_v45, %v664_v41 }
  0xda   : > { %v630_v50 = vsel %vm629_vm0, %v616_v46, %v628_v47  ;;  %v669_v51 = vrot.slane %v666_v48, 7 }
  0xdb   : > { %v632_v52 = vadd.f32 %v630_v50, %v607_v38 }
  0xdc   : > { %v670_v53 = vsel %vm629_vm0, %v657_v49, %v669_v51 }
  0xdd   : > { %637 = vst.msk [vmem:[#allocation5] ss:$8 sm:$0x3] %vm635_vm1, %v632_v52  ;;  %v672_v54 = vadd.f32 %v670_v53, %v640_v39 }
  0xdf   : > { %673 = vst.msk [vmem:[#allocation5 + $0x1] ss:$8 sm:$0x3] %vm635_vm1, %v672_v54 }
  0xe0 PF: > { %p3035_p5 = scmp.ne.s32.totalorder %s3888_s18, 1 }
  0xe1   : > { %s3899_s30 = smov (!%p3035_p5), 16   ;;  %s3900_s6 = smov (!%p3035_p5), 32  }
  0xe2   : > { %678 = sbr.rel (%p3035_p5) target bundleno = 911 (0x38f), region = 52  ;;  %s3901_s7 = smov (!%p3035_p5), 64  }
  0xe7   : > { %v749_v55 = vld [vmem:[#allocation5 + $0x1] ss:$8 sm:$0x3]  ;;  %v683_v57 = vld [vmem:[#allocation5] ss:$8 sm:$0x3]  ;;  %v693_v61 = vlaneseq }
  0xe8   : > { %v751_v56 = vperm.slane %v749_v55, 0  ;;  %v685_v58 = vperm.slane %v683_v57, 0  ;;  %v752_v59 = vperm.slane %v749_v55, 1  ;;  %v686_v60 = vperm.slane %v683_v57, 1  ;;  %v3127_v46 = vld [vmem:[%s5288_s2 + $0x170] sm:$0xf] }
  0xe9   : > { %v4175_v0 = vand.u32 127, %v693_v61  ;;  %vm701_vm3 = vcmask 1040384   ;;  %v3752_v38 = vld [vmem:[%s5288_s2 + $0x174] sm:$0xf0]  ;;  %v3191_v47 = vld [vmem:[%s5288_s2 + $0x1f0] sm:$0xf] }
  0xea   : > { %755 = vrot.lane.b32.xlu1 %v751_v56, %s3899_s30  ;;  %689 = vrot.lane.b32.xlu0 %v685_v58, %s3899_s30  ;;  %v3128_v48 = vor.u32 %v3752_v38, %v3127_v46  ;;  %v3768_v49 = vld [vmem:[%s5288_s2 + $0x1f4] sm:$0xf0]  ;;  %v3751_v50 = vld [vmem:[%s5288_s2 + $0x174] sm:$0xf]  ;;  %vm4450_vm8 = vcmp.lt.s32.totalorder %v693_v61, 256  ;;  %vm3902_vm11 = vmmov 1  }
  0xeb   : > { %vm695_vm2 = vcmp.lt.s32.totalorder %v4175_v0, 16  ;;  %vm714_vm4 = vcmp.lt.s32.totalorder %v4175_v0, 32  ;;  %vm732_vm5 = vcmp.lt.s32.totalorder %v4175_v0, 64  ;;  %v3129_v39 = vld [vmem:[%s5288_s2 + $0x178] sm:$0xf0]  ;;  %v3192_v52 = vor.u32 %v3768_v49, %v3191_v47 }
  0xec   : > { %v3132_v53 = vor.u32 %v3751_v50, %v3129_v39  ;;  %v3767_v54 = vld [vmem:[%s5288_s2 + $0x1f4] sm:$0xf]  ;;  %1247 = vmatpush.bf16.msra.mxu0 %v3128_v48  ;;  %v3095_v38 = vld [vmem:[%s5288_s2 + $0x130] sm:$0xf]  ;;  %v3744_v47 = vld [vmem:[%s5288_s2 + $0x134] sm:$0xf0] }
  0xed   : > { %1266 = vmatpush.bf16.msra.mxu1 %v3192_v52  ;;  %v3159_v48 = vld [vmem:[%s5288_s2 + $0x1b0] sm:$0xf]  ;;  %v3096_v39 = vor.u32 %v3744_v47, %v3095_v38  ;;  %v3743_v52 = vld [vmem:[%s5288_s2 + $0x134] sm:$0xf]  ;;  %v3720_v47 = vld [vmem:[%s5288_s2 + $0x74] sm:$0xf0] }
  0xee   : > { %1285 = vmatpush.bf16.msra.mxu2 %v3132_v53  ;;  %vm1579_vm15 = vcmask 1046528  }
  0xf2   : > { %757 = vrot.lane.b32.xlu1 %v752_v59, %s3899_s30  ;;  %691 = vrot.lane.b32.xlu0 %v686_v60, %s3899_s30 }
 0x15c   : > { %v756_v62 = vpop.permute.xlu1 %755  ;;  %v690_v63 = vpop.permute.xlu0 %689 }
 0x164   : > { %v758_v1 = vpop.permute.xlu1 %757  ;;  %v692_v3 = vpop.permute.xlu0 %691 }
 0x165   : > { %v759_v2 = vsel %vm695_vm2, %v756_v62, %v758_v1  ;;  %v696_v5 = vsel %vm695_vm2, %v690_v63, %v692_v3  ;;  %v697_v6 = vsel %vm695_vm2, %v692_v3, %v690_v63  ;;  %v760_v7 = vsel %vm695_vm2, %v758_v1, %v756_v62  ;;  %v3119_v62 = vld [vmem:[%s5288_s2 + $0x160] sm:$0xf]  ;;  %v3750_v63 = vld [vmem:[%s5288_s2 + $0x164] sm:$0xf0] }
 0x166   : > { %v763_v4 = vrot.slane %v759_v2, 7  ;;  %v700_v8 = vrot.slane %v696_v5, 7  ;;  %v3183_v1 = vld [vmem:[%s5288_s2 + $0x1e0] sm:$0xf]  ;;  %v3120_v3 = vor.u32 %v3750_v63, %v3119_v62  ;;  %v3749_v5 = vld [vmem:[%s5288_s2 + $0x164] sm:$0xf] }
 0x167   : > { %v3742_v62 = vld [vmem:[%s5288_s2 + $0x124] sm:$0xf0]  ;;  %v3151_v63 = vld [vmem:[%s5288_s2 + $0x1a0] sm:$0xf] }
 0x168   : > { %v764_v9 = vsel %vm701_vm3, %v760_v7, %v763_v4  ;;  %v702_v11 = vsel %vm701_vm3, %v697_v6, %v700_v8  ;;  %v3766_v4 = vld [vmem:[%s5288_s2 + $0x1e4] sm:$0xf0]  ;;  %v3121_v8 = vld [vmem:[%s5288_s2 + $0x168] sm:$0xf0]  ;;  %1248 = vmatpush.bf16.msra.mxu0 %v3120_v3  ;;  %v3741_v3 = vld [vmem:[%s5288_s2 + $0x124] sm:$0xf] }
 0x169   : > { %v766_v10 = vadd.f32 %v764_v9, %v749_v55  ;;  %v704_v12 = vadd.f32 %v702_v11, %v683_v57  ;;  %v3193_v55 = vld [vmem:[%s5288_s2 + $0x1f8] sm:$0xf0]  ;;  %v3184_v7 = vor.u32 %v3766_v4, %v3183_v1  ;;  %v3765_v9 = vld [vmem:[%s5288_s2 + $0x1e4] sm:$0xf]  ;;  %v3089_v4 = vld [vmem:[%s5288_s2 + $0x128] sm:$0xf0] }
 0x16a   : > { %v3196_v58 = vor.u32 %v3767_v54, %v3193_v55  ;;  %v3097_v54 = vld [vmem:[%s5288_s2 + $0x138] sm:$0xf0]  ;;  %v3759_v55 = vld [vmem:[%s5288_s2 + $0x1b4] sm:$0xf] }
 0x16b   : > { %v769_v13 = vperm.slane %v766_v10, 1  ;;  %v768_v14 = vperm.slane %v766_v10, 0  ;;  %v706_v15 = vperm.slane %v704_v12, 0  ;;  %v707_v16 = vperm.slane %v704_v12, 1  ;;  %1267 = vmatpush.bf16.msra.mxu1 %v3184_v7 }
 0x16c   : > { %1304 = vmatpush.bf16.msra.mxu3 %v3196_v58  ;;  %v3100_v58 = vor.u32 %v3743_v52, %v3097_v54  ;;  %v3092_v7 = vor.u32 %v3741_v3, %v3089_v4  ;;  %v3717_v52 = vld [vmem:[%s5288_s2 + $0x64] sm:$0xf]  ;;  %v3734_v4 = vld [vmem:[%s5288_s2 + $0xe4] sm:$0xf0] }
 0x16d   : > { %774 = vrot.lane.b32.xlu1 %v769_v13, %s3900_s6  ;;  %772 = vrot.lane.b32.xlu0 %v768_v14, %s3900_s6  ;;  %v3124_v13 = vor.u32 %v3749_v5, %v3121_v8  ;;  %v3757_v8 = vld [vmem:[%s5288_s2 + $0x1a4] sm:$0xf] }
 0x16e   : > { %710 = vrot.lane.b32.xlu2 %v706_v15, %s3900_s6  ;;  %v3111_v15 = vld [vmem:[%s5288_s2 + $0x150] sm:$0xf] }
 0x16f   : > { %1286 = vmatpush.bf16.msra.mxu2 %v3124_v13  ;;  %v3143_v13 = vld [vmem:[%s5288_s2 + $0x190] sm:$0xf] }
 0x176   : > { %712 = vrot.lane.b32.xlu2 %v707_v16, %s3900_s6  ;;  %v3748_v16 = vld [vmem:[%s5288_s2 + $0x154] sm:$0xf0] }
 0x1c8   : > { %v711_v17 = vpop.permute.xlu2 %710 }
 0x1d0   : > { %v713_v18 = vpop.permute.xlu2 %712 }
 0x1d1   : > { %v715_v19 = vsel %vm714_vm4, %v711_v17, %v713_v18  ;;  %v716_v21 = vsel %vm714_vm4, %v713_v18, %v711_v17  ;;  %v3175_v17 = vld [vmem:[%s5288_s2 + $0x1d0] sm:$0xf]  ;;  %v3112_v18 = vor.u32 %v3748_v16, %v3111_v15  ;;  %v3756_v15 = vld [vmem:[%s5288_s2 + $0x194] sm:$0xf0]  ;;  %v3739_v16 = vld [vmem:[%s5288_s2 + $0x114] sm:$0xf] }
 0x1d2   : > { %v719_v20 = vrot.slane %v715_v19, 7  ;;  %v3764_v19 = vld [vmem:[%s5288_s2 + $0x1d4] sm:$0xf0] }
 0x1d3   : > { %1249 = vmatpush.bf16.msra.mxu0 %v3112_v18  ;;  %v3081_v18 = vld [vmem:[%s5288_s2 + $0x118] sm:$0xf0] }
 0x1d4   : > { %v720_v22 = vsel %vm701_vm3, %v716_v21, %v719_v20  ;;  %v3747_v20 = vld [vmem:[%s5288_s2 + $0x154] sm:$0xf]  ;;  %v3113_v21 = vld [vmem:[%s5288_s2 + $0x158] sm:$0xf0] }
 0x1d5   : > { %v722_v23 = vadd.f32 %v720_v22, %v704_v12 }
 0x1d7   : > { %v725_v24 = vperm.slane %v722_v23, 1  ;;  %v724_v25 = vperm.slane %v722_v23, 0 }
 0x1d9   : > { %730 = vrot.lane.b32.xlu0 %v725_v24, %s3901_s7  ;;  %728 = vrot.lane.b32.xlu2 %v724_v25, %s3901_s7  ;;  %v3116_v24 = vor.u32 %v3747_v20, %v3113_v21  ;;  %v3763_v25 = vld [vmem:[%s5288_s2 + $0x1d4] sm:$0xf]  ;;  %v3145_v20 = vld [vmem:[%s5288_s2 + $0x198] sm:$0xf0]  ;;  %v3084_v21 = vor.u32 %v3739_v16, %v3081_v18 }
 0x1da   : > { %v3036_v16 = vld [vmem:[%s5290_s4 + $0x1] ss:$8 sm:$0x3] }
 0x1db   : > { %1287 = vmatpush.bf16.msra.mxu2 %v3116_v24  ;;  %v3738_v24 = vld [vmem:[%s5288_s2 + $0x104] sm:$0xf0] }
 0x1df   : > { %v775_v26 = vpop.permute.xlu1 %774  ;;  %v773_v27 = vpop.permute.xlu0 %772 }
 0x1e0   : > { %v776_v28 = vsel %vm714_vm4, %v773_v27, %v775_v26  ;;  %v777_v30 = vsel %vm714_vm4, %v775_v26, %v773_v27  ;;  %v3177_v26 = vld [vmem:[%s5288_s2 + $0x1d8] sm:$0xf0] }
 0x1e1   : > { %v780_v29 = vrot.slane %v776_v28, 7  ;;  %v3180_v28 = vor.u32 %v3763_v25, %v3177_v26  ;;  %v3135_v25 = vld [vmem:[%s5288_s2 + $0x180] sm:$0xf]  ;;  %v3754_v26 = vld [vmem:[%s5288_s2 + $0x184] sm:$0xf0] }
 0x1e3   : > { %v781_v31 = vsel %vm701_vm3, %v777_v30, %v780_v29 }
 0x1e4   : > { %v783_v32 = vadd.f32 %v781_v31, %v766_v10  ;;  %v3185_v10 = vld [vmem:[%s5288_s2 + $0x1e8] sm:$0xf0]  ;;  %v3103_v31 = vld [vmem:[%s5288_s2 + $0x140] sm:$0xf] }
 0x1e5   : > { %v3188_v0 = vor.u32 %v3765_v9, %v3185_v10  ;;  %v3153_v9 = vld [vmem:[%s5288_s2 + $0x1a8] sm:$0xf0] }
 0x1e6   : > { %v786_v33 = vperm.slane %v783_v32, 1  ;;  %v785_v34 = vperm.slane %v783_v32, 0  ;;  %v3156_v10 = vor.u32 %v3757_v8, %v3153_v9 }
 0x1e7   : > { %1305 = vmatpush.bf16.msra.mxu3 %v3188_v0 }
 0x1e8   : > { %791 = vrot.lane.b32.xlu2 %v786_v33, %s3901_s7  ;;  %789 = vrot.lane.b32.xlu1 %v785_v34, %s3901_s7  ;;  %v3167_v34 = vld [vmem:[%s5288_s2 + $0x1c0] sm:$0xf] }
 0x1eb   : > { %1306 = vmatpush.bf16.msra.mxu3 %v3180_v28  ;;  %v3737_v28 = vld [vmem:[%s5288_s2 + $0x104] sm:$0xf] }
 0x233   : > { %v729_v35 = vpop.permute.xlu2 %728 }
 0x242   : > { %v792_v56 = vpop.permute.xlu2 %791 }
 0x24b   : > { %v731_v36 = vpop.permute.xlu0 %730 }
 0x24c   : > { %v733_v37 = vsel %vm732_vm5, %v729_v35, %v731_v36  ;;  %v734_v41 = vsel %vm732_vm5, %v731_v36, %v729_v35  ;;  %v3762_v35 = vld [vmem:[%s5288_s2 + $0x1c4] sm:$0xf0]  ;;  %v3745_v36 = vld [vmem:[%s5288_s2 + $0x144] sm:$0xf] }
 0x24d   : > { %v737_v40 = vrot.slane %v733_v37, 7 }
 0x24f   : > { %v738_v42 = vsel %vm701_vm3, %v734_v41, %v737_v40  ;;  %v3168_v40 = vor.u32 %v3762_v35, %v3167_v34  ;;  %v3105_v41 = vld [vmem:[%s5288_s2 + $0x148] sm:$0xf0] }
 0x250   : > { %v740_v43 = vadd.f32 %v738_v42, %v722_v23  ;;  %v3176_v23 = vor.u32 %v3764_v19, %v3175_v17  ;;  %v3761_v42 = vld [vmem:[%s5288_s2 + $0x1c4] sm:$0xf]  ;;  %v3144_v17 = vor.u32 %v3756_v15, %v3143_v13  ;;  %v3755_v19 = vld [vmem:[%s5288_s2 + $0x194] sm:$0xf]  ;;  %v3732_v15 = vld [vmem:[%s5288_s2 + $0xd4] sm:$0xf0] }
 0x252   : > { %v742_v44 = vperm.slane %v740_v43, 0  ;;  %v743_v51 = vperm.slane %v740_v43, 1  ;;  %1268 = vmatpush.bf16.msra.mxu1 %v3176_v23  ;;  %v3071_v23 = vld [vmem:[%s5288_s2 + $0x100] sm:$0xf] }
 0x254   : > { %v744_v45 = vrot.slane %v742_v44, 7 }
 0x256   : > { %v745_v59 = vsel %vm701_vm3, %v743_v51, %v744_v45  ;;  %v3108_v45 = vor.u32 %v3745_v36, %v3105_v41  ;;  %1269 = vmatpush.bf16.msra.mxu1 %v3168_v40  ;;  %v3760_v51 = vld [vmem:[%s5288_s2 + $0x1b4] sm:$0xf0]  ;;  %v3719_v40 = vld [vmem:[%s5288_s2 + $0x74] sm:$0xf]  ;;  %v3257_v41 = vld [vmem:[%s5288_s2 + $0x78] sm:$0xf0] }
 0x257   : > { %v747_v11 = vadd.f32 %v745_v59, %v740_v43  ;;  %v3169_v43 = vld [vmem:[%s5288_s2 + $0x1c8] sm:$0xf0]  ;;  %v3160_v53 = vor.u32 %v3760_v51, %v3159_v48  ;;  %v3319_v48 = vld [vmem:[%s5288_s2 + $0xf0] sm:$0xf] }
 0x258   : > { %v3172_v46 = vor.u32 %v3761_v42, %v3169_v43  ;;  %1288 = vmatpush.bf16.msra.mxu2 %v3108_v45  ;;  %v3260_v43 = vor.u32 %v3719_v40, %v3257_v41  ;;  %v3321_v45 = vld [vmem:[%s5288_s2 + $0xf8] sm:$0xf0]  ;;  %v849_v40 = vld [vmem:[#allocation2 + $0x40] sm:$0xff]  ;;  %v851_v41 = vld [vmem:[#allocation2 + $0x8] sm:$0xff] }
 0x259   : > { %v4275_v27 = vmul.f32 0.001953125, %v747_v11  ;;  %v3079_v11 = vld [vmem:[%s5288_s2 + $0x110] sm:$0xf] }
 0x25a   : > { %v790_v57 = vpop.permute.xlu1 %789  ;;  %1307 = vmatpush.bf16.msra.mxu3 %v3172_v46  ;;  %1270 = vmatpush.bf16.msra.mxu1 %v3160_v53  ;;  %v3255_v46 = vld [vmem:[%s5288_s2 + $0x70] sm:$0xf]  ;;  %v3249_v53 = vld [vmem:[%s5288_s2 + $0x68] sm:$0xf0] }
 0x25b   : > { %v793_v60 = vsel %vm732_vm5, %v790_v57, %v792_v56  ;;  %v794_v6 = vsel %vm732_vm5, %v792_v56, %v790_v57  ;;  %v810_v49 = vmul.f32 %v4275_v27, %v4275_v27  ;;  %v3161_v56 = vld [vmem:[%s5288_s2 + $0x1b8] sm:$0xf0]  ;;  %v3252_v54 = vor.u32 %v3717_v52, %v3249_v53  ;;  %v3728_v52 = vld [vmem:[%s5288_s2 + $0xb4] sm:$0xf0]  ;;  %v3709_v53 = vld [vmem:[%s5288_s2 + $0x24] sm:$0xf] }
 0x25c   : > { %v797_v2 = vrot.slane %v793_v60, 7  ;;  %v3164_v59 = vor.u32 %v3759_v55, %v3161_v56  ;;  %v3087_v60 = vld [vmem:[%s5288_s2 + $0x120] sm:$0xf]  ;;  %1289 = vmatpush.bf16.msra.mxu2 %v3100_v58  ;;  %v3733_v55 = vld [vmem:[%s5288_s2 + $0xe4] sm:$0xf] }
 0x25d   : > { %v3088_v1 = vor.u32 %v3742_v62, %v3087_v60  ;;  %v3313_v56 = vld [vmem:[%s5288_s2 + $0xe8] sm:$0xf0]  ;;  %v3279_v62 = vld [vmem:[%s5288_s2 + $0xa0] sm:$0xf] }
 0x25e   : > { %v798_v12 = vsel %vm701_vm3, %v794_v6, %v797_v2  ;;  %v3758_v2 = vld [vmem:[%s5288_s2 + $0x1a4] sm:$0xf0]  ;;  %1308 = vmatpush.bf16.msra.mxu3 %v3164_v59 }
 0x25f   : > { %v800_v14 = vadd.f32 %v798_v12, %v783_v32  ;;  %v3746_v32 = vld [vmem:[%s5288_s2 + $0x144] sm:$0xf0]  ;;  %v3152_v6 = vor.u32 %v3758_v2, %v3151_v63  ;;  %v3740_v12 = vld [vmem:[%s5288_s2 + $0x114] sm:$0xf0]  ;;  %v3316_v63 = vor.u32 %v3733_v55, %v3313_v56  ;;  %v3311_v2 = vld [vmem:[%s5288_s2 + $0xe0] sm:$0xf] }
 0x260   : > { %v3104_v33 = vor.u32 %v3746_v32, %v3103_v31  ;;  %1290 = vmatpush.bf16.msra.mxu2 %v3092_v7  ;;  %v3753_v31 = vld [vmem:[%s5288_s2 + $0x184] sm:$0xf]  ;;  %v3137_v32 = vld [vmem:[%s5288_s2 + $0x188] sm:$0xf0]  ;;  %v3312_v8 = vor.u32 %v3734_v4, %v3311_v2 }
 0x261   : > { %v802_v22 = vperm.slane %v800_v14, 0  ;;  %v803_v29 = vperm.slane %v800_v14, 1  ;;  %1271 = vmatpush.bf16.msra.mxu1 %v3152_v6  ;;  %v3140_v35 = vor.u32 %v3753_v31, %v3137_v32  ;;  %v813_v59 = vld [vmem:[%s5290_s4] ss:$8 sm:$0x3] }
 0x262   : > { %1250 = vmatpush.bf16.msra.mxu0 %v3104_v33  ;;  %1309 = vmatpush.bf16.msra.mxu3 %v3156_v10  ;;  %v3136_v33 = vor.u32 %v3754_v26, %v3135_v25  ;;  %v3241_v6 = vld [vmem:[%s5288_s2 + $0x58] sm:$0xf0]  ;;  %v3731_v10 = vld [vmem:[%s5288_s2 + $0xd4] sm:$0xf]  ;;  %v3231_v25 = vld [vmem:[%s5288_s2 + $0x40] sm:$0xf] }
 0x263   : > { %v804_v30 = vrot.slane %v802_v22, 7  ;;  %v3148_v22 = vor.u32 %v3755_v19, %v3145_v20  ;;  %v3713_v20 = vld [vmem:[%s5288_s2 + $0x44] sm:$0xf]  ;;  %v3714_v26 = vld [vmem:[%s5288_s2 + $0x44] sm:$0xf0] }
 0x264   : > { %1291 = vmatpush.bf16.msra.mxu2 %v3084_v21  ;;  %v3233_v21 = vld [vmem:[%s5288_s2 + $0x48] sm:$0xf0]  ;;  %v3725_v56 = vld [vmem:[%s5288_s2 + $0xa4] sm:$0xf] }
 0x265   : > { %v805_v37 = vsel %vm701_vm3, %v803_v29, %v804_v30  ;;  %v3073_v29 = vld [vmem:[%s5288_s2 + $0x108] sm:$0xf0]  ;;  %v3072_v30 = vor.u32 %v3738_v24, %v3071_v23  ;;  %1272 = vmatpush.bf16.msra.mxu1 %v3144_v17 }
 0x266   : > { %v807_v44 = vadd.f32 %v805_v37, %v800_v14  ;;  %1251 = vmatpush.bf16.msra.mxu0 %v3096_v39  ;;  %v3080_v14 = vor.u32 %v3740_v12, %v3079_v11  ;;  %1310 = vmatpush.bf16.msra.mxu3 %v3148_v22  ;;  %v3076_v34 = vor.u32 %v3737_v28, %v3073_v29  ;;  %v3305_v11 = vld [vmem:[%s5288_s2 + $0xd8] sm:$0xf0]  ;;  %v3239_v12 = vld [vmem:[%s5288_s2 + $0x50] sm:$0xf]  ;;  %v3729_v22 = vld [vmem:[%s5288_s2 + $0xc4] sm:$0xf] }
 0x267   : > { %v3256_v39 = vor.u32 %v3720_v47, %v3255_v46  ;;  %v3308_v13 = vor.u32 %v3731_v10, %v3305_v11  ;;  %v3297_v24 = vld [vmem:[%s5288_s2 + $0xc8] sm:$0xf0]  ;;  %v3236_v28 = vor.u32 %v3713_v20, %v3233_v21  ;;  %v3295_v29 = vld [vmem:[%s5288_s2 + $0xc0] sm:$0xf]  ;;  %v3712_v46 = vld [vmem:[%s5288_s2 + $0x34] sm:$0xf0] }
 0x268   : > { %v809_v50 = vmul.f32 0.001953125, %v807_v44  ;;  %1292 = vmatpush.bf16.msra.mxu2 %v3076_v34  ;;  %v3735_v44 = vld [vmem:[%s5288_s2 + $0xf4] sm:$0xf]  ;;  %v3300_v32 = vor.u32 %v3729_v22, %v3297_v24  ;;  %v852_v47 = vld [vmem:[#allocation2 + $0x28] sm:$0xff]  ;;  %v3209_v11 = vld [vmem:[%s5288_s2 + $0x18] sm:$0xf0] }
 0x269   : > { %1273 = vmatpush.bf16.msra.mxu1 %v3136_v33  ;;  %v3324_v38 = vor.u32 %v3735_v44, %v3321_v45  ;;  %v3232_v33 = vor.u32 %v3714_v26, %v3231_v25  ;;  %v3289_v44 = vld [vmem:[%s5288_s2 + $0xb8] sm:$0xf0]  ;;  %v3223_v45 = vld [vmem:[%s5288_s2 + $0x30] sm:$0xf]  ;;  %v3217_v55 = vld [vmem:[%s5288_s2 + $0x28] sm:$0xf0] }
 0x26a   : > { %v811_v57 = vsub.f32 %v809_v50, %v810_v49  ;;  %1252 = vmatpush.bf16.msra.mxu0 %v3088_v1  ;;  %1311 = vmatpush.bf16.msra.mxu3 %v3140_v35  ;;  %v3736_v49 = vld [vmem:[%s5288_s2 + $0xf4] sm:$0xf0]  ;;  %v3718_v1 = vld [vmem:[%s5288_s2 + $0x64] sm:$0xf0]  ;;  %v3707_v10 = vld [vmem:[%s5288_s2 + $0x14] sm:$0xf] }
 0x26b   : > { %v3320_v51 = vor.u32 %v3736_v49, %v3319_v48  ;;  %v3224_v49 = vor.u32 %v3712_v46, %v3223_v45  ;;  %v3723_v22 = vld [vmem:[%s5288_s2 + $0x94] sm:$0xf]  ;;  %v3273_v25 = vld [vmem:[%s5288_s2 + $0x98] sm:$0xf0]  ;;  %v3207_v26 = vld [vmem:[%s5288_s2 + $0x10] sm:$0xf] }
 0x26c   : > { %v812_v5 = vmax.f32 %v811_v57, 0.0  ;;  %1521 = vmatpush.bf16.msrb.mxu2 %v3260_v43  ;;  %v3247_v57 = vld [vmem:[%s5288_s2 + $0x60] sm:$0xf]  ;;  %v855_v24 = vld [vmem:[#allocation2 + $0x50] sm:$0xff]  ;;  %v3722_v45 = vld [vmem:[%s5288_s2 + $0x84] sm:$0xf0] }
 0x26d   : > { %1502 = vmatpush.bf16.msrb.mxu1 %v3320_v51  ;;  %v3248_v3 = vor.u32 %v3718_v1, %v3247_v57  ;;  %v3281_v57 = vld [vmem:[%s5288_s2 + $0xa8] sm:$0xf0]  ;;  %v3783_v46 = vld [vmem:[%s5288_s2 + $0x274] sm:$0xf] }
 0x26e   : > { %v4361_v0 = vadd.f32 1e-05, %v812_v5  ;;  %1253 = vmatpush.bf16.msra.mxu0 %v3080_v14  ;;  %1540 = vmatpush.bf16.msrb.mxu3 %v3324_v38  ;;  %v3715_v5 = vld [vmem:[%s5288_s2 + $0x54] sm:$0xf]  ;;  %v3303_v14 = vld [vmem:[%s5288_s2 + $0xd0] sm:$0xf] }
 0x26f   : > { %v3244_v9 = vor.u32 %v3715_v5, %v3241_v6  ;;  %v3304_v19 = vor.u32 %v3732_v15, %v3303_v14  ;;  %v3726_v5 = vld [vmem:[%s5288_s2 + $0xa4] sm:$0xf0] }
 0x270   : > { %3868 = vrsqrt.f32 %v4361_v0  ;;  %vm823_vm7 = vweird.f32 %v4361_v0  ;;  %1522 = vmatpush.bf16.msrb.mxu2 %v3252_v54 }
 0x271   : > { %1503 = vmatpush.bf16.msrb.mxu1 %v3312_v8  ;;  %v3220_v8 = vor.u32 %v3709_v53, %v3217_v55  ;;  %v3505_v53 = vld [vmem:[%s5288_s2 + $0x2f8] sm:$0xf0] }
 0x272   : > { %1254 = vmatpush.bf16.msra.mxu0 %v3072_v30  ;;  %1541 = vmatpush.bf16.msrb.mxu3 %v3316_v63  ;;  %v3730_v30 = vld [vmem:[%s5288_s2 + $0xc4] sm:$0xf0] }
 0x273   : > { %v3296_v34 = vor.u32 %v3730_v30, %v3295_v29  ;;  %v854_v30 = vld [vmem:[#allocation2 + $0x38] sm:$0xff] }
 0x274   : > { %1523 = vmatpush.bf16.msrb.mxu2 %v3244_v9  ;;  %v3284_v9 = vor.u32 %v3725_v56, %v3281_v57 }
 0x275   : > { %1504 = vmatpush.bf16.msrb.mxu1 %v3304_v19 }
 0x276   : > { %v4403_v36 = vpop.eup %3868  ;;  %1483 = vmatpush.bf16.msrb.mxu0 %v3256_v39  ;;  %1542 = vmatpush.bf16.msrb.mxu3 %v3308_v13  ;;  %v3280_v13 = vor.u32 %v3726_v5, %v3279_v62 }
 0x277   : > { %v818_v37 = vmul.f32 %v4403_v36, %v4361_v0  ;;  %vm824_vm6 = vweird.f32 %v4403_v36  ;;  %v3716_v0 = vld [vmem:[%s5288_s2 + $0x54] sm:$0xf0] }
 0x278   : > { %vm4459_vm9 = vmor %vm823_vm7, %vm824_vm6  ;;  %v3240_v18 = vor.u32 %v3716_v0, %v3239_v12  ;;  %1524 = vmatpush.bf16.msrb.mxu2 %v3236_v28  ;;  %v3212_v0 = vor.u32 %v3707_v10, %v3209_v11  ;;  %v3708_v28 = vld [vmem:[%s5288_s2 + $0x14] sm:$0xf0]  ;;  %v3433_v10 = vld [vmem:[%s5288_s2 + $0x268] sm:$0xf0] }
 0x279   : > { %v819_v42 = vmul.f32 %v4403_v36, %v818_v37  ;;  %1505 = vmatpush.bf16.msrb.mxu1 %v3296_v34  ;;  %v3727_v37 = vld [vmem:[%s5288_s2 + $0xb4] sm:$0xf]  ;;  %v3797_v11 = vld [vmem:[%s5288_s2 + $0x2e4] sm:$0xf] }
 0x27a   : > { %1484 = vmatpush.bf16.msrb.mxu0 %v3248_v3  ;;  %1543 = vmatpush.bf16.msrb.mxu3 %v3300_v32  ;;  %v3292_v48 = vor.u32 %v3727_v37, %v3289_v44  ;;  %v3724_v32 = vld [vmem:[%s5288_s2 + $0x94] sm:$0xf0]  ;;  %v3265_v37 = vld [vmem:[%s5288_s2 + $0x88] sm:$0xf0]  ;;  %v3208_v44 = vor.u32 %v3708_v28, %v3207_v26  ;;  %v3779_v26 = vld [vmem:[%s5288_s2 + $0x254] sm:$0xf] }
 0x27b   : > { %v820_v50 = vmul.f32 0.5, %v819_v42  ;;  %v850_v42 = vld [vmem:[#allocation2 + $0x10] sm:$0xff] }
 0x27d   : > { %v821_v60 = vsub.f32 1.5, %v820_v50  ;;  %v3287_v50 = vld [vmem:[%s5288_s2 + $0xb0] sm:$0xf] }
 0x27e   : > { %1485 = vmatpush.bf16.msrb.mxu0 %v3240_v18  ;;  %1544 = vmatpush.bf16.msrb.mxu3 %v3292_v48  ;;  %v3288_v54 = vor.u32 %v3728_v52, %v3287_v50  ;;  %v3799_v52 = vld [vmem:[%s5288_s2 + $0x2f4] sm:$0xf] }
 0x27f   : > { %v822_v7 = vmul.f32 %v4403_v36, %v821_v60  ;;  %v3710_v60 = vld [vmem:[%s5288_s2 + $0x24] sm:$0xf0] }
 0x280   : > { %1506 = vmatpush.bf16.msrb.mxu1 %v3288_v54  ;;  %v3439_v54 = vld [vmem:[%s5288_s2 + $0x270] sm:$0xf] }
 0x281   : > { %v826_v17 = vsel %vm4459_vm9, %v4403_v36, %v822_v7  ;;  %v3711_v36 = vld [vmem:[%s5288_s2 + $0x34] sm:$0xf] }
 0x282   : > { %v827_v23 = vmul.f32 %v826_v17, %v813_v59  ;;  %1486 = vmatpush.bf16.msrb.mxu0 %v3232_v33  ;;  %v3215_v59 = vld [vmem:[%s5288_s2 + $0x20] sm:$0xf]  ;;  %1545 = vmatpush.bf16.msrb.mxu3 %v3284_v9  ;;  %v3705_v33 = vld [vmem:[%s5288_s2 + $0x4] sm:$0xf] }
 0x283   : > { %v3216_v12 = vor.u32 %v3710_v60, %v3215_v59  ;;  %v3784_v59 = vld [vmem:[%s5288_s2 + $0x274] sm:$0xf0]  ;;  %v3503_v60 = vld [vmem:[%s5288_s2 + $0x2f0] sm:$0xf] }
 0x284   : > { %832 = vst.msk [vmem:[#allocation6] ss:$8 sm:$0x3] %vm4450_vm8, %v827_v23  ;;  %v834_v31 = vmul.f32 %v827_v23, %v4275_v27  ;;  %v3225_v27 = vld [vmem:[%s5288_s2 + $0x38] sm:$0xf0]  ;;  %1507 = vmatpush.bf16.msrb.mxu1 %v3280_v13  ;;  %v3440_v9 = vor.u32 %v3784_v59, %v3439_v54 }
 0x285   : > { %v3228_v43 = vor.u32 %v3711_v36, %v3225_v27  ;;  %v853_v23 = vld [vmem:[#allocation2 + $0x18] sm:$0xff]  ;;  %v3201_v36 = vld [vmem:[%s5288_s2 + $0x8] sm:$0xf0]  ;;  %v3721_v27 = vld [vmem:[%s5288_s2 + $0x84] sm:$0xf] }
 0x286   : > { %v835_v35 = vsub.f32 %v3036_v16, %v834_v31  ;;  %1487 = vmatpush.bf16.msrb.mxu0 %v3224_v49  ;;  %v3271_v31 = vld [vmem:[%s5288_s2 + $0x90] sm:$0xf]  ;;  %v3204_v50 = vor.u32 %v3705_v33, %v3201_v36  ;;  %v3268_v56 = vor.u32 %v3721_v27, %v3265_v37  ;;  %v3425_v33 = vld [vmem:[%s5288_s2 + $0x258] sm:$0xf0]  ;;  %v3795_v37 = vld [vmem:[%s5288_s2 + $0x2d4] sm:$0xf] }
 0x287   : > { %1525 = vmatpush.bf16.msrb.mxu2 %v3228_v43  ;;  %v3276_v43 = vor.u32 %v3723_v22, %v3273_v25  ;;  %v3272_v49 = vor.u32 %v3724_v32, %v3271_v31  ;;  %v3495_v22 = vld [vmem:[%s5288_s2 + $0x2e0] sm:$0xf]  ;;  %v3798_v25 = vld [vmem:[%s5288_s2 + $0x2e4] sm:$0xf0]  ;;  %v3428_v27 = vor.u32 %v3779_v26, %v3425_v33 }
 0x288   : > { %837 = vst.msk [vmem:[#allocation6 + $0x1] ss:$8 sm:$0x3] %vm4450_vm8, %v835_v35  ;;  %v856_v35 = vld [vmem:[#allocation2 + $0x30] sm:$0xff]  ;;  %v3496_v32 = vor.u32 %v3798_v25, %v3495_v22 }
 0x289   : > { %1546 = vmatpush.bf16.msrb.mxu3 %v3276_v43  ;;  %1508 = vmatpush.bf16.msrb.mxu1 %v3272_v49  ;;  %v3780_v43 = vld [vmem:[%s5288_s2 + $0x254] sm:$0xf0]  ;;  %v3471_v22 = vld [vmem:[%s5288_s2 + $0x2b0] sm:$0xf] }
 0x28a   : > { %1488 = vmatpush.bf16.msrb.mxu0 %v3216_v12 }
 0x28b   : > { %v839_v38 = vld [vmem:[#allocation6] ss:$8 sm:$0x3]  ;;  %1526 = vmatpush.bf16.msrb.mxu2 %v3220_v8  ;;  %v3508_v8 = vor.u32 %v3799_v52, %v3505_v53 }
 0x28c   : > { %v4553_v39 = vperm.slane %v839_v38, 0  ;;  %v4555_v51 = vperm.slane %v839_v38, 1  ;;  %v3441_v38 = vld [vmem:[%s5288_s2 + $0x278] sm:$0xf0] }
 0x28d   : > { %1547 = vmatpush.bf16.msrb.mxu3 %v3268_v56  ;;  %v3793_v56 = vld [vmem:[%s5288_s2 + $0x2c4] sm:$0xf] }
 0x28e   : > { %v924_v1 = vmul.f32 %v4553_v39, %v849_v40  ;;  %v926_v2 = vmul.f32 %v4553_v39, %v851_v41  ;;  %v925_v3 = vmul.f32 %v4555_v51, %v850_v42  ;;  %v927_v4 = vmul.f32 %v4555_v51, %v852_v47  ;;  %v3199_v40 = vld [vmem:[%s5288_s2] sm:$0xf]  ;;  %v3706_v41 = vld [vmem:[%s5288_s2 + $0x4] sm:$0xf0]  ;;  %1489 = vmatpush.bf16.msrb.mxu0 %v3208_v44  ;;  %v3487_v44 = vld [vmem:[%s5288_s2 + $0x2d0] sm:$0xf] }
 0x28f   : > { %v841_v63 = vld [vmem:[#allocation6 + $0x1] ss:$8 sm:$0x3]  ;;  %1527 = vmatpush.bf16.msrb.mxu2 %v3212_v0  ;;  %v3263_v42 = vld [vmem:[%s5288_s2 + $0x80] sm:$0xf]  ;;  %v928_v47 = vmul.f32 %v4553_v39, %v853_v23  ;;  %v930_v48 = vmul.f32 %v4553_v39, %v855_v24  ;;  %v929_v55 = vmul.f32 %v4555_v51, %v854_v30  ;;  %v3200_v57 = vor.u32 %v3706_v41, %v3199_v40 }
 0x290   : > { %v4588_v6 = vperm.slane %v841_v63, 0  ;;  %v4590_v7 = vperm.slane %v841_v63, 1  ;;  %v931_v62 = vmul.f32 %v4555_v51, %v856_v35  ;;  %v3264_v63 = vor.u32 %v3722_v45, %v3263_v42  ;;  %v847_v23 = vld [vmem:[#allocation2 + $0x20] sm:$0xff]  ;;  %v3489_v40 = vld [vmem:[%s5288_s2 + $0x2d8] sm:$0xf0] }
 0x291   : > { %v848_v30 = vld [vmem:[#allocation2] sm:$0xff]  ;;  %v922_v41 = vmul.f32 %v4553_v39, %v847_v23  ;;  %v3423_v42 = vld [vmem:[%s5288_s2 + $0x250] sm:$0xf]  ;;  %v3492_v54 = vor.u32 %v3795_v37, %v3489_v40  ;;  %v3465_v40 = vld [vmem:[%s5288_s2 + $0x2a8] sm:$0xf0] }
 0x292   : > { %v939_v14 = vadd.f32 %v4588_v6, %v924_v1  ;;  %v941_v15 = vadd.f32 %v4588_v6, %v926_v2  ;;  %v940_v16 = vadd.f32 %v4590_v7, %v925_v3  ;;  %v942_v17 = vadd.f32 %v4590_v7, %v927_v4  ;;  %v3800_v2 = vld [vmem:[%s5288_s2 + $0x2f4] sm:$0xf0]  ;;  %v3781_v3 = vld [vmem:[%s5288_s2 + $0x264] sm:$0xf]  ;;  %1490 = vmatpush.bf16.msrb.mxu0 %v3200_v57 }
 0x293   : > { %1528 = vmatpush.bf16.msrb.mxu2 %v3204_v50  ;;  %v3444_v1 = vor.u32 %v3783_v46, %v3441_v38  ;;  %v943_v4 = vadd.f32 %v4588_v6, %v928_v47  ;;  %v945_v5 = vadd.f32 %v4588_v6, %v930_v48  ;;  %v944_v12 = vadd.f32 %v4590_v7, %v929_v55  ;;  %v3796_v46 = vld [vmem:[%s5288_s2 + $0x2d4] sm:$0xf0]  ;;  %v3777_v38 = vld [vmem:[%s5288_s2 + $0x244] sm:$0xf]  ;;  %v3417_v47 = vld [vmem:[%s5288_s2 + $0x248] sm:$0xf0] }
 0x294   : > { %v4602_v18 = vmax.f32 %v939_v14, 0.0  ;;  %v4604_v19 = vmax.f32 %v941_v15, 0.0  ;;  %v4606_v20 = vmax.f32 %v940_v16, 0.0  ;;  %v4608_v21 = vmax.f32 %v942_v17, 0.0  ;;  %v3497_v15 = vld [vmem:[%s5288_s2 + $0x2e8] sm:$0xf0]  ;;  %1509 = vmatpush.bf16.msrb.mxu1 %v3264_v63 }
 0x295   : > { %v946_v13 = vadd.f32 %v4590_v7, %v931_v62  ;;  %v3504_v0 = vor.u32 %v3800_v2, %v3503_v60  ;;  %v3436_v14 = vor.u32 %v3781_v3, %v3433_v10  ;;  %v3431_v16 = vld [vmem:[%s5288_s2 + $0x260] sm:$0xf]  ;;  %v3782_v17 = vld [vmem:[%s5288_s2 + $0x264] sm:$0xf0]  ;;  %v3500_v24 = vor.u32 %v3797_v11, %v3497_v15  ;;  %v858_v50 = vld [vmem:[#allocation2 + $0x58] sm:$0xff] }
 0x296   : > { %v1050_v29 = vpack.c.bf16 %v4604_v19, %v4602_v18  ;;  %v1051_v34 = vpack.c.bf16 %v4608_v21, %v4606_v20  ;;  %v4715_v28 = vmax.f32 %v943_v4, 0.0  ;;  %v3432_v31 = vor.u32 %v3782_v17, %v3431_v16  ;;  %v3415_v62 = vld [vmem:[%s5288_s2 + $0x240] sm:$0xf]  ;;  %v3778_v63 = vld [vmem:[%s5288_s2 + $0x244] sm:$0xf0] }
 0x297   : > { %v4722_v35 = vmax.f32 %v944_v12, 0.0  ;;  %v4724_v36 = vmax.f32 %v946_v13, 0.0  ;;  %v923_v45 = vmul.f32 %v4555_v51, %v848_v30  ;;  %v937_v48 = vadd.f32 %v4588_v6, %v922_v41  ;;  %v3479_v3 = vld [vmem:[%s5288_s2 + $0x2c0] sm:$0xf]  ;;  %v3794_v4 = vld [vmem:[%s5288_s2 + $0x2c4] sm:$0xf0] }
 0x298   : > { %1255 = vmatmul.bf16.vlgmr.msra.gmra.mxu0 %v1050_v29  ;;  %1293 = vmatmul.bf16.vlgmr.msra.gmra.mxu2 %v1050_v29  ;;  %v4717_v29 = vmax.f32 %v945_v5, 0.0  ;;  %v3424_v55 = vor.u32 %v3780_v43, %v3423_v42  ;;  %v3488_v59 = vor.u32 %v3796_v46, %v3487_v44  ;;  %v3420_v60 = vor.u32 %v3777_v38, %v3417_v47  ;;  %v3473_v13 = vld [vmem:[%s5288_s2 + $0x2b8] sm:$0xf0]  ;;  %v3407_v16 = vld [vmem:[%s5288_s2 + $0x230] sm:$0xf] }
 0x299   : > { %1274 = vmatmul.bf16.vlgmr.msra.gmra.mxu1 %v1051_v34  ;;  %1312 = vmatmul.bf16.vlgmr.msra.gmra.mxu3 %v1051_v34  ;;  %v857_v34 = vld [vmem:[#allocation2 + $0x48] sm:$0xff]  ;;  %v938_v53 = vadd.f32 %v4590_v7, %v923_v45  ;;  %v1053_v57 = vpack.c.bf16 %v4724_v36, %v4722_v35  ;;  %v4775_v2 = vshrl.u32 %v693_v61, 7  ;;  %v1560_v5 = vmul.f32 %v4555_v51, %v858_v50  ;;  %v3775_v61 = vld [vmem:[%s5288_s2 + $0x234] sm:$0xf]  ;;  %v3776_v17 = vld [vmem:[%s5288_s2 + $0x234] sm:$0xf0] }
 0x29a   : > { %1849 = vmatpush.bf16.msra.mxu2 %v3444_v1  ;;  %1868 = vmatpush.bf16.msra.mxu3 %v3508_v8  ;;  %v1559_v49 = vmul.f32 %v4553_v39, %v857_v34  ;;  %v1052_v52 = vpack.c.bf16 %v4717_v29, %v4715_v28  ;;  %v3481_v39 = vld [vmem:[%s5288_s2 + $0x2c8] sm:$0xf0]  ;;  %v981_v8 = vrot.slane %v4602_v18, 7  ;;  %v3416_v12 = vor.u32 %v3778_v63, %v3415_v62  ;;  %v3791_v51 = vld [vmem:[%s5288_s2 + $0x2b4] sm:$0xf] }
 0x29b   : > { %1811 = vmatpush.bf16.msra.mxu0 %v3440_v9  ;;  %1830 = vmatpush.bf16.msra.mxu1 %v3504_v0  ;;  %v3409_v9 = vld [vmem:[%s5288_s2 + $0x238] sm:$0xf0]  ;;  %v948_v10 = vmax.f32 %v938_v53, 0.0  ;;  %v3484_v11 = vor.u32 %v3793_v56, %v3481_v39  ;;  %v4798_v0 = vadd.f32 %v1560_v5, %v4590_v7  ;;  %v3792_v7 = vld [vmem:[%s5288_s2 + $0x2b4] sm:$0xf0]  ;;  %v986_v25 = vrot.slane %v4604_v19, 7 }
 0x29c   : > { %v4772_v1 = vadd.f32 %v1559_v49, %v4588_v6  ;;  %v947_v6 = vmax.f32 %v937_v48, 0.0  ;;  %v3412_v15 = vor.u32 %v3775_v61, %v3409_v9  ;;  %v3773_v23 = vld [vmem:[%s5288_s2 + $0x224] sm:$0xf]  ;;  %v984_v26 = vrot.slane %v4606_v20, 7  ;;  %v3399_v43 = vld [vmem:[%s5288_s2 + $0x220] sm:$0xf] }
 0x29d   : > { %v988_v30 = vrot.slane %v4608_v21, 7  ;;  %v983_v33 = vrot.slane %v948_v10, 7  ;;  %v3476_v34 = vor.u32 %v3791_v51, %v3473_v13  ;;  %v3789_v37 = vld [vmem:[%s5288_s2 + $0x2a4] sm:$0xf]  ;;  %v3472_v41 = vor.u32 %v3792_v7, %v3471_v22  ;;  %v3774_v44 = vld [vmem:[%s5288_s2 + $0x224] sm:$0xf0] }
 0x29e   : > { %1850 = vmatpush.bf16.msra.mxu2 %v3436_v14  ;;  %1869 = vmatpush.bf16.msra.mxu3 %v3500_v24  ;;  %v3480_v14 = vor.u32 %v3794_v4, %v3479_v3  ;;  %v3401_v24 = vld [vmem:[%s5288_s2 + $0x228] sm:$0xf0]  ;;  %v3463_v45 = vld [vmem:[%s5288_s2 + $0x2a0] sm:$0xf]  ;;  %v3790_v46 = vld [vmem:[%s5288_s2 + $0x2a4] sm:$0xf0]  ;;  %v987_v48 = vsel %vm701_vm3, %v981_v8, %v986_v25  ;;  %v3468_v50 = vor.u32 %v3789_v37, %v3465_v40 }
 0x29f   : > { %1812 = vmatpush.bf16.msra.mxu0 %v3432_v31  ;;  %1831 = vmatpush.bf16.msra.mxu1 %v3496_v32  ;;  %v873_v31 = vand.u32 15, %v4775_v2  ;;  %v980_v32 = vrot.slane %v947_v6, 7  ;;  %v3404_v42 = vor.u32 %v3773_v23, %v3401_v24  ;;  %v3771_v38 = vld [vmem:[%s5288_s2 + $0x214] sm:$0xf]  ;;  %v3393_v47 = vld [vmem:[%s5288_s2 + $0x218] sm:$0xf0]  ;;  %v3464_v56 = vor.u32 %v3790_v46, %v3463_v45 }
 0x2a0   : > { %v3787_v53 = vld [vmem:[%s5288_s2 + $0x294] sm:$0xf]  ;;  %v3455_v39 = vld [vmem:[%s5288_s2 + $0x290] sm:$0xf]  ;;  %v985_v62 = vsel %vm701_vm3, %v983_v33, %v984_v26  ;;  %v989_v63 = vsel %vm701_vm3, %v984_v26, %v988_v30  ;;  %v3788_v3 = vld [vmem:[%s5288_s2 + $0x294] sm:$0xf0] }
 0x2a1   : > { %vm4849_vm10 = vcmp.gt.s32.totalorder %v873_v31, 0  ;;  %v3769_v4 = vld [vmem:[%s5288_s2 + $0x204] sm:$0xf]  ;;  %v3385_v5 = vld [vmem:[%s5288_s2 + $0x208] sm:$0xf0]  ;;  %v862_v22 = vadd.s32 16, %v4775_v2 }
 0x2a2   : > { %1851 = vmatpush.bf16.msra.mxu2 %v3428_v27  ;;  %1870 = vmatpush.bf16.msra.mxu3 %v3492_v54  ;;  %v3408_v27 = vor.u32 %v3776_v17, %v3407_v16  ;;  %v3457_v54 = vld [vmem:[%s5288_s2 + $0x298] sm:$0xf0]  ;;  %vm4885_vm12 = vmpackc.low %vm3902_vm11, %vm4849_vm10  ;;  %v3785_v10 = vld [vmem:[%s5288_s2 + $0x284] sm:$0xf]  ;;  %v3388_v51 = vor.u32 %v3769_v4, %v3385_v5  ;;  %v990_v31 = vrot.slane %v4715_v28, 7  ;;  %v992_v33 = vrot.slane %v4722_v35, 7 }
 0x2a3   : > { %1813 = vmatpush.bf16.msra.mxu0 %v3424_v55  ;;  %1832 = vmatpush.bf16.msra.mxu1 %v3488_v59  ;;  %v982_v55 = vsel %vm701_vm3, %v980_v32, %v981_v8  ;;  %v3391_v59 = vld [vmem:[%s5288_s2 + $0x210] sm:$0xf]  ;;  %v3460_v61 = vor.u32 %v3787_v53, %v3457_v54  ;;  %v3449_v13 = vld [vmem:[%s5288_s2 + $0x288] sm:$0xf0]  ;;  %v3447_v16 = vld [vmem:[%s5288_s2 + $0x280] sm:$0xf] }
 0x2a4   : > { %v3326_v6 = vpack.c.bf16 %v987_v48, %v982_v55  ;;  %v3786_v17 = vld [vmem:[%s5288_s2 + $0x284] sm:$0xf0]  ;;  %v3452_v7 = vor.u32 %v3785_v10, %v3449_v13  ;;  %v887_v26 = vand.u32 15, %v862_v22  ;;  %v994_v32 = vrot.slane %v4717_v29, 7 }
 0x2a5   : > { %v3448_v24 = vor.u32 %v3786_v17, %v3447_v16  ;;  %v993_v40 = vsel %vm701_vm3, %v988_v30, %v992_v33  ;;  %v1581_v46 = vrot.slane %v4604_v19, 1  ;;  %v1583_v30 = vrot.slane %v4606_v20, 1 }
 0x2a6   : > { %1852 = vmatpush.bf16.msra.mxu2 %v3420_v60  ;;  %1871 = vmatpush.bf16.msra.mxu3 %v3484_v11  ;;  %v3772_v60 = vld [vmem:[%s5288_s2 + $0x214] sm:$0xf0]  ;;  %v3332_v11 = vpack.c.bf16 %v989_v63, %v985_v62  ;;  %vm959_vm13 = vcmp.gt.s32.totalorder %v887_v26, 0  ;;  %v995_v37 = vsel %vm701_vm3, %v990_v31, %v994_v32  ;;  %v1588_v48 = vrot.slane %v4722_v35, 1 }
 0x2a7   : > { %1814 = vmatpush.bf16.msra.mxu0 %v3416_v12  ;;  %1833 = vmatpush.bf16.msra.mxu1 %v3480_v14  ;;  %v3392_v9 = vor.u32 %v3772_v60, %v3391_v59  ;;  %v3456_v12 = vor.u32 %v3788_v3, %v3455_v39  ;;  %v3383_v14 = vld [vmem:[%s5288_s2 + $0x200] sm:$0xf]  ;;  %vm3328_vm14 = vmpackc.low %vm3902_vm11, %vm959_vm13  ;;  %v863_v20 = vadd.s32 24, %v4775_v2  ;;  %v1564_v35 = vmax.f32 %v4798_v0, 0.0 }
 0x2a8   : > { %1260 = vmatmul.bf16.gmra.mxu0 %v1052_v52  ;;  %1298 = vmatmul.bf16.gmra.mxu2 %v1052_v52  ;;  %v3400_v52 = vor.u32 %v3774_v44, %v3399_v43  ;;  %v861_v44 = vadd.s32 8, %v4775_v2  ;;  %v1590_v54 = vrot.slane %v4717_v29, 1 }
 0x2a9   : > { %1279 = vmatmul.bf16.gmra.mxu1 %v1053_v57  ;;  %1317 = vmatmul.bf16.gmra.mxu3 %v1053_v57  ;;  %v3396_v57 = vor.u32 %v3771_v38, %v3393_v47  ;;  %v1586_v38 = vrot.slane %v4715_v28, 1  ;;  %v1584_v47 = vrot.slane %v4608_v21, 1  ;;  %v1563_v21 = vmax.f32 %v4772_v1, 0.0 }
 0x2aa   : > { %1853 = vmatpush.bf16.msra.mxu2 %v3412_v15  ;;  %1872 = vmatpush.bf16.msra.mxu3 %v3476_v34  ;;  %v3770_v15 = vld [vmem:[%s5288_s2 + $0x204] sm:$0xf0]  ;;  %v996_v34 = vrot.slane %v4724_v36, 7  ;;  %v880_v45 = vand.u32 15, %v861_v44  ;;  %v894_v53 = vand.u32 15, %v863_v20 }
 0x2ab   : > { %1815 = vmatpush.bf16.msra.mxu0 %v3408_v27  ;;  %1834 = vmatpush.bf16.msra.mxu1 %v3472_v41  ;;  %v3384_v23 = vor.u32 %v3770_v15, %v3383_v14  ;;  %v991_v27 = vsel %vm701_vm3, %v986_v25, %v990_v31  ;;  %v1580_v25 = vrot.slane %v4602_v18, 1  ;;  %v1589_v18 = vsel %vm1579_vm15, %v1584_v47, %v1588_v48 }
 0x2ac   : > { %v997_v41 = vsel %vm701_vm3, %v992_v33, %v996_v34  ;;  %vm1566_vm0 = vcmp.lt.s32.totalorder %v880_v45, 15  ;;  %v1594_v55 = vrot.slane %v1563_v21, 1  ;;  %vm1568_vm2 = vcmp.lt.s32.totalorder %v894_v53, 15 }
 0x2ad   : > { %v3335_v43 = vpack.c.bf16 %v997_v41, %v993_v40  ;;  %v1582_v49 = vsel %vm1579_vm15, %v1580_v25, %v1581_v46  ;;  %vm3509_vm1 = vmpackc.low %vm1566_vm0, %vm3902_vm11  ;;  %v1591_v59 = vsel %vm1579_vm15, %v1586_v38, %v1590_v54 }
 0x2ae   : > { %1854 = vmatpush.bf16.msra.mxu2 %v3404_v42  ;;  %1873 = vmatpush.bf16.msra.mxu3 %v3468_v50  ;;  %v3329_v42 = vpack.c.bf16 %v995_v37, %v991_v27  ;;  %v1587_v50 = vsel %vm1579_vm15, %v1581_v46, %v1586_v38  ;;  %v1595_v60 = vsel %vm1579_vm15, %v1590_v54, %v1594_v55  ;;  %vm3512_vm4 = vmpackc.low %vm1568_vm2, %vm3902_vm11 }
 0x2af   : > { %1816 = vmatpush.bf16.msra.mxu0 %v3400_v52  ;;  %1835 = vmatpush.bf16.msra.mxu1 %v3464_v56  ;;  %v1585_v52 = vsel %vm1579_vm15, %v1583_v30, %v1584_v47  ;;  %v3510_v19 = vpack.c.bf16 %v1587_v50, %v1582_v49  ;;  %v1592_v56 = vrot.slane %v4724_v36, 1  ;;  %v3513_v1 = vpack.c.bf16 %v1595_v60, %v1591_v59 }
 0x2b0   : > { %v3516_v28 = vpack.c.bf16 %v1589_v18, %v1585_v52 }
 0x2b1   : > { %v1593_v39 = vsel %vm1579_vm15, %v1588_v48, %v1592_v56 }
 0x2b2   : > { %1855 = vmatpush.bf16.msra.mxu2 %v3396_v57  ;;  %1874 = vmatpush.bf16.msra.mxu3 %v3460_v61  ;;  %v1596_v57 = vrot.slane %v1564_v35, 1 }
 0x2b3   : > { %1817 = vmatpush.bf16.msra.mxu0 %v3392_v9  ;;  %1836 = vmatpush.bf16.msra.mxu1 %v3456_v12 }
 0x2b4   : > { %v1597_v2 = vsel %vm1579_vm15, %v1592_v56, %v1596_v57 }
 0x2b5   : > { %v3519_v0 = vpack.c.bf16 %v1597_v2, %v1593_v39 }
 0x2b6   : > { %1856 = vmatpush.bf16.msra.mxu2 %v3388_v51  ;;  %1875 = vmatpush.bf16.msra.mxu3 %v3452_v7 }
 0x2b7   : > { %1818 = vmatpush.bf16.msra.mxu0 %v3384_v23  ;;  %1837 = vmatpush.bf16.msra.mxu1 %v3448_v24 }
 0x2b8   : > { %3327 = vmatmul.msk.bf16.vlgmr.msrb.gmra.mxu0 %vm4885_vm12, %v3326_v6  ;;  %3339 = vmatmul.msk.bf16.vlgmr.msrb.gmra.mxu2 %vm4885_vm12, %v3326_v6 }
 0x2b9   : > { %3333 = vmatmul.msk.bf16.vlgmr.msrb.gmra.mxu1 %vm4885_vm12, %v3332_v11  ;;  %3345 = vmatmul.msk.bf16.vlgmr.msrb.gmra.mxu3 %vm4885_vm12, %v3332_v11 }
 0x2c8   : > { %3330 = vmatmul.msk.bf16.gmra.mxu0 %vm3328_vm14, %v3329_v42  ;;  %3342 = vmatmul.msk.bf16.gmra.mxu2 %vm3328_vm14, %v3329_v42 }
 0x2c9   : > { %3336 = vmatmul.msk.bf16.gmra.mxu1 %vm3328_vm14, %v3335_v43  ;;  %3348 = vmatmul.msk.bf16.gmra.mxu3 %vm3328_vm14, %v3335_v43 }
 0x2d8   : > { %3511 = vmatmul.msk.bf16.vlgmr.msra.gmra.mxu0 %vm3509_vm1, %v3510_v19  ;;  %3523 = vmatmul.msk.bf16.vlgmr.msra.gmra.mxu2 %vm3509_vm1, %v3510_v19 }
 0x2d9   : > { %3517 = vmatmul.msk.bf16.vlgmr.msra.gmra.mxu1 %vm3509_vm1, %v3516_v28  ;;  %3529 = vmatmul.msk.bf16.vlgmr.msra.gmra.mxu3 %vm3509_vm1, %v3516_v28 }
 0x2e8   : > { %3514 = vmatmul.msk.bf16.gmra.mxu0 %vm3512_vm4, %v3513_v1  ;;  %3526 = vmatmul.msk.bf16.gmra.mxu2 %vm3512_vm4, %v3513_v1 }
 0x2e9   : > { %3520 = vmatmul.msk.bf16.gmra.mxu1 %vm3512_vm4, %v3519_v0  ;;  %3532 = vmatmul.msk.bf16.gmra.mxu3 %vm3512_vm4, %v3519_v0 }
 0x315   : > { %v1256_v29 = vpop.f32.mrf.mxu0 }
 0x316   : > { %v1275_v36 = vpop.f32.mrf.mxu1 }
 0x317   : > { %v1276_v43 = vadd.f32 %v1275_v36, %v1256_v29 }
 0x31b   : > { %v1294_v62 = vpop.f32.mrf.mxu2 }
 0x31c   : > { %v1313_v63 = vpop.f32.mrf.mxu3 }
 0x31d   : > { %v1258_v3 = vpop.f32.mrf.mxu0  ;;  %v1314_v44 = vadd.f32 %v1313_v63, %v1294_v62 }
 0x31e   : > { %v1277_v4 = vpop.f32.mrf.mxu1 }
 0x31f   : > { %v1278_v18 = vadd.f32 %v1277_v4, %v1258_v3 }
 0x323   : > { %v1296_v5 = vpop.f32.mrf.mxu2 }
 0x324   : > { %v1315_v8 = vpop.f32.mrf.mxu3 }
 0x325   : > { %v1261_v6 = vpop.f32.mrf.mxu0  ;;  %v1316_v19 = vadd.f32 %v1315_v8, %v1296_v5 }
 0x326   : > { %v1280_v61 = vpop.f32.mrf.mxu1 }
 0x327   : > { %v1281_v54 = vadd.f32 %v1280_v61, %v1261_v6 }
 0x32b   : > { %v1299_v9 = vpop.f32.mrf.mxu2 }
 0x32c   : > { %v1318_v10 = vpop.f32.mrf.mxu3 }
 0x32d   : > { %v1263_v11 = vpop.f32.mrf.mxu0  ;;  %v1319_v29 = vadd.f32 %v1318_v10, %v1299_v9 }
 0x32e   : > { %v1282_v12 = vpop.f32.mrf.mxu1 }
 0x32f   : > { %v1283_v3 = vadd.f32 %v1282_v12, %v1263_v11 }
 0x333   : > { %v4951_v51 = vpop.f32.mrf.mxu2 }
 0x334   : > { %v4953_v13 = vpop.f32.mrf.mxu3 }
 0x335   : > { %v1492_v14 = vpop.f32.mrf.mxu0 }
 0x336   : > { %v1511_v15 = vpop.f32.mrf.mxu1  ;;  %v1493_v45 = vadd.f32 %v1492_v14, %v1276_v43 }
 0x338   : > { %v1512_v47 = vadd.f32 %v1511_v15, %v1493_v45 }
 0x33b   : > { %v1530_v16 = vpop.f32.mrf.mxu2 }
 0x33c   : > { %v1549_v17 = vpop.f32.mrf.mxu3  ;;  %v1531_v25 = vadd.f32 %v1530_v16, %v1314_v44 }
 0x33d   : > { %v1494_v22 = vpop.f32.mrf.mxu0 }
 0x33e   : > { %v1513_v7 = vpop.f32.mrf.mxu1  ;;  %v1550_v48 = vadd.f32 %v1549_v17, %v1531_v25  ;;  %v1495_v21 = vadd.f32 %v1494_v22, %v1278_v18 }
 0x340   : > { %v1514_v59 = vadd.f32 %v1513_v7, %v1495_v21 }
 0x343   : > { %v1532_v23 = vpop.f32.mrf.mxu2 }
 0x344   : > { %v1551_v24 = vpop.f32.mrf.mxu3  ;;  %v1533_v35 = vadd.f32 %v1532_v23, %v1316_v19  ;;  %v1321_v23 = vadd.f32 %v4953_v13, %v4951_v51 }
 0x345   : > { %v1497_v26 = vpop.f32.mrf.mxu0 }
 0x346   : > { %v1516_v31 = vpop.f32.mrf.mxu1  ;;  %v1552_v60 = vadd.f32 %v1551_v24, %v1533_v35  ;;  %v1498_v39 = vadd.f32 %v1497_v26, %v1281_v54 }
 0x348   : > { %v1517_v4 = vadd.f32 %v1516_v31, %v1498_v39 }
 0x34b   : > { %v1535_v32 = vpop.f32.mrf.mxu2 }
 0x34c   : > { %v1554_v33 = vpop.f32.mrf.mxu3  ;;  %v1536_v5 = vadd.f32 %v1535_v32, %v1319_v29 }
 0x34d   : > { %v1499_v34 = vpop.f32.mrf.mxu0 }
 0x34e   : > { %v1518_v27 = vpop.f32.mrf.mxu1  ;;  %v1500_v14 = vadd.f32 %v1499_v34, %v1283_v3  ;;  %v1555_v16 = vadd.f32 %v1554_v33, %v1536_v5 }
 0x350   : > { %v1519_v9 = vadd.f32 %v1518_v27, %v1500_v14  ;;  %v1906_v14 = vld [vmem:[#allocation5 + $0x2] ss:$8 sm:$0x3] }
 0x353   : > { %v1537_v37 = vpop.f32.mrf.mxu2 }
 0x354   : > { %v4955_v40 = vpop.f32.mrf.mxu3  ;;  %v1538_v32 = vadd.f32 %v1537_v37, %v1321_v23 }
 0x355   : > { %v1820_v41 = vpop.f32.mrf.mxu0 }
 0x356   : > { %v1839_v42 = vpop.f32.mrf.mxu1 }
 0x357   : > { %v1840_v46 = vadd.f32 %v1839_v42, %v1820_v41 }
 0x359   : > { %v1887_v28 = vadd.f32 %v1840_v46, %v1512_v47  ;;  %v1557_v46 = vadd.f32 %v4955_v40, %v1538_v32 }
 0x35b   : > { %v1858_v38 = vpop.f32.mrf.mxu2  ;;  %v1939_v10 = vmul.f32 %v1887_v28, %v1887_v28 }
 0x35c   : > { %v1877_v30 = vpop.f32.mrf.mxu3 }
 0x35d   : > { %v1878_v49 = vadd.f32 %v1877_v30, %v1858_v38  ;;  %v1822_v50 = vpop.f32.mrf.mxu0 }
 0x35e   : > { %v1841_v52 = vpop.f32.mrf.mxu1 }
 0x35f   : > { %v1888_v20 = vadd.f32 %v1878_v49, %v1550_v48  ;;  %v1842_v55 = vadd.f32 %v1841_v52, %v1822_v50 }
 0x361   : > { %v1895_v53 = vpack.c.bf16 %v1888_v20, %v1887_v28  ;;  %v1889_v36 = vadd.f32 %v1842_v55, %v1514_v59  ;;  %v1940_v48 = vmul.f32 %v1888_v20, %v1888_v20 }
 0x363   : > { %1901 = vst [vmem:[#allocation4 + $0x8] sm:$0xff] %v1895_v53  ;;  %v1860_v56 = vpop.f32.mrf.mxu2  ;;  %v1941_v17 = vmul.f32 %v1889_v36, %v1889_v36  ;;  %v1907_v26 = vadd.f32 %v1889_v36, %v1887_v28 }
 0x364   : > { %v1879_v57 = vpop.f32.mrf.mxu3 }
 0x365   : > { %v1880_v2 = vadd.f32 %v1879_v57, %v1860_v56  ;;  %v1825_v1 = vpop.f32.mrf.mxu0  ;;  %v1947_v34 = vadd.f32 %v1941_v17, %v1939_v10 }
 0x366   : > { %v1844_v0 = vpop.f32.mrf.mxu1 }
 0x367   : > { %v1890_v62 = vadd.f32 %v1880_v2, %v1552_v60  ;;  %v1845_v63 = vadd.f32 %v1844_v0, %v1825_v1 }
 0x369   : > { %v1896_v8 = vpack.c.bf16 %v1890_v62, %v1889_v36  ;;  %v1891_v6 = vadd.f32 %v1845_v63, %v1517_v4  ;;  %v1942_v51 = vmul.f32 %v1890_v62, %v1890_v62  ;;  %v1916_v27 = vadd.f32 %v1890_v62, %v1888_v20 }
 0x36b   : > { %1902 = vst [vmem:[#allocation4 + $0x10] sm:$0xff] %v1896_v8  ;;  %v1863_v61 = vpop.f32.mrf.mxu2  ;;  %v1943_v11 = vmul.f32 %v1891_v6, %v1891_v6  ;;  %v1908_v41 = vadd.f32 %v1907_v26, %v1891_v6  ;;  %v1956_v19 = vadd.f32 %v1942_v51, %v1940_v48 }
 0x36c   : > { %v1882_v15 = vpop.f32.mrf.mxu3 }
 0x36d   : > { %v1883_v22 = vadd.f32 %v1882_v15, %v1863_v61  ;;  %v1827_v7 = vpop.f32.mrf.mxu0  ;;  %v1948_v44 = vadd.f32 %v1947_v34, %v1943_v11 }
 0x36e   : > { %v1846_v24 = vpop.f32.mrf.mxu1 }
 0x36f   : > { %v1892_v12 = vadd.f32 %v1883_v22, %v1555_v16  ;;  %v1847_v31 = vadd.f32 %v1846_v24, %v1827_v7  ;;  %v1938_v22 = vld [vmem:[#allocation5 + $0x3] ss:$8 sm:$0x3] }
 0x371   : > { %v1897_v42 = vpack.c.bf16 %v1892_v12, %v1891_v6  ;;  %v1893_v43 = vadd.f32 %v1847_v31, %v1519_v9  ;;  %v1944_v49 = vmul.f32 %v1892_v12, %v1892_v12  ;;  %v1917_v37 = vadd.f32 %v1916_v27, %v1892_v12 }
 0x373   : > { %1903 = vst [vmem:[#allocation4] sm:$0xff] %v1897_v42  ;;  %v1909_v33 = vadd.f32 %v1908_v41, %v1893_v43  ;;  %v1945_v45 = vmul.f32 %v1893_v43, %v1893_v43  ;;  %v1865_v25 = vpop.f32.mrf.mxu2  ;;  %v1957_v35 = vadd.f32 %v1956_v19, %v1944_v49 }
 0x374   : > { %v1884_v13 = vpop.f32.mrf.mxu3 }
 0x375   : > { %v1910_v38 = vrot.slane %v1909_v33, 4  ;;  %v1949_v30 = vadd.f32 %v1948_v44, %v1945_v45  ;;  %v1885_v47 = vadd.f32 %v1884_v13, %v1865_v25 }
 0x377   : > { %v1911_v50 = vadd.f32 %v1910_v38, %v1909_v33  ;;  %v1950_v52 = vrot.slane %v1949_v30, 4  ;;  %v1894_v18 = vadd.f32 %v1885_v47, %v1557_v46 }
 0x379   : > { %v1898_v28 = vpack.c.bf16 %v1894_v18, %v1893_v43  ;;  %v1918_v21 = vadd.f32 %v1917_v37, %v1894_v18  ;;  %v1951_v53 = vadd.f32 %v1950_v52, %v1949_v30  ;;  %v1946_v54 = vmul.f32 %v1894_v18, %v1894_v18 }
 0x37a   : > { %v1912_v55 = vrot.slane %v1911_v50, 2 }
 0x37b   : > { %1904 = vst [vmem:[#allocation4 + $0x18] sm:$0xff] %v1898_v28  ;;  %v1919_v40 = vrot.slane %v1918_v21, 4  ;;  %v1958_v56 = vadd.f32 %v1957_v35, %v1946_v54  ;;  %v1952_v59 = vrot.slane %v1951_v53, 2 }
 0x37c   : > { %v1913_v39 = vadd.f32 %v1912_v55, %v1911_v50 }
 0x37d   : > { %v1920_v57 = vadd.f32 %v1919_v40, %v1918_v21  ;;  %v1959_v60 = vrot.slane %v1958_v56, 4  ;;  %v1953_v0 = vadd.f32 %v1952_v59, %v1951_v53 }
 0x37e   : > { %v1914_v36 = vrot.slane %v1913_v39, 1 }
 0x37f   : > { %v1921_v20 = vrot.slane %v1920_v57, 2  ;;  %v1960_v2 = vadd.f32 %v1959_v60, %v1958_v56  ;;  %v1954_v4 = vrot.slane %v1953_v0, 1 }
 0x380   : > { %v1915_v8 = vadd.f32 %v1914_v36, %v1913_v39 }
 0x381   : > { %v1922_v1 = vadd.f32 %v1921_v20, %v1920_v57  ;;  %v1961_v29 = vrot.slane %v1960_v2, 2  ;;  %v1955_v16 = vadd.f32 %v1954_v4, %v1953_v0 }
 0x383   : > { %v1923_v62 = vrot.slane %v1922_v1, 1  ;;  %v1962_v63 = vadd.f32 %v1961_v29, %v1960_v2 }
 0x385   : > { %v1924_v3 = vadd.f32 %v1923_v62, %v1922_v1  ;;  %v1963_v5 = vrot.slane %v1962_v63, 1 }
 0x387   : > { %v1927_v6 = vrot.slane %v1924_v3, 7  ;;  %v1964_v61 = vadd.f32 %v1963_v5, %v1962_v63 }
 0x389   : > { %v1928_v15 = vsel %vm701_vm3, %v1915_v8, %v1927_v6  ;;  %v1967_v7 = vrot.slane %v1964_v61, 7 }
 0x38a   : > { %v1930_v17 = vadd.f32 %v1928_v15, %v1906_v14 }
 0x38b   : > { %v1968_v23 = vsel %vm701_vm3, %v1955_v16, %v1967_v7 }
 0x38c   : > { %1935 = vst.msk [vmem:[#allocation5 + $0x2] ss:$8 sm:$0x3] %vm4450_vm8, %v1930_v17  ;;  %v1970_v9 = vadd.f32 %v1968_v23, %v1938_v22 }
 0x38e   : > { %1971 = vst.msk [vmem:[#allocation5 + $0x3] ss:$8 sm:$0x3] %vm4450_vm8, %v1970_v9 }
 0x38f PF: > { %p3533_p6 = scmp.ne.s32.totalorder %s3888_s18, 2 }
 0x390   : > { %s3903_s22 = smov (!%p3533_p6), 16   ;;  %s3904_s23 = smov (!%p3533_p6), 32  }
 0x391   : > { %1976 = sbr.rel (%p3533_p6) target bundleno = 1532 (0x5fc), region = 60  ;;  %s3905_s24 = smov (!%p3533_p6), 64  }
 0x396   : > { %v2048_v10 = vld [vmem:[#allocation5 + $0x3] ss:$8 sm:$0x3]  ;;  %v1982_v26 = vld [vmem:[#allocation5 + $0x2] ss:$8 sm:$0x3]  ;;  %v1992_v32 = vlaneseq }
 0x397   : > { %v2050_v24 = vperm.slane %v2048_v10, 0  ;;  %v1984_v11 = vperm.slane %v1982_v26, 0  ;;  %v2051_v12 = vperm.slane %v2048_v10, 1  ;;  %v1985_v31 = vperm.slane %v1982_v26, 1  ;;  %v3594_v8 = vld [vmem:[%s5289_s3 + $0x70] sm:$0xf] }
 0x398   : > { %v4968_v58 = vand.u32 127, %v1992_v32  ;;  %vm2000_vm5 = vcmask 1040384   ;;  %v3816_v14 = vld [vmem:[%s5289_s3 + $0x74] sm:$0xf0]  ;;  %v3658_v6 = vld [vmem:[%s5289_s3 + $0xf0] sm:$0xf] }
 0x399   : > { %2054 = vrot.lane.b32.xlu1 %v2050_v24, %s3903_s22  ;;  %1988 = vrot.lane.b32.xlu0 %v1984_v11, %s3903_s22  ;;  %v3595_v61 = vor.u32 %v3816_v14, %v3594_v8  ;;  %v3832_v15 = vld [vmem:[%s5289_s3 + $0xf4] sm:$0xf0]  ;;  %v3815_v16 = vld [vmem:[%s5289_s3 + $0x74] sm:$0xf]  ;;  %vm5197_vm11 = vcmp.lt.s32.totalorder %v1992_v32, 256 }
 0x39a   : > { %vm1994_vm3 = vcmp.lt.s32.totalorder %v4968_v58, 16  ;;  %vm2013_vm6 = vcmp.lt.s32.totalorder %v4968_v58, 32  ;;  %vm2031_vm7 = vcmp.lt.s32.totalorder %v4968_v58, 64  ;;  %v3596_v17 = vld [vmem:[%s5289_s3 + $0x78] sm:$0xf0]  ;;  %v3659_v7 = vor.u32 %v3832_v15, %v3658_v6  ;;  %v2150_v32 = vld [vmem:[#allocation4 + $0x10] sm:$0xff] }
 0x39b   : > { %v3599_v23 = vor.u32 %v3815_v16, %v3596_v17  ;;  %v3831_v9 = vld [vmem:[%s5289_s3 + $0xf4] sm:$0xf]  ;;  %2391 = vmatpush.bf16.msra.mxu0 %v3595_v61  ;;  %v3562_v14 = vld [vmem:[%s5289_s3 + $0x30] sm:$0xf]  ;;  %v3808_v6 = vld [vmem:[%s5289_s3 + $0x34] sm:$0xf0] }
 0x39c   : > { %2410 = vmatpush.bf16.msra.mxu1 %v3659_v7  ;;  %v3626_v61 = vld [vmem:[%s5289_s3 + $0xb0] sm:$0xf]  ;;  %v3563_v17 = vor.u32 %v3808_v6, %v3562_v14  ;;  %v3807_v7 = vld [vmem:[%s5289_s3 + $0x34] sm:$0xf] }
 0x39d   : > { %2429 = vmatpush.bf16.msra.mxu2 %v3599_v23  ;;  %v3535_v6 = vld [vmem:[%s5290_s4 + $0x3] ss:$8 sm:$0x3] }
 0x3a1   : > { %2056 = vrot.lane.b32.xlu1 %v2051_v12, %s3903_s22  ;;  %1990 = vrot.lane.b32.xlu0 %v1985_v31, %s3903_s22 }
 0x40b   : > { %v2055_v34 = vpop.permute.xlu1 %2054  ;;  %v1989_v41 = vpop.permute.xlu0 %1988 }
 0x413   : > { %v2057_v42 = vpop.permute.xlu1 %2056  ;;  %v1991_v44 = vpop.permute.xlu0 %1990 }
 0x414   : > { %v2058_v43 = vsel %vm1994_vm3, %v2055_v34, %v2057_v42  ;;  %v1995_v45 = vsel %vm1994_vm3, %v1989_v41, %v1991_v44  ;;  %v1996_v25 = vsel %vm1994_vm3, %v1991_v44, %v1989_v41  ;;  %v2059_v46 = vsel %vm1994_vm3, %v2057_v42, %v2055_v34  ;;  %v3586_v34 = vld [vmem:[%s5289_s3 + $0x60] sm:$0xf]  ;;  %v3814_v41 = vld [vmem:[%s5289_s3 + $0x64] sm:$0xf0] }
 0x415   : > { %v2062_v33 = vrot.slane %v2058_v43, 7  ;;  %v1999_v51 = vrot.slane %v1995_v45, 7  ;;  %v3650_v42 = vld [vmem:[%s5289_s3 + $0xe0] sm:$0xf]  ;;  %v3587_v44 = vor.u32 %v3814_v41, %v3586_v34  ;;  %v3813_v45 = vld [vmem:[%s5289_s3 + $0x64] sm:$0xf] }
 0x416   : > { %v3806_v34 = vld [vmem:[%s5289_s3 + $0x24] sm:$0xf0]  ;;  %v3618_v41 = vld [vmem:[%s5289_s3 + $0xa0] sm:$0xf] }
 0x417   : > { %v2063_v13 = vsel %vm2000_vm5, %v2059_v46, %v2062_v33  ;;  %v2001_v38 = vsel %vm2000_vm5, %v1996_v25, %v1999_v51  ;;  %v3830_v33 = vld [vmem:[%s5289_s3 + $0xe4] sm:$0xf0]  ;;  %v3588_v51 = vld [vmem:[%s5289_s3 + $0x68] sm:$0xf0]  ;;  %2392 = vmatpush.bf16.msra.mxu0 %v3587_v44  ;;  %v3805_v44 = vld [vmem:[%s5289_s3 + $0x24] sm:$0xf] }
 0x418   : > { %v2065_v27 = vadd.f32 %v2063_v13, %v2048_v10  ;;  %v2003_v30 = vadd.f32 %v2001_v38, %v1982_v26  ;;  %v3660_v10 = vld [vmem:[%s5289_s3 + $0xf8] sm:$0xf0]  ;;  %v3651_v46 = vor.u32 %v3830_v33, %v3650_v42  ;;  %v3829_v13 = vld [vmem:[%s5289_s3 + $0xe4] sm:$0xf]  ;;  %v3556_v33 = vld [vmem:[%s5289_s3 + $0x28] sm:$0xf0] }
 0x419   : > { %v3663_v11 = vor.u32 %v3831_v9, %v3660_v10  ;;  %v3564_v9 = vld [vmem:[%s5289_s3 + $0x38] sm:$0xf0]  ;;  %v3823_v10 = vld [vmem:[%s5289_s3 + $0xb4] sm:$0xf] }
 0x41a   : > { %v2068_v47 = vperm.slane %v2065_v27, 1  ;;  %v2067_v48 = vperm.slane %v2065_v27, 0  ;;  %v2005_v49 = vperm.slane %v2003_v30, 0  ;;  %v2006_v37 = vperm.slane %v2003_v30, 1  ;;  %2411 = vmatpush.bf16.msra.mxu1 %v3651_v46 }
 0x41b   : > { %2448 = vmatpush.bf16.msra.mxu3 %v3663_v11  ;;  %v3567_v11 = vor.u32 %v3807_v7, %v3564_v9  ;;  %v3559_v46 = vor.u32 %v3805_v44, %v3556_v33  ;;  %v2155_v7 = vunpack.c.l.bf16 %v2150_v32 }
 0x41c   : > { %2073 = vrot.lane.b32.xlu1 %v2068_v47, %s3904_s23  ;;  %2071 = vrot.lane.b32.xlu0 %v2067_v48, %s3904_s23  ;;  %v3591_v47 = vor.u32 %v3813_v45, %v3588_v51  ;;  %v3821_v51 = vld [vmem:[%s5289_s3 + $0xa4] sm:$0xf] }
 0x41d   : > { %2009 = vrot.lane.b32.xlu2 %v2005_v49, %s3904_s23  ;;  %v3578_v49 = vld [vmem:[%s5289_s3 + $0x50] sm:$0xf] }
 0x41e   : > { %2430 = vmatpush.bf16.msra.mxu2 %v3591_v47  ;;  %v3610_v47 = vld [vmem:[%s5289_s3 + $0x90] sm:$0xf] }
 0x425   : > { %2011 = vrot.lane.b32.xlu2 %v2006_v37, %s3904_s23  ;;  %v3812_v37 = vld [vmem:[%s5289_s3 + $0x54] sm:$0xf0] }
 0x477   : > { %v2010_v50 = vpop.permute.xlu2 %2009 }
 0x47f   : > { %v2012_v52 = vpop.permute.xlu2 %2011 }
 0x480   : > { %v2014_v18 = vsel %vm2013_vm6, %v2010_v50, %v2012_v52  ;;  %v2015_v28 = vsel %vm2013_vm6, %v2012_v52, %v2010_v50  ;;  %v3642_v50 = vld [vmem:[%s5289_s3 + $0xd0] sm:$0xf]  ;;  %v3579_v52 = vor.u32 %v3812_v37, %v3578_v49  ;;  %v3820_v49 = vld [vmem:[%s5289_s3 + $0x94] sm:$0xf0]  ;;  %v3803_v37 = vld [vmem:[%s5289_s3 + $0x14] sm:$0xf] }
 0x481   : > { %v2018_v19 = vrot.slane %v2014_v18, 7  ;;  %v3828_v18 = vld [vmem:[%s5289_s3 + $0xd4] sm:$0xf0] }
 0x482   : > { %2393 = vmatpush.bf16.msra.mxu0 %v3579_v52  ;;  %v3548_v52 = vld [vmem:[%s5289_s3 + $0x18] sm:$0xf0] }
 0x483   : > { %v2019_v21 = vsel %vm2000_vm5, %v2015_v28, %v2018_v19  ;;  %v3811_v19 = vld [vmem:[%s5289_s3 + $0x54] sm:$0xf]  ;;  %v3580_v28 = vld [vmem:[%s5289_s3 + $0x58] sm:$0xf0] }
 0x484   : > { %v2021_v35 = vadd.f32 %v2019_v21, %v2003_v30 }
 0x486   : > { %v2024_v53 = vperm.slane %v2021_v35, 1  ;;  %v2023_v54 = vperm.slane %v2021_v35, 0 }
 0x488   : > { %2029 = vrot.lane.b32.xlu0 %v2024_v53, %s3905_s24  ;;  %2027 = vrot.lane.b32.xlu2 %v2023_v54, %s3905_s24  ;;  %v3583_v53 = vor.u32 %v3811_v19, %v3580_v28  ;;  %v3827_v54 = vld [vmem:[%s5289_s3 + $0xd4] sm:$0xf]  ;;  %v3612_v19 = vld [vmem:[%s5289_s3 + $0x98] sm:$0xf0]  ;;  %v3551_v28 = vor.u32 %v3803_v37, %v3548_v52 }
 0x48a   : > { %2431 = vmatpush.bf16.msra.mxu2 %v3583_v53  ;;  %v3802_v53 = vld [vmem:[%s5289_s3 + $0x4] sm:$0xf0] }
 0x48e   : > { %v2074_v55 = vpop.permute.xlu1 %2073  ;;  %v2072_v40 = vpop.permute.xlu0 %2071 }
 0x48f   : > { %v2075_v56 = vsel %vm2013_vm6, %v2072_v40, %v2074_v55  ;;  %v2076_v59 = vsel %vm2013_vm6, %v2074_v55, %v2072_v40  ;;  %v3644_v55 = vld [vmem:[%s5289_s3 + $0xd8] sm:$0xf0] }
 0x490   : > { %v2079_v57 = vrot.slane %v2075_v56, 7  ;;  %v3647_v56 = vor.u32 %v3827_v54, %v3644_v55  ;;  %v3602_v54 = vld [vmem:[%s5289_s3 + $0x80] sm:$0xf]  ;;  %v3818_v55 = vld [vmem:[%s5289_s3 + $0x84] sm:$0xf0] }
 0x492   : > { %v2080_v60 = vsel %vm2000_vm5, %v2076_v59, %v2079_v57 }
 0x493   : > { %v2082_v39 = vadd.f32 %v2080_v60, %v2065_v27  ;;  %v3652_v27 = vld [vmem:[%s5289_s3 + $0xe8] sm:$0xf0]  ;;  %v3570_v60 = vld [vmem:[%s5289_s3 + $0x40] sm:$0xf] }
 0x494   : > { %v3655_v58 = vor.u32 %v3829_v13, %v3652_v27  ;;  %v3620_v13 = vld [vmem:[%s5289_s3 + $0xa8] sm:$0xf0] }
 0x495   : > { %v2085_v20 = vperm.slane %v2082_v39, 1  ;;  %v2084_v2 = vperm.slane %v2082_v39, 0  ;;  %v3623_v27 = vor.u32 %v3821_v51, %v3620_v13  ;;  %v2151_v13 = vld [vmem:[#allocation4] sm:$0xff] }
 0x496   : > { %2449 = vmatpush.bf16.msra.mxu3 %v3655_v58 }
 0x497   : > { %2090 = vrot.lane.b32.xlu2 %v2085_v20, %s3905_s24  ;;  %2088 = vrot.lane.b32.xlu1 %v2084_v2, %s3905_s24  ;;  %v3634_v2 = vld [vmem:[%s5289_s3 + $0xc0] sm:$0xf] }
 0x49a   : > { %2450 = vmatpush.bf16.msra.mxu3 %v3647_v56  ;;  %v3801_v56 = vld [vmem:[%s5289_s3 + $0x4] sm:$0xf] }
 0x4e2   : > { %v2028_v1 = vpop.permute.xlu2 %2027 }
 0x4f1   : > { %v2091_v24 = vpop.permute.xlu2 %2090 }
 0x4fa   : > { %v2030_v0 = vpop.permute.xlu0 %2029 }
 0x4fb   : > { %v2032_v29 = vsel %vm2031_vm7, %v2028_v1, %v2030_v0  ;;  %v2033_v62 = vsel %vm2031_vm7, %v2030_v0, %v2028_v1  ;;  %v3826_v1 = vld [vmem:[%s5289_s3 + $0xc4] sm:$0xf0]  ;;  %v3809_v0 = vld [vmem:[%s5289_s3 + $0x44] sm:$0xf] }
 0x4fc   : > { %v2036_v36 = vrot.slane %v2032_v29, 7 }
 0x4fe   : > { %v2037_v63 = vsel %vm2000_vm5, %v2033_v62, %v2036_v36  ;;  %v3635_v36 = vor.u32 %v3826_v1, %v3634_v2  ;;  %v3572_v62 = vld [vmem:[%s5289_s3 + $0x48] sm:$0xf0] }
 0x4ff   : > { %v2039_v3 = vadd.f32 %v2037_v63, %v2021_v35  ;;  %v3643_v35 = vor.u32 %v3828_v18, %v3642_v50  ;;  %v3825_v63 = vld [vmem:[%s5289_s3 + $0xc4] sm:$0xf]  ;;  %v3611_v50 = vor.u32 %v3820_v49, %v3610_v47  ;;  %v3819_v18 = vld [vmem:[%s5289_s3 + $0x94] sm:$0xf]  ;;  %v2157_v47 = vunpack.c.l.bf16 %v2151_v13 }
 0x501   : > { %v2041_v4 = vperm.slane %v2039_v3, 0  ;;  %v2042_v22 = vperm.slane %v2039_v3, 1  ;;  %2412 = vmatpush.bf16.msra.mxu1 %v3643_v35  ;;  %v3538_v35 = vld [vmem:[%s5289_s3] sm:$0xf] }
 0x503   : > { %v2043_v5 = vrot.slane %v2041_v4, 7 }
 0x505   : > { %v2044_v12 = vsel %vm2000_vm5, %v2042_v22, %v2043_v5  ;;  %v3575_v5 = vor.u32 %v3809_v0, %v3572_v62  ;;  %2413 = vmatpush.bf16.msra.mxu1 %v3635_v36  ;;  %v3824_v22 = vld [vmem:[%s5289_s3 + $0xb4] sm:$0xf0] }
 0x506   : > { %v2046_v38 = vadd.f32 %v2044_v12, %v2039_v3  ;;  %v3636_v3 = vld [vmem:[%s5289_s3 + $0xc8] sm:$0xf0]  ;;  %v3627_v23 = vor.u32 %v3824_v22, %v3626_v61 }
 0x507   : > { %v3639_v8 = vor.u32 %v3825_v63, %v3636_v3  ;;  %2432 = vmatpush.bf16.msra.mxu2 %v3575_v5  ;;  %v3534_v3 = vld [vmem:[%s5290_s4 + $0x2] ss:$8 sm:$0x3] }
 0x508   : > { %v5068_v40 = vmul.f32 0.001953125, %v2046_v38  ;;  %v3546_v38 = vld [vmem:[%s5289_s3 + $0x10] sm:$0xf] }
 0x509   : > { %v2089_v26 = vpop.permute.xlu1 %2088  ;;  %2451 = vmatpush.bf16.msra.mxu3 %v3639_v8  ;;  %2414 = vmatpush.bf16.msra.mxu1 %v3627_v23 }
 0x50a   : > { %v2092_v31 = vsel %vm2031_vm7, %v2089_v26, %v2091_v24  ;;  %v2093_v25 = vsel %vm2031_vm7, %v2091_v24, %v2089_v26  ;;  %v2109_v15 = vmul.f32 %v5068_v40, %v5068_v40  ;;  %v3628_v24 = vld [vmem:[%s5289_s3 + $0xb8] sm:$0xf0] }
 0x50b   : > { %v2096_v43 = vrot.slane %v2092_v31, 7  ;;  %v3631_v12 = vor.u32 %v3823_v10, %v3628_v24  ;;  %v3554_v31 = vld [vmem:[%s5289_s3 + $0x20] sm:$0xf]  ;;  %2433 = vmatpush.bf16.msra.mxu2 %v3567_v11  ;;  %v2156_v10 = vunpack.c.h.bf16 %v2150_v32 }
 0x50c   : > { %v3555_v42 = vor.u32 %v3806_v34, %v3554_v31 }
 0x50d   : > { %v2097_v30 = vsel %vm2000_vm5, %v2093_v25, %v2096_v43  ;;  %v3822_v43 = vld [vmem:[%s5289_s3 + $0xa4] sm:$0xf0]  ;;  %2452 = vmatpush.bf16.msra.mxu3 %v3631_v12 }
 0x50e   : > { %v2099_v48 = vadd.f32 %v2097_v30, %v2082_v39  ;;  %v3810_v39 = vld [vmem:[%s5289_s3 + $0x44] sm:$0xf0]  ;;  %v3619_v25 = vor.u32 %v3822_v43, %v3618_v41  ;;  %v3804_v30 = vld [vmem:[%s5289_s3 + $0x14] sm:$0xf0] }
 0x50f   : > { %v3571_v20 = vor.u32 %v3810_v39, %v3570_v60  ;;  %2434 = vmatpush.bf16.msra.mxu2 %v3559_v46  ;;  %v3817_v60 = vld [vmem:[%s5289_s3 + $0x84] sm:$0xf]  ;;  %v3604_v39 = vld [vmem:[%s5289_s3 + $0x88] sm:$0xf0] }
 0x510   : > { %v2101_v21 = vperm.slane %v2099_v48, 0  ;;  %v2102_v57 = vperm.slane %v2099_v48, 1  ;;  %2415 = vmatpush.bf16.msra.mxu1 %v3619_v25  ;;  %v3607_v1 = vor.u32 %v3817_v60, %v3604_v39 }
 0x511   : > { %2394 = vmatpush.bf16.msra.mxu0 %v3571_v20  ;;  %2453 = vmatpush.bf16.msra.mxu3 %v3623_v27  ;;  %v3603_v20 = vor.u32 %v3818_v55, %v3602_v54  ;;  %v2152_v27 = vld [vmem:[#allocation4 + $0x18] sm:$0xff] }
 0x512   : > { %v2103_v59 = vrot.slane %v2101_v21, 7  ;;  %v3615_v21 = vor.u32 %v3819_v18, %v3612_v19  ;;  %v2160_v49 = vunpack.c.h.bf16 %v2152_v27 }
 0x513   : > { %2435 = vmatpush.bf16.msra.mxu2 %v3551_v28 }
 0x514   : > { %v2104_v29 = vsel %vm2000_vm5, %v2102_v57, %v2103_v59  ;;  %v3540_v57 = vld [vmem:[%s5289_s3 + $0x8] sm:$0xf0]  ;;  %v3539_v59 = vor.u32 %v3802_v53, %v3538_v35  ;;  %2416 = vmatpush.bf16.msra.mxu1 %v3611_v50 }
 0x515   : > { %v2106_v4 = vadd.f32 %v2104_v29, %v2099_v48  ;;  %2395 = vmatpush.bf16.msra.mxu0 %v3563_v17  ;;  %v3547_v48 = vor.u32 %v3804_v30, %v3546_v38  ;;  %2454 = vmatpush.bf16.msra.mxu3 %v3615_v21  ;;  %v3543_v2 = vor.u32 %v3801_v56, %v3540_v57 }
 0x517   : > { %v2108_v16 = vmul.f32 0.001953125, %v2106_v4  ;;  %2436 = vmatpush.bf16.msra.mxu2 %v3543_v2 }
 0x518   : > { %2417 = vmatpush.bf16.msra.mxu1 %v3603_v20 }
 0x519   : > { %v2110_v26 = vsub.f32 %v2108_v16, %v2109_v15  ;;  %2396 = vmatpush.bf16.msra.mxu0 %v3555_v42  ;;  %2455 = vmatpush.bf16.msra.mxu3 %v3607_v1  ;;  %v2149_v16 = vld [vmem:[#allocation4 + $0x8] sm:$0xff] }
 0x51a   : > { %v2153_v22 = vunpack.c.l.bf16 %v2149_v16  ;;  %v2154_v9 = vunpack.c.h.bf16 %v2149_v16 }
 0x51b   : > { %v2111_v45 = vmax.f32 %v2110_v26, 0.0 }
 0x51d   : > { %v2116_v58 = vadd.f32 1e-05, %v2111_v45  ;;  %2397 = vmatpush.bf16.msra.mxu0 %v3547_v48  ;;  %v2158_v48 = vunpack.c.h.bf16 %v2151_v13 }
 0x51f   : > { %3870 = vrsqrt.f32 %v2116_v58  ;;  %vm2123_vm9 = vweird.f32 %v2116_v58 }
 0x521   : > { %2398 = vmatpush.bf16.msra.mxu0 %v3539_v59 }
 0x525   : > { %v3871_v0 = vpop.eup %3870 }
 0x526   : > { %v2118_v29 = vmul.f32 %v3871_v0, %v2116_v58  ;;  %vm2124_vm8 = vweird.f32 %v3871_v0  ;;  %v2159_v58 = vunpack.c.l.bf16 %v2152_v27 }
 0x527   : > { %vm2125_vm10 = vmor %vm2123_vm9, %vm2124_vm8 }
 0x528   : > { %v2119_v36 = vmul.f32 %v3871_v0, %v2118_v29 }
 0x52a   : > { %v2120_v62 = vmul.f32 0.5, %v2119_v36 }
 0x52c   : > { %v2121_v63 = vsub.f32 1.5, %v2120_v62 }
 0x52e   : > { %v2122_v4 = vmul.f32 %v3871_v0, %v2121_v63 }
 0x530   : > { %v2126_v8 = vsel %vm2125_vm10, %v3871_v0, %v2122_v4 }
 0x531   : > { %v2127_v14 = vmul.f32 %v3534_v3, %v2126_v8 }
 0x533   : > { %2133 = vst.msk [vmem:[#allocation6 + $0x2] ss:$8 sm:$0x3] %vm5197_vm11, %v2127_v14  ;;  %v2135_v61 = vmul.f32 %v2127_v14, %v5068_v40 }
 0x535   : > { %v2136_v15 = vsub.f32 %v3535_v6, %v2135_v61 }
 0x537   : > { %2138 = vst.msk [vmem:[#allocation6 + $0x3] ss:$8 sm:$0x3] %vm5197_vm11, %v2136_v15 }
 0x53a   : > { %v2141_v17 = vld [vmem:[#allocation6 + $0x2] ss:$8 sm:$0x3] }
 0x53b   : > { %v2162_v23 = vperm.slane %v2141_v17, 0  ;;  %v2163_v24 = vperm.slane %v2141_v17, 1 }
 0x53d   : > { %v2166_v11 = vmul.f32 %v2162_v23, %v2153_v22  ;;  %v2168_v12 = vmul.f32 %v2162_v23, %v2155_v7  ;;  %v2167_v34 = vmul.f32 %v2163_v24, %v2154_v9  ;;  %v2169_v41 = vmul.f32 %v2163_v24, %v2156_v10 }
 0x53e   : > { %v2143_v26 = vld [vmem:[#allocation6 + $0x3] ss:$8 sm:$0x3]  ;;  %v2170_v37 = vmul.f32 %v2162_v23, %v2157_v47  ;;  %v2172_v50 = vmul.f32 %v2162_v23, %v2159_v58  ;;  %v2171_v52 = vmul.f32 %v2163_v24, %v2158_v48  ;;  %v2173_v18 = vmul.f32 %v2163_v24, %v2160_v49 }
 0x53f   : > { %v2175_v31 = vperm.slane %v2143_v26, 0  ;;  %v2176_v40 = vperm.slane %v2143_v26, 1 }
 0x541   : > { %v2179_v42 = vadd.f32 %v2175_v31, %v2166_v11  ;;  %v2181_v43 = vadd.f32 %v2175_v31, %v2168_v12  ;;  %v2180_v44 = vadd.f32 %v2176_v40, %v2167_v34  ;;  %v2182_v33 = vadd.f32 %v2176_v40, %v2169_v41 }
 0x542   : > { %v2183_v19 = vadd.f32 %v2175_v31, %v2170_v37  ;;  %v2185_v28 = vadd.f32 %v2175_v31, %v2172_v50  ;;  %v2184_v21 = vadd.f32 %v2176_v40, %v2171_v52  ;;  %v2186_v35 = vadd.f32 %v2176_v40, %v2173_v18 }
 0x543   : > { %v2187_v45 = vmax.f32 %v2179_v42, 0.0  ;;  %v2189_v25 = vmax.f32 %v2181_v43, 0.0  ;;  %v2188_v46 = vmax.f32 %v2180_v44, 0.0  ;;  %v2190_v51 = vmax.f32 %v2182_v33, 0.0 }
 0x544   : > { %v2191_v53 = vmax.f32 %v2183_v19, 0.0  ;;  %v2193_v54 = vmax.f32 %v2185_v28, 0.0  ;;  %v2192_v55 = vmax.f32 %v2184_v21, 0.0  ;;  %v2194_v56 = vmax.f32 %v2186_v35, 0.0 }
 0x545   : > { %v2195_v38 = vpack.c.bf16 %v2189_v25, %v2187_v45  ;;  %v2196_v30 = vpack.c.bf16 %v2190_v51, %v2188_v46 }
 0x546   : > { %v2197_v57 = vpack.c.bf16 %v2193_v54, %v2191_v53  ;;  %v2198_v59 = vpack.c.bf16 %v2194_v56, %v2192_v55 }
 0x547   : > { %2399 = vmatmul.bf16.vlgmr.msra.gmra.mxu0 %v2195_v38  ;;  %2418 = vmatmul.bf16.vlgmr.msra.gmra.mxu1 %v2196_v30 }
 0x548   : > { %2437 = vmatmul.bf16.vlgmr.msra.gmra.mxu2 %v2195_v38  ;;  %2456 = vmatmul.bf16.vlgmr.msra.gmra.mxu3 %v2196_v30 }
 0x557   : > { %2404 = vmatmul.bf16.gmra.mxu0 %v2197_v57  ;;  %2423 = vmatmul.bf16.gmra.mxu1 %v2198_v59 }
 0x558   : > { %2442 = vmatmul.bf16.gmra.mxu2 %v2197_v57  ;;  %2461 = vmatmul.bf16.gmra.mxu3 %v2198_v59 }
 0x5c4   : > { %v2400_v60 = vpop.f32.mrf.mxu0  ;;  %v2419_v39 = vpop.f32.mrf.mxu1 }
 0x5c5   : > { %v2420_v1 = vadd.f32 %v2419_v39, %v2400_v60 }
 0x5c7   : > { %v2510_v32 = vmul.f32 %v2420_v1, %v2420_v1 }
 0x5cb   : > { %v2438_v20 = vpop.f32.mrf.mxu2  ;;  %v2457_v2 = vpop.f32.mrf.mxu3 }
 0x5cc   : > { %v2458_v0 = vadd.f32 %v2457_v2, %v2438_v20  ;;  %v2402_v29 = vpop.f32.mrf.mxu0  ;;  %v2421_v36 = vpop.f32.mrf.mxu1 }
 0x5cd   : > { %v2422_v4 = vadd.f32 %v2421_v36, %v2402_v29  ;;  %v2476_v36 = vld [vmem:[#allocation5 + $0x4] ss:$8 sm:$0x3] }
 0x5ce   : > { %v2467_v62 = vpack.c.bf16 %v2458_v0, %v2420_v1  ;;  %v2511_v43 = vmul.f32 %v2458_v0, %v2458_v0 }
 0x5cf   : > { %v2512_v16 = vmul.f32 %v2422_v4, %v2422_v4  ;;  %v2477_v17 = vadd.f32 %v2422_v4, %v2420_v1 }
 0x5d0   : > { %2471 = vst [vmem:[#allocation4 + $0x8] sm:$0xff] %v2467_v62 }
 0x5d1   : > { %v2518_v26 = vadd.f32 %v2512_v16, %v2510_v32 }
 0x5d3   : > { %v2440_v63 = vpop.f32.mrf.mxu2  ;;  %v2459_v3 = vpop.f32.mrf.mxu3 }
 0x5d4   : > { %v2460_v8 = vadd.f32 %v2459_v3, %v2440_v63  ;;  %v2405_v14 = vpop.f32.mrf.mxu0  ;;  %v2424_v6 = vpop.f32.mrf.mxu1 }
 0x5d5   : > { %v2425_v15 = vadd.f32 %v2424_v6, %v2405_v14 }
 0x5d6   : > { %v2468_v61 = vpack.c.bf16 %v2460_v8, %v2422_v4  ;;  %v2513_v34 = vmul.f32 %v2460_v8, %v2460_v8  ;;  %v2486_v25 = vadd.f32 %v2460_v8, %v2458_v0  ;;  %v2509_v8 = vld [vmem:[#allocation5 + $0x5] ss:$8 sm:$0x3] }
 0x5d7   : > { %v2514_v22 = vmul.f32 %v2425_v15, %v2425_v15  ;;  %v2478_v11 = vadd.f32 %v2477_v17, %v2425_v15 }
 0x5d8   : > { %2472 = vst [vmem:[#allocation4 + $0x10] sm:$0xff] %v2468_v61  ;;  %v2527_v46 = vadd.f32 %v2513_v34, %v2511_v43 }
 0x5d9   : > { %v2519_v41 = vadd.f32 %v2518_v26, %v2514_v22 }
 0x5db   : > { %v2443_v7 = vpop.f32.mrf.mxu2  ;;  %v2462_v23 = vpop.f32.mrf.mxu3 }
 0x5dc   : > { %v2463_v9 = vadd.f32 %v2462_v23, %v2443_v7  ;;  %v2407_v10 = vpop.f32.mrf.mxu0  ;;  %v2426_v24 = vpop.f32.mrf.mxu1 }
 0x5dd   : > { %v2427_v12 = vadd.f32 %v2426_v24, %v2407_v10 }
 0x5de   : > { %v2469_v31 = vpack.c.bf16 %v2463_v9, %v2425_v15  ;;  %v2515_v44 = vmul.f32 %v2463_v9, %v2463_v9  ;;  %v2487_v38 = vadd.f32 %v2486_v25, %v2463_v9 }
 0x5df   : > { %v2479_v40 = vadd.f32 %v2478_v11, %v2427_v12  ;;  %v2516_v42 = vmul.f32 %v2427_v12, %v2427_v12 }
 0x5e0   : > { %2473 = vst [vmem:[#allocation4] sm:$0xff] %v2469_v31  ;;  %v2528_v58 = vadd.f32 %v2527_v46, %v2515_v44 }
 0x5e1   : > { %v2480_v33 = vrot.slane %v2479_v40, 4  ;;  %v2520_v45 = vadd.f32 %v2519_v41, %v2516_v42 }
 0x5e3   : > { %v2521_v51 = vrot.slane %v2520_v45, 4  ;;  %v2445_v13 = vpop.f32.mrf.mxu2  ;;  %v2464_v27 = vpop.f32.mrf.mxu3  ;;  %v2481_v30 = vadd.f32 %v2480_v33, %v2479_v40 }
 0x5e4   : > { %v2465_v47 = vadd.f32 %v2464_v27, %v2445_v13 }
 0x5e5   : > { %v2522_v48 = vadd.f32 %v2521_v51, %v2520_v45  ;;  %v2482_v52 = vrot.slane %v2481_v30, 2 }
 0x5e6   : > { %v2470_v49 = vpack.c.bf16 %v2465_v47, %v2427_v12  ;;  %v2488_v37 = vadd.f32 %v2487_v38, %v2465_v47  ;;  %v2517_v50 = vmul.f32 %v2465_v47, %v2465_v47 }
 0x5e7   : > { %v2523_v28 = vrot.slane %v2522_v48, 2  ;;  %v2483_v53 = vadd.f32 %v2482_v52, %v2481_v30 }
 0x5e8   : > { %2474 = vst [vmem:[#allocation4 + $0x18] sm:$0xff] %v2470_v49  ;;  %v2489_v18 = vrot.slane %v2488_v37, 4  ;;  %v2529_v19 = vadd.f32 %v2528_v58, %v2517_v50 }
 0x5e9   : > { %v2524_v56 = vadd.f32 %v2523_v28, %v2522_v48  ;;  %v2484_v60 = vrot.slane %v2483_v53, 1 }
 0x5ea   : > { %v2490_v21 = vadd.f32 %v2489_v18, %v2488_v37  ;;  %v2530_v35 = vrot.slane %v2529_v19, 4 }
 0x5eb   : > { %v2525_v2 = vrot.slane %v2524_v56, 1  ;;  %v2485_v29 = vadd.f32 %v2484_v60, %v2483_v53 }
 0x5ec   : > { %v2491_v54 = vrot.slane %v2490_v21, 2  ;;  %v2531_v55 = vadd.f32 %v2530_v35, %v2529_v19 }
 0x5ed   : > { %v2526_v3 = vadd.f32 %v2525_v2, %v2524_v56 }
 0x5ee   : > { %v2492_v57 = vadd.f32 %v2491_v54, %v2490_v21  ;;  %v2532_v59 = vrot.slane %v2531_v55, 2 }
 0x5f0   : > { %v2493_v39 = vrot.slane %v2492_v57, 1  ;;  %v2533_v20 = vadd.f32 %v2532_v59, %v2531_v55 }
 0x5f2   : > { %v2494_v1 = vadd.f32 %v2493_v39, %v2492_v57  ;;  %v2534_v0 = vrot.slane %v2533_v20, 1 }
 0x5f4   : > { %v2497_v62 = vrot.slane %v2494_v1, 7  ;;  %v2535_v63 = vadd.f32 %v2534_v0, %v2533_v20 }
 0x5f6   : > { %v2499_v4 = vsel %vm2000_vm5, %v2485_v29, %v2497_v62  ;;  %v2538_v14 = vrot.slane %v2535_v63, 7 }
 0x5f7   : > { %v2501_v6 = vadd.f32 %v2499_v4, %v2476_v36 }
 0x5f8   : > { %v2539_v61 = vsel %vm2000_vm5, %v2526_v3, %v2538_v14 }
 0x5f9   : > { %2506 = vst.msk [vmem:[#allocation5 + $0x4] ss:$8 sm:$0x3] %vm5197_vm11, %v2501_v6  ;;  %v2541_v15 = vadd.f32 %v2539_v61, %v2509_v8 }
 0x5fb   : > { %2542 = vst.msk [vmem:[#allocation5 + $0x5] ss:$8 sm:$0x3] %vm5197_vm11, %v2541_v15 }
 0x5fc PF: > { %p3664_p7 = scmp.ne.s32.totalorder %s3888_s18, 3 }
 0x5fd   : > { %s3906_s6 = smov (!%p3664_p7), 16   ;;  %s3907_s18 = smov (!%p3664_p7), 32  }
 0x5fe   : > { %2547 = sbr.rel (%p3664_p7) target bundleno = 1980 (0x7bc), region = 68  ;;  %s3908_s7 = smov (!%p3664_p7), 64  }
 0x603   : > { %v2619_v16 = vld [vmem:[#allocation5 + $0x5] ss:$8 sm:$0x3]  ;;  %v2553_v17 = vld [vmem:[#allocation5 + $0x4] ss:$8 sm:$0x3]  ;;  %v2563_v9 = vlaneseq }
 0x604   : > { %v2621_v32 = vperm.slane %v2619_v16, 0  ;;  %v2555_v22 = vperm.slane %v2553_v17, 0  ;;  %v2622_v7 = vperm.slane %v2619_v16, 1  ;;  %v2556_v23 = vperm.slane %v2553_v17, 1 }
 0x605   : > { %v5217_v5 = vand.u32 127, %v2563_v9  ;;  %vm2571_vm13 = vcmask 1040384   ;;  %vm2701_vm4 = vcmp.lt.s32.totalorder %v2563_v9, 256 }
 0x606   : > { %2625 = vrot.lane.b32.xlu1 %v2621_v32, %s3906_s6  ;;  %2559 = vrot.lane.b32.xlu0 %v2555_v22, %s3906_s6 }
 0x607   : > { %vm2565_vm12 = vcmp.lt.s32.totalorder %v5217_v5, 16  ;;  %vm2584_vm14 = vcmp.lt.s32.totalorder %v5217_v5, 32  ;;  %vm2602_vm15 = vcmp.lt.s32.totalorder %v5217_v5, 64 }
 0x60e   : > { %2627 = vrot.lane.b32.xlu1 %v2622_v7, %s3906_s6  ;;  %2561 = vrot.lane.b32.xlu0 %v2556_v23, %s3906_s6 }
 0x678   : > { %v2626_v10 = vpop.permute.xlu1 %2625  ;;  %v2560_v24 = vpop.permute.xlu0 %2559 }
 0x680   : > { %v2628_v26 = vpop.permute.xlu1 %2627  ;;  %v2562_v12 = vpop.permute.xlu0 %2561 }
 0x681   : > { %v2629_v11 = vsel %vm2565_vm12, %v2626_v10, %v2628_v26  ;;  %v2566_v34 = vsel %vm2565_vm12, %v2560_v24, %v2562_v12  ;;  %v2567_v41 = vsel %vm2565_vm12, %v2562_v12, %v2560_v24  ;;  %v2630_v40 = vsel %vm2565_vm12, %v2628_v26, %v2626_v10 }
 0x682   : > { %v2633_v31 = vrot.slane %v2629_v11, 7  ;;  %v2570_v42 = vrot.slane %v2566_v34, 7 }
 0x684   : > { %v2634_v43 = vsel %vm2571_vm13, %v2630_v40, %v2633_v31  ;;  %v2572_v33 = vsel %vm2571_vm13, %v2567_v41, %v2570_v42  ;;  %v3665_v40 = vld [vmem:[%s5290_s4 + $0x4] ss:$8 sm:$0x3] }
 0x685   : > { %v2636_v44 = vadd.f32 %v2634_v43, %v2619_v16  ;;  %v2574_v45 = vadd.f32 %v2572_v33, %v2553_v17  ;;  %v3666_v33 = vld [vmem:[%s5290_s4 + $0x5] ss:$8 sm:$0x3] }
 0x687   : > { %v2639_v25 = vperm.slane %v2636_v44, 1  ;;  %v2638_v46 = vperm.slane %v2636_v44, 0  ;;  %v2576_v51 = vperm.slane %v2574_v45, 0  ;;  %v2577_v13 = vperm.slane %v2574_v45, 1 }
 0x689   : > { %2644 = vrot.lane.b32.xlu1 %v2639_v25, %s3907_s18  ;;  %2642 = vrot.lane.b32.xlu0 %v2638_v46, %s3907_s18  ;;  %v2720_v46 = vld [vmem:[#allocation4 + $0x8] sm:$0xff] }
 0x68a   : > { %2580 = vrot.lane.b32.xlu2 %v2576_v51, %s3907_s18  ;;  %v2721_v51 = vld [vmem:[#allocation4 + $0x10] sm:$0xff] }
 0x68b   : > { %v2726_v9 = vunpack.c.l.bf16 %v2721_v51 }
 0x692   : > { %2582 = vrot.lane.b32.xlu2 %v2577_v13, %s3907_s18  ;;  %v2722_v13 = vld [vmem:[#allocation4] sm:$0xff] }
 0x6e4   : > { %v2581_v27 = vpop.permute.xlu2 %2580 }
 0x6ec   : > { %v2583_v38 = vpop.permute.xlu2 %2582 }
 0x6ed   : > { %v2585_v30 = vsel %vm2584_vm14, %v2581_v27, %v2583_v38  ;;  %v2586_v58 = vsel %vm2584_vm14, %v2583_v38, %v2581_v27  ;;  %v2723_v27 = vld [vmem:[#allocation4 + $0x18] sm:$0xff]  ;;  %v2724_v38 = vunpack.c.l.bf16 %v2720_v46 }
 0x6ee   : > { %v2589_v47 = vrot.slane %v2585_v30, 7  ;;  %v2725_v30 = vunpack.c.h.bf16 %v2720_v46 }
 0x6f0   : > { %v2590_v48 = vsel %vm2571_vm13, %v2586_v58, %v2589_v47  ;;  %v2768_v47 = vld [vmem:[#allocation3 + $0x8] sm:$0xff]  ;;  %v2769_v58 = vld [vmem:[#allocation3] sm:$0xff] }
 0x6f1   : > { %v2592_v49 = vadd.f32 %v2590_v48, %v2574_v45 }
 0x6f3   : > { %v2595_v37 = vperm.slane %v2592_v49, 1  ;;  %v2594_v50 = vperm.slane %v2592_v49, 0 }
 0x6f5   : > { %2600 = vrot.lane.b32.xlu0 %v2595_v37, %s3908_s7  ;;  %2598 = vrot.lane.b32.xlu2 %v2594_v50, %s3908_s7  ;;  %v2770_v37 = vld [vmem:[#allocation3 + $0x10] sm:$0xff] }
 0x6fb   : > { %v2645_v52 = vpop.permute.xlu1 %2644  ;;  %v2643_v18 = vpop.permute.xlu0 %2642 }
 0x6fc   : > { %v2646_v19 = vsel %vm2584_vm14, %v2643_v18, %v2645_v52  ;;  %v2647_v21 = vsel %vm2584_vm14, %v2645_v52, %v2643_v18  ;;  %v2728_v18 = vunpack.c.l.bf16 %v2722_v13 }
 0x6fd   : > { %v2650_v28 = vrot.slane %v2646_v19, 7  ;;  %v2729_v19 = vunpack.c.h.bf16 %v2722_v13 }
 0x6ff   : > { %v2651_v35 = vsel %vm2571_vm13, %v2647_v21, %v2650_v28  ;;  %v2730_v28 = vunpack.c.l.bf16 %v2723_v27  ;;  %v2731_v21 = vunpack.c.h.bf16 %v2723_v27 }
 0x700   : > { %v2653_v53 = vadd.f32 %v2651_v35, %v2636_v44  ;;  %v2772_v35 = vunpack.c.l.bf16 %v2768_v47 }
 0x702   : > { %v2656_v54 = vperm.slane %v2653_v53, 1  ;;  %v2655_v55 = vperm.slane %v2653_v53, 0 }
 0x704   : > { %2661 = vrot.lane.b32.xlu2 %v2656_v54, %s3908_s7  ;;  %2659 = vrot.lane.b32.xlu1 %v2655_v55, %s3908_s7  ;;  %v2774_v54 = vunpack.c.l.bf16 %v2769_v58  ;;  %v2775_v55 = vunpack.c.h.bf16 %v2769_v58 }
 0x74f   : > { %v2599_v56 = vpop.permute.xlu2 %2598 }
 0x75e   : > { %v2662_v29 = vpop.permute.xlu2 %2661 }
 0x767   : > { %v2601_v57 = vpop.permute.xlu0 %2600 }
 0x768   : > { %v2603_v59 = vsel %vm2602_vm15, %v2599_v56, %v2601_v57  ;;  %v2604_v39 = vsel %vm2602_vm15, %v2601_v57, %v2599_v56  ;;  %v2776_v56 = vunpack.c.l.bf16 %v2770_v37 }
 0x769   : > { %v2607_v60 = vrot.slane %v2603_v59, 7 }
 0x76b   : > { %v2608_v20 = vsel %vm2571_vm13, %v2604_v39, %v2607_v60 }
 0x76c   : > { %v2610_v2 = vadd.f32 %v2608_v20, %v2592_v49  ;;  %v2727_v49 = vunpack.c.h.bf16 %v2721_v51 }
 0x76e   : > { %v2612_v1 = vperm.slane %v2610_v2, 0  ;;  %v2613_v62 = vperm.slane %v2610_v2, 1 }
 0x770   : > { %v2614_v0 = vrot.slane %v2612_v1, 7 }
 0x772   : > { %v2615_v4 = vsel %vm2571_vm13, %v2613_v62, %v2614_v0 }
 0x773   : > { %v2617_v61 = vadd.f32 %v2615_v4, %v2610_v2 }
 0x775   : > { %v2678_v17 = vmul.f32 0.001953125, %v2617_v61 }
 0x776   : > { %v2660_v36 = vpop.permute.xlu1 %2659 }
 0x777   : > { %v2663_v63 = vsel %vm2602_vm15, %v2660_v36, %v2662_v29  ;;  %v2664_v8 = vsel %vm2602_vm15, %v2662_v29, %v2660_v36  ;;  %v2680_v23 = vmul.f32 %v2678_v17, %v2678_v17 }
 0x778   : > { %v2667_v3 = vrot.slane %v2663_v63, 7  ;;  %v2771_v63 = vld [vmem:[#allocation3 + $0x18] sm:$0xff] }
 0x77a   : > { %v2668_v14 = vsel %vm2571_vm13, %v2664_v8, %v2667_v3 }
 0x77b   : > { %v2670_v6 = vadd.f32 %v2668_v14, %v2653_v53  ;;  %v2773_v53 = vunpack.c.h.bf16 %v2768_v47 }
 0x77d   : > { %v2672_v15 = vperm.slane %v2670_v6, 0  ;;  %v2673_v16 = vperm.slane %v2670_v6, 1 }
 0x77f   : > { %v2674_v32 = vrot.slane %v2672_v15, 7 }
 0x781   : > { %v2675_v22 = vsel %vm2571_vm13, %v2673_v16, %v2674_v32 }
 0x782   : > { %v2677_v7 = vadd.f32 %v2675_v22, %v2670_v6 }
 0x784   : > { %v2679_v10 = vmul.f32 0.001953125, %v2677_v7 }
 0x786   : > { %v2681_v24 = vsub.f32 %v2679_v10, %v2680_v23  ;;  %v2777_v23 = vunpack.c.h.bf16 %v2770_v37  ;;  %v2778_v10 = vunpack.c.l.bf16 %v2771_v63 }
 0x788   : > { %v2682_v26 = vmax.f32 %v2681_v24, 0.0 }
 0x78a   : > { %v2687_v11 = vadd.f32 1e-05, %v2682_v26 }
 0x78c   : > { %3872 = vrsqrt.f32 %v2687_v11  ;;  %vm2694_vm1 = vweird.f32 %v2687_v11 }
 0x792   : > { %v3873_v12 = vpop.eup %3872 }
 0x793   : > { %v2689_v5 = vmul.f32 %v3873_v12, %v2687_v11  ;;  %vm2695_vm0 = vweird.f32 %v3873_v12 }
 0x794   : > { %vm2696_vm2 = vmor %vm2694_vm1, %vm2695_vm0 }
 0x795   : > { %v2690_v31 = vmul.f32 %v3873_v12, %v2689_v5 }
 0x797   : > { %v2691_v34 = vmul.f32 0.5, %v2690_v31 }
 0x799   : > { %v2692_v41 = vsub.f32 1.5, %v2691_v34  ;;  %v2779_v34 = vunpack.c.h.bf16 %v2771_v63 }
 0x79b   : > { %v2693_v42 = vmul.f32 %v3873_v12, %v2692_v41 }
 0x79d   : > { %v2697_v43 = vsel %vm2696_vm2, %v3873_v12, %v2693_v42 }
 0x79e   : > { %v2698_v44 = vmul.f32 %v3665_v40, %v2697_v43 }
 0x7a0   : > { %2704 = vst.msk [vmem:[#allocation6 + $0x4] ss:$8 sm:$0x3] %vm2701_vm4, %v2698_v44  ;;  %v2706_v45 = vmul.f32 %v2698_v44, %v2678_v17 }
 0x7a2   : > { %v2707_v25 = vsub.f32 %v3666_v33, %v2706_v45 }
 0x7a4   : > { %2709 = vst.msk [vmem:[#allocation6 + $0x5] ss:$8 sm:$0x3] %vm2701_vm4, %v2707_v25 }
 0x7a7   : > { %v2712_v48 = vld [vmem:[#allocation6 + $0x4] ss:$8 sm:$0x3] }
 0x7a8   : > { %v2733_v50 = vperm.slane %v2712_v48, 0  ;;  %v2734_v52 = vperm.slane %v2712_v48, 1 }
 0x7aa   : > { %v2737_v59 = vmul.f32 %v2733_v50, %v2724_v38  ;;  %v2738_v60 = vmul.f32 %v2734_v52, %v2725_v30  ;;  %v2739_v39 = vmul.f32 %v2733_v50, %v2726_v9  ;;  %v2740_v20 = vmul.f32 %v2734_v52, %v2727_v49 }
 0x7ab   : > { %v2714_v57 = vld [vmem:[#allocation6 + $0x5] ss:$8 sm:$0x3]  ;;  %v2741_v0 = vmul.f32 %v2733_v50, %v2728_v18  ;;  %v2742_v29 = vmul.f32 %v2734_v52, %v2729_v19  ;;  %v2743_v36 = vmul.f32 %v2733_v50, %v2730_v28  ;;  %v2744_v62 = vmul.f32 %v2734_v52, %v2731_v21 }
 0x7ac   : > { %v2746_v2 = vperm.slane %v2714_v57, 0  ;;  %v2747_v1 = vperm.slane %v2714_v57, 1 }
 0x7ae   : > { %v2750_v3 = vadd.f32 %v2746_v2, %v2737_v59  ;;  %v2751_v4 = vadd.f32 %v2747_v1, %v2738_v60  ;;  %v2752_v8 = vadd.f32 %v2746_v2, %v2739_v39  ;;  %v2753_v14 = vadd.f32 %v2747_v1, %v2740_v20 }
 0x7af   : > { %v2754_v6 = vadd.f32 %v2746_v2, %v2741_v0  ;;  %v2755_v61 = vadd.f32 %v2747_v1, %v2742_v29  ;;  %v2756_v15 = vadd.f32 %v2746_v2, %v2743_v36  ;;  %v2757_v16 = vadd.f32 %v2747_v1, %v2744_v62 }
 0x7b0   : > { %v2758_v32 = vmax.f32 %v2750_v3, 0.0  ;;  %v2759_v17 = vmax.f32 %v2751_v4, 0.0  ;;  %v2760_v22 = vmax.f32 %v2752_v8, 0.0  ;;  %v2761_v7 = vmax.f32 %v2753_v14, 0.0 }
 0x7b1   : > { %v2762_v24 = vmax.f32 %v2754_v6, 0.0  ;;  %v2763_v26 = vmax.f32 %v2755_v61, 0.0  ;;  %v2764_v11 = vmax.f32 %v2756_v15, 0.0  ;;  %v2765_v41 = vmax.f32 %v2757_v16, 0.0 }
 0x7b2   : > { %v2780_v12 = vadd.f32 %v2772_v35, %v2758_v32  ;;  %v2781_v5 = vadd.f32 %v2773_v53, %v2759_v17  ;;  %v2782_v31 = vadd.f32 %v2774_v54, %v2760_v22  ;;  %v2783_v40 = vadd.f32 %v2775_v55, %v2761_v7 }
 0x7b3   : > { %v2784_v42 = vadd.f32 %v2776_v56, %v2762_v24  ;;  %v2785_v43 = vadd.f32 %v2777_v23, %v2763_v26  ;;  %v2786_v44 = vadd.f32 %v2778_v10, %v2764_v11  ;;  %v2787_v33 = vadd.f32 %v2779_v34, %v2765_v41 }
 0x7b4   : > { %2788 = vst [vmem:[%s5291_s5] sm:$0xff] %v2780_v12 }
 0x7b5   : > { %2789 = vst [vmem:[%s5291_s5 + $0x8] sm:$0xff] %v2781_v5 }
 0x7b6   : > { %2790 = vst [vmem:[%s5291_s5 + $0x10] sm:$0xff] %v2782_v31 }
 0x7b7   : > { %2791 = vst [vmem:[%s5291_s5 + $0x18] sm:$0xff] %v2783_v40 }
 0x7b8   : > { %2792 = vst [vmem:[%s5291_s5 + $0x20] sm:$0xff] %v2784_v42 }
 0x7b9   : > { %2793 = vst [vmem:[%s5291_s5 + $0x28] sm:$0xff] %v2785_v43 }
 0x7ba   : > { %2794 = vst [vmem:[%s5291_s5 + $0x30] sm:$0xff] %v2786_v44 }
 0x7bb   : > { %2795 = vst [vmem:[%s5291_s5 + $0x38] sm:$0xff] %v2787_v33 }
 0x7bc PF: > { %s15_s20 = sadd.s32 1, %s3896_s20   ;;  %s5302_s18 = smov %s3892_s19 }
 0x7bd   : > { %p12_p8 = scmp.ge.s32.totalorder %s15_s20, 6   ;;  %s5303_s19 = smov %s5305_s21 }
 0x7bf   :  { %14 = sbr.rel (!%p12_p8) target bundleno = 2 (0x2), region = 137 }

</bundles_post_ra>
